<compile_context>
chip_gen: v7x
topology: tpu7x:2x2x1
jax: 0.10.0
libtpu: 0.0.40
codegen_flags: <defaults>
</compile_context>

<pallas_src>
import jax
import jax.numpy as jnp
from jax.experimental import pallas as pl
from jax.experimental.pallas import tpu as pltpu

IN_FEATURES = 1000
OUT_FEATURES = 1000


def _linear_kernel(x_ref, w_ref, b_ref, o_ref):
    # x_ref: (B, IN)        f32 — same block every grid step (stays VMEM-resident)
    # w_ref: (IN, TILE_N)   f32 — (K, N) layout, canonical MXU RHS, no transpose
    # b_ref: (1, TILE_N)    f32
    # o_ref: (B, TILE_N)    f32 — lane-dense stores (masked only on the v7x edge block)
    o_ref[...] = (
        jnp.dot(x_ref[...], w_ref[...], preferred_element_type=jnp.float32)
        + b_ref[...]
    )


def prepare_params(weight, bias):
    """One-time init-path conversion (outside the hot path):
    PyTorch (out, in) weight -> (in, out), bias -> 2-D row. No padding."""
    w_kn = jnp.asarray(weight, jnp.float32).T                    # (IN, OUT)
    b_2d = jnp.asarray(bias, jnp.float32).reshape(1, OUT_FEATURES)
    return w_kn, b_2d


def _n_tiles_for_device():
    """2-way N split only where a chip has 2 TensorCores (v7x); a single
    full-weight block everywhere else (v5e/v6e) — the kernel is weight-DMA
    bound, so extra grid steps on a single-TC chip are pure overhead."""
    try:
        kind = jax.devices()[0].device_kind.lower()
    except Exception:
        kind = ""
    return 2 if ("v7" in kind or "tpu7" in kind) else 1


def make_net_forward(n_tiles=None):
    if n_tiles is None:
        n_tiles = _n_tiles_for_device()

    if n_tiles > 1:
        # Keep the tile lane-width a multiple of 128 (satisfies the (8,128)
        # constraint); the last block is partial -> masked edge store only.
        tile_n = ((pl.cdiv(OUT_FEATURES, n_tiles) + 127) // 128) * 128
        n_tiles = pl.cdiv(OUT_FEATURES, tile_n)
    else:
        tile_n = OUT_FEATURES  # full-dim block: no padding, no masking

    def forward(x, w_kn, b_2d):
        B = x.shape[0]
        cost = pl.CostEstimate(
            flops=2 * B * IN_FEATURES * OUT_FEATURES,
            transcendentals=0,
            bytes_accessed=4 * (IN_FEATURES * OUT_FEATURES          # weight
                                + B * IN_FEATURES                    # x
                                + OUT_FEATURES                       # bias
                                + B * OUT_FEATURES),                 # y
        )
        return pl.pallas_call(
            _linear_kernel,
            out_shape=jax.ShapeDtypeStruct((B, OUT_FEATURES), jnp.float32),
            grid=(n_tiles,),
            in_specs=[
                # x: full-dim block, identical every step -> loaded once.
                pl.BlockSpec((B, IN_FEATURES), lambda j: (0, 0)),
                # weight: (K, N) layout, N-tiled (or the whole array if n_tiles==1).
                pl.BlockSpec((IN_FEATURES, tile_n), lambda j: (0, j)),
                # bias: N-tiled to match.
                pl.BlockSpec((1, tile_n), lambda j: (0, j)),
            ],
            out_specs=pl.BlockSpec((B, tile_n), lambda j: (0, j)),
            compiler_params=pltpu.CompilerParams(
                # On v7x the 2 N-tiles are sharded across the 2 TensorCores;
                # harmless no-op when the grid is a single step.
                dimension_semantics=("parallel",),
            ),
            cost_estimate=cost,
        )(x, w_kn, b_2d)

    return jax.jit(forward)


if __name__ == "__main__":
    key = jax.random.PRNGKey(0)
    k_x, k_w, k_b = jax.random.split(key, 3)

    B = 8  # small batch; feature dims fixed by the module (Linear(1000, 1000))
    # Deterministic parameter init mimicking nn.Linear's uniform(-1/sqrt(fan_in), +)
    bound = 1.0 / (IN_FEATURES ** 0.5)
    weight = jax.random.uniform(
        k_w, (OUT_FEATURES, IN_FEATURES), jnp.float32, -bound, bound)
    bias = jax.random.uniform(
        k_b, (OUT_FEATURES,), jnp.float32, -bound, bound)
    x = jax.random.normal(k_x, (B, IN_FEATURES), jnp.float32)

    # One-time parameter prep (outside the hot path).
    w_kn, b_2d = prepare_params(weight, bias)
    net_forward = make_net_forward()

    y = net_forward(x, w_kn, b_2d)
    jax.block_until_ready(y)

    # Correctness check vs plain JAX reference (exact nn.Linear semantics).
    y_ref = x @ weight.T + bias
    assert y.shape == (B, OUT_FEATURES)
    assert jnp.allclose(y, y_ref, atol=1e-4, rtol=1e-4)

    print("KERNEL_OK")
</pallas_src>

<mosaic_0001>
module attributes {stable_mosaic.version = 11 : i64} {
  func.func @_linear_kernel(%arg0: i32, %arg1: memref<8x1000xf32, #tpu.memory_space<vmem>>, %arg2: memref<1000x1000xf32, #tpu.memory_space<vmem>>, %arg3: memref<1x1000xf32, #tpu.memory_space<vmem>>, %arg4: memref<8x1000xf32, #tpu.memory_space<vmem>>) attributes {dimension_semantics = [#tpu.dimension_semantics<parallel>], iteration_bounds = array<i64: 1>, scalar_prefetch = 0 : i64, scratch_operands = 0 : i64, tpu.core_type = #tpu.core_type<tc>, window_params = [{pipeline_mode = #tpu.pipeline_mode<synchronous>, transform_indices = @transform_0, window_bounds = array<i64: 8, 1000>}, {transform_indices = @transform_1, window_bounds = array<i64: 1000, 1000>}, {transform_indices = @transform_2, window_bounds = array<i64: 1, 1000>}, {transform_indices = @transform_3, window_bounds = array<i64: 8, 1000>}]} {
    %c0 = arith.constant 0 : index
    %c0_0 = arith.constant 0 : index
    %0 = vector.load %arg1[%c0, %c0_0] : memref<8x1000xf32, #tpu.memory_space<vmem>>, vector<8x1000xf32>
    %c0_1 = arith.constant 0 : index
    %c0_2 = arith.constant 0 : index
    %1 = vector.load %arg2[%c0_1, %c0_2] : memref<1000x1000xf32, #tpu.memory_space<vmem>>, vector<1000x1000xf32>
    %cst = arith.constant dense<0.000000e+00> : vector<8x1000xf32>
    %2 = tpu.matmul %0, %1, %cst {dimension_numbers = #tpu.dot_dimension_numbers<[1], [0], [0], [1], [0, 0, 1, 1], [], []>} : vector<8x1000xf32>, vector<1000x1000xf32>, vector<8x1000xf32> -> vector<8x1000xf32>
    %c0_3 = arith.constant 0 : index
    %c0_4 = arith.constant 0 : index
    %3 = vector.load %arg3[%c0_3, %c0_4] : memref<1x1000xf32, #tpu.memory_space<vmem>>, vector<1x1000xf32>
    %4 = vector.broadcast %3 : vector<1x1000xf32> to vector<8x1000xf32>
    %5 = arith.addf %2, %4 : vector<8x1000xf32>
    %c0_5 = arith.constant 0 : index
    %c0_6 = arith.constant 0 : index
    %6 = vector.load %arg4[%c0_5, %c0_6] : memref<8x1000xf32, #tpu.memory_space<vmem>>, vector<8x1000xf32>
    tpu.vector_store %arg4[%c0_5, %c0_6], %5 {strides = array<i32>} : memref<8x1000xf32, #tpu.memory_space<vmem>>, vector<8x1000xf32>,
    return
  }
  func.func @transform_0(%arg0: i32) -> (i32, i32) {
    %c0_i32 = arith.constant 0 : i32
    %c0_i32_0 = arith.constant 0 : i32
    %c0_i32_1 = arith.constant 0 : i32
    return %c0_i32, %c0_i32_0 : i32, i32
  }
  func.func @transform_1(%arg0: i32) -> (i32, i32) {
    %c0_i32 = arith.constant 0 : i32
    %c0_i32_0 = arith.constant 0 : i32
    return %c0_i32, %arg0 : i32, i32
  }
  func.func @transform_2(%arg0: i32) -> (i32, i32) {
    %c0_i32 = arith.constant 0 : i32
    %c0_i32_0 = arith.constant 0 : i32
    return %c0_i32, %arg0 : i32, i32
  }
  func.func @transform_3(%arg0: i32) -> (i32, i32) {
    %c0_i32 = arith.constant 0 : i32
    %c0_i32_0 = arith.constant 0 : i32
    return %c0_i32, %arg0 : i32, i32
  }
}

</mosaic_0001>

<bundles_post_ra>
// kernel: forward.1
= control target key start
LH: loop header
LB: loop body
LE: loop exit
PB: predicated region body
PF: predicated region fallthrough
CT: control target
= control target key end

     0   :  { %8 = vsyncpa [#allocation3], 0  ;;  %s3501_s0 = inlined_call_operand.hbm [shape: f32[8,1000], index: 0, kind: input, shape index: {}]   ;;  %s3502_s1 = inlined_call_operand.hbm [shape: f32[1000,1000], index: 1, kind: input, shape index: {}]   ;;  %s3503_s2 = inlined_call_operand.hbm [shape: f32[1,1000], index: 2, kind: input, shape index: {}]   ;;  %s3504_s3 = inlined_call_operand.hbm [shape: f32[8,1000], index: 3, kind: output, shape index: {}]  }
   0x1   :  { %9 = vsyncpa [#allocation6], 0 }
   0x2   :  { %10 = vsyncpa [#allocation4], 0  ;;  %s3402_s12 = smov [#allocation5]   ;;  %s3308_s16 = scalar_lea.hbm %s3502_s1, 128000 }
   0x3   :  { %s26_s13 = sshll.u32 %s3402_s12, 4  ;;  %p3309_p0 = scmp.ne.s32.totalorder %s3502_s1, %s3308_s16  ;;  %s27_s13 = int_to_ptr.vmem [resolvable:$true] %s26_s13 }
   0x4   :  { %p3312_p1 = scmp.lt.u32.totalorder %s3308_s16, %s3502_s1 }
   0x6   :  { %p3314_p2 = pnand %p3312_p1, %p3309_p0 }
   0x8   :  { %3317 = shalt.err (!%p3314_p2)
}
   0x9   :  { %s3318_s21 = scalar_lea.vmem %s27_s13, 128000  ;;  %p3323_p4 = scmp.lt.s32.totalorder %s27_s13, %s27_s13 }
   0xa   :  { %p3319_p3 = scmp.ne.s32.totalorder %s27_s13, %s3318_s21  ;;  %p3324_p5 = scmp.lt.s32.totalorder %s3318_s21, %s3318_s21 }
   0xc   :  { %p3325_p6 = por %p3324_p5, %p3323_p4 }
   0xe   :  { %p3326_p7 = pnand %p3325_p6, %p3319_p3 }
  0x10   :  { %3329 = shalt.err (!%p3326_p7)
}
  0x11   :  { %s3403_s22 = smov 1024   ;;  %s3404_s23 = smov 64  }
  0x12   :  { %32 = dma.hbm_to_vmem [thread:$0]  %s3502_s1, 128000, %s27_s13, [#allocation6], %s3403_s22, %s3403_s22, %s3404_s23  }
  0x13   :  { %s3405_s26 = smov [#allocation2]   ;;  %s3406_s28 = smov [#allocation7]  }
  0x14   :  { %s17_s27 = sshll.u32 %s3405_s26, 4  ;;  %s39_s29 = sshll.u32 %s3406_s28, 4  ;;  %s18_s27 = int_to_ptr.vmem [resolvable:$true] %s17_s27  ;;  %s40_s29 = int_to_ptr.vmem [resolvable:$true] %s39_s29 }
  0x15   :  { %s3330_s5 = scalar_lea.hbm %s3501_s0, 1024 }
  0x16   :  { %p3331_p8 = scmp.ne.s32.totalorder %s3501_s0, %s3330_s5  ;;  %p3334_p9 = scmp.lt.u32.totalorder %s3330_s5, %s3501_s0 }
  0x18   :  { %p3336_p10 = pnand %p3334_p9, %p3331_p8 }
  0x1a   :  { %3339 = shalt.err (!%p3336_p10)
}
  0x1b   :  { %s3340_s1 = scalar_lea.vmem %s18_s27, 1024  ;;  %p3345_p12 = scmp.lt.s32.totalorder %s18_s27, %s18_s27 }
  0x1c   :  { %p3341_p11 = scmp.ne.s32.totalorder %s18_s27, %s3340_s1  ;;  %p3346_p13 = scmp.lt.s32.totalorder %s3340_s1, %s3340_s1 }
  0x1e   :  { %p3347_p0 = por %p3346_p13, %p3345_p12 }
  0x20   :  { %p3348_p1 = pnand %p3347_p0, %p3341_p11 }
  0x22   :  { %3351 = shalt.err (!%p3348_p1)
}
  0x23   :  { %20 = dma.hbm_to_vmem [thread:$0]  %s3501_s0, 1024, %s18_s27, [#allocation3]  }
  0x24   :  { %s3352_s14 = scalar_lea.hbm %s3503_s2, 128 }
  0x25   :  { %p3353_p2 = scmp.ne.s32.totalorder %s3503_s2, %s3352_s14  ;;  %p3356_p3 = scmp.lt.u32.totalorder %s3352_s14, %s3503_s2 }
  0x27   :  { %p3358_p4 = pnand %p3356_p3, %p3353_p2 }
  0x29   :  { %3361 = shalt.err (!%p3358_p4)
}
  0x2a   :  { %s3362_s19 = scalar_lea.vmem %s40_s29, 128  ;;  %p3367_p6 = scmp.lt.s32.totalorder %s40_s29, %s40_s29 }
  0x2b   :  { %p3363_p5 = scmp.ne.s32.totalorder %s40_s29, %s3362_s19  ;;  %p3368_p7 = scmp.lt.s32.totalorder %s3362_s19, %s3362_s19 }
  0x2d   :  { %p3369_p8 = por %p3368_p7, %p3367_p6 }
  0x2f   :  { %p3370_p9 = pnand %p3369_p8, %p3363_p5 }
  0x31   :  { %3373 = shalt.err (!%p3370_p9)
}
  0x32   :  { %42 = dma.hbm_to_vmem [thread:$0]  %s3503_s2, 128, %s40_s29, [#allocation6]  }
  0x33   :  { %3396 = dma.done.wait [#allocation3], 1024  }
  0x34   :  { %3397 = vsyncadd [#allocation3], 4294966272 }
  0x35   :  { %3398 = dma.done.wait [#allocation6], 128128  }
  0x36   :  { %3399 = vsyncadd [#allocation6], 4294839168  ;;  %v61_v0 = vld [vmem:[#allocation5 + $0x8] sm:$0xff]  ;;  %v63_v2 = vld [vmem:[#allocation5 + $0x18] sm:$0xff]  ;;  %vm1102_vm0 = vcmask 850944   ;;  %s3407_s2 = smov [#allocation8]  }
  0x37   :  { %v69_v1 = vld [vmem:[#allocation5 + $0x48] sm:$0xff]  ;;  %v71_v4 = vld [vmem:[#allocation5 + $0x58] sm:$0xff]  ;;  %v60_v5 = vld [vmem:[#allocation5] sm:$0xff]  ;;  %s2256_s21 = sshll.u32 %s3407_s2, 4  ;;  %s2257_s21 = int_to_ptr.vmem [resolvable:$true] %s2256_s21 }
  0x38   :  { %v2270_v3 = vpack.c.bf16 %v69_v1, %v61_v0  ;;  %v68_v6 = vld [vmem:[#allocation5 + $0x40] sm:$0xff]  ;;  %v2518_v7 = vpack.c.bf16 %v71_v4, %v63_v2  ;;  %v62_v9 = vld [vmem:[#allocation5 + $0x10] sm:$0xff]  ;;  %v77_v11 = vld [vmem:[#allocation5 + $0x88] sm:$0xff]  ;;  %s3374_s22 = scalar_lea.vmem %s2257_s21, 1024  ;;  %p3379_p11 = scmp.lt.s32.totalorder %s2257_s21, %s2257_s21 }
  0x39   :  { %v2272_v8 = vpack.c.bf16 %v68_v6, %v60_v5  ;;  %v70_v10 = vld [vmem:[#allocation5 + $0x50] sm:$0xff]  ;;  %v85_v13 = vld [vmem:[#allocation5 + $0xc8] sm:$0xff]  ;;  %v79_v14 = vld [vmem:[#allocation5 + $0x98] sm:$0xff]  ;;  %p3375_p10 = scmp.ne.s32.totalorder %s2257_s21, %s3374_s22  ;;  %p3380_p12 = scmp.lt.s32.totalorder %s3374_s22, %s3374_s22 }
  0x3a   :  { %2271 = vmatprep.subr.bf16.mxu0 %v2270_v3  ;;  %v2520_v12 = vpack.c.bf16 %v70_v10, %v62_v9  ;;  %v87_v15 = vld [vmem:[#allocation5 + $0xd8] sm:$0xff]  ;;  %2519 = vmatprep.subr.bf16.mxu1 %v2518_v7  ;;  %v2274_v16 = vpack.c.bf16 %v85_v13, %v77_v11  ;;  %v76_v18 = vld [vmem:[#allocation5 + $0x80] sm:$0xff]  ;;  %v78_v20 = vld [vmem:[#allocation5 + $0x90] sm:$0xff] }
  0x3b   :  { %2273 = vmatpush1.bf16.msra.mxu0 %v2272_v8  ;;  %v2522_v17 = vpack.c.bf16 %v87_v15, %v79_v14  ;;  %v84_v19 = vld [vmem:[#allocation5 + $0xc0] sm:$0xff]  ;;  %v86_v22 = vld [vmem:[#allocation5 + $0xd0] sm:$0xff]  ;;  %v93_v23 = vld [vmem:[#allocation5 + $0x108] sm:$0xff]  ;;  %p3381_p13 = por %p3380_p12, %p3379_p11 }
  0x3c   :  { %2521 = vmatpush1.bf16.msra.mxu1 %v2520_v12  ;;  %v2276_v21 = vpack.c.bf16 %v84_v19, %v76_v18  ;;  %v101_v24 = vld [vmem:[#allocation5 + $0x148] sm:$0xff]  ;;  %2275 = vmatprep.subr.bf16.mxu0 %v2274_v16  ;;  %v2524_v25 = vpack.c.bf16 %v86_v22, %v78_v20  ;;  %v95_v27 = vld [vmem:[#allocation5 + $0x118] sm:$0xff]  ;;  %v92_v29 = vld [vmem:[#allocation5 + $0x100] sm:$0xff] }
  0x3d   :  { %2523 = vmatprep.subr.bf16.mxu1 %v2522_v17  ;;  %v2278_v26 = vpack.c.bf16 %v101_v24, %v93_v23  ;;  %v103_v28 = vld [vmem:[#allocation5 + $0x158] sm:$0xff]  ;;  %v100_v31 = vld [vmem:[#allocation5 + $0x140] sm:$0xff]  ;;  %v94_v32 = vld [vmem:[#allocation5 + $0x110] sm:$0xff]  ;;  %p3382_p0 = pnand %p3381_p13, %p3375_p10 }
  0x3e   :  { %v2526_v30 = vpack.c.bf16 %v103_v28, %v95_v27  ;;  %v102_v33 = vld [vmem:[#allocation5 + $0x150] sm:$0xff]  ;;  %v2280_v34 = vpack.c.bf16 %v100_v31, %v92_v29  ;;  %v109_v35 = vld [vmem:[#allocation5 + $0x188] sm:$0xff]  ;;  %v111_v37 = vld [vmem:[#allocation5 + $0x198] sm:$0xff] }
  0x3f   :  { %2277 = vmatpush1.bf16.msra.mxu0 %v2276_v21  ;;  %v117_v36 = vld [vmem:[#allocation5 + $0x1c8] sm:$0xff]  ;;  %v2528_v38 = vpack.c.bf16 %v102_v33, %v94_v32  ;;  %v119_v40 = vld [vmem:[#allocation5 + $0x1d8] sm:$0xff]  ;;  %v108_v41 = vld [vmem:[#allocation5 + $0x180] sm:$0xff] }
  0x40   :  { %2525 = vmatpush1.bf16.msra.mxu1 %v2524_v25  ;;  %2279 = vmatprep.subr.bf16.mxu0 %v2278_v26  ;;  %v2282_v39 = vpack.c.bf16 %v117_v36, %v109_v35  ;;  %v116_v42 = vld [vmem:[#allocation5 + $0x1c0] sm:$0xff]  ;;  %v2530_v43 = vpack.c.bf16 %v119_v40, %v111_v37  ;;  %v110_v44 = vld [vmem:[#allocation5 + $0x190] sm:$0xff]  ;;  %v125_v46 = vld [vmem:[#allocation5 + $0x208] sm:$0xff] }
  0x41   :  { %2527 = vmatprep.subr.bf16.mxu1 %v2526_v30  ;;  %v118_v45 = vld [vmem:[#allocation5 + $0x1d0] sm:$0xff]  ;;  %v133_v47 = vld [vmem:[#allocation5 + $0x248] sm:$0xff]  ;;  %v127_v48 = vld [vmem:[#allocation5 + $0x218] sm:$0xff]  ;;  %v2284_v50 = vpack.c.bf16 %v116_v42, %v108_v41 }
  0x42   :  { %v135_v49 = vld [vmem:[#allocation5 + $0x258] sm:$0xff]  ;;  %v2532_v51 = vpack.c.bf16 %v118_v45, %v110_v44  ;;  %v2286_v52 = vpack.c.bf16 %v133_v47, %v125_v46  ;;  %v124_v53 = vld [vmem:[#allocation5 + $0x200] sm:$0xff]  ;;  %v126_v55 = vld [vmem:[#allocation5 + $0x210] sm:$0xff] }
  0x43   :  { %2281 = vmatpush1.bf16.msra.mxu0 %v2280_v34  ;;  %v132_v54 = vld [vmem:[#allocation5 + $0x240] sm:$0xff]  ;;  %v2534_v56 = vpack.c.bf16 %v135_v49, %v127_v48  ;;  %v134_v57 = vld [vmem:[#allocation5 + $0x250] sm:$0xff]  ;;  %v141_v58 = vld [vmem:[#allocation5 + $0x288] sm:$0xff] }
  0x44   :  { %2529 = vmatpush1.bf16.msra.mxu1 %v2528_v38  ;;  %2283 = vmatprep.subr.bf16.mxu0 %v2282_v39  ;;  %v149_v59 = vld [vmem:[#allocation5 + $0x2c8] sm:$0xff]  ;;  %v143_v60 = vld [vmem:[#allocation5 + $0x298] sm:$0xff]  ;;  %v2288_v62 = vpack.c.bf16 %v132_v54, %v124_v53  ;;  %v2536_v63 = vpack.c.bf16 %v134_v57, %v126_v55  ;;  %v140_v1 = vld [vmem:[#allocation5 + $0x280] sm:$0xff] }
  0x45   :  { %2531 = vmatprep.subr.bf16.mxu1 %v2530_v43  ;;  %v151_v61 = vld [vmem:[#allocation5 + $0x2d8] sm:$0xff]  ;;  %v2290_v0 = vpack.c.bf16 %v149_v59, %v141_v58  ;;  %v148_v2 = vld [vmem:[#allocation5 + $0x2c0] sm:$0xff]  ;;  %v142_v3 = vld [vmem:[#allocation5 + $0x290] sm:$0xff] }
  0x46   :  { %v2538_v4 = vpack.c.bf16 %v151_v61, %v143_v60  ;;  %v150_v5 = vld [vmem:[#allocation5 + $0x2d0] sm:$0xff]  ;;  %v157_v6 = vld [vmem:[#allocation5 + $0x308] sm:$0xff]  ;;  %v159_v8 = vld [vmem:[#allocation5 + $0x318] sm:$0xff]  ;;  %v2292_v10 = vpack.c.bf16 %v148_v2, %v140_v1 }
  0x47   :  { %2285 = vmatpush1.bf16.msra.mxu0 %v2284_v50  ;;  %v165_v7 = vld [vmem:[#allocation5 + $0x348] sm:$0xff]  ;;  %v167_v9 = vld [vmem:[#allocation5 + $0x358] sm:$0xff]  ;;  %v2540_v11 = vpack.c.bf16 %v150_v5, %v142_v3  ;;  %v156_v13 = vld [vmem:[#allocation5 + $0x300] sm:$0xff] }
  0x48   :  { %2533 = vmatpush1.bf16.msra.mxu1 %v2532_v51  ;;  %2287 = vmatprep.subr.bf16.mxu0 %v2286_v52  ;;  %v2294_v12 = vpack.c.bf16 %v165_v7, %v157_v6  ;;  %v164_v14 = vld [vmem:[#allocation5 + $0x340] sm:$0xff]  ;;  %v158_v15 = vld [vmem:[#allocation5 + $0x310] sm:$0xff]  ;;  %v2542_v16 = vpack.c.bf16 %v167_v9, %v159_v8  ;;  %v173_v18 = vld [vmem:[#allocation5 + $0x388] sm:$0xff] }
  0x49   :  { %2535 = vmatprep.subr.bf16.mxu1 %v2534_v56  ;;  %v166_v17 = vld [vmem:[#allocation5 + $0x350] sm:$0xff]  ;;  %v181_v19 = vld [vmem:[#allocation5 + $0x3c8] sm:$0xff]  ;;  %v175_v20 = vld [vmem:[#allocation5 + $0x398] sm:$0xff]  ;;  %v2296_v22 = vpack.c.bf16 %v164_v14, %v156_v13 }
  0x4a   :  { %v183_v21 = vld [vmem:[#allocation5 + $0x3d8] sm:$0xff]  ;;  %v2544_v23 = vpack.c.bf16 %v166_v17, %v158_v15  ;;  %v2298_v24 = vpack.c.bf16 %v181_v19, %v173_v18  ;;  %v172_v25 = vld [vmem:[#allocation5 + $0x380] sm:$0xff]  ;;  %v174_v27 = vld [vmem:[#allocation5 + $0x390] sm:$0xff] }
  0x4b   :  { %2289 = vmatpush1.bf16.msra.mxu0 %v2288_v62  ;;  %v180_v26 = vld [vmem:[#allocation5 + $0x3c0] sm:$0xff]  ;;  %v2546_v28 = vpack.c.bf16 %v183_v21, %v175_v20  ;;  %v182_v29 = vld [vmem:[#allocation5 + $0x3d0] sm:$0xff]  ;;  %v189_v30 = vld [vmem:[#allocation5 + $0x408] sm:$0xff] }
  0x4c   :  { %2537 = vmatpush1.bf16.msra.mxu1 %v2536_v63  ;;  %2291 = vmatprep.subr.bf16.mxu0 %v2290_v0  ;;  %v197_v31 = vld [vmem:[#allocation5 + $0x448] sm:$0xff]  ;;  %v191_v32 = vld [vmem:[#allocation5 + $0x418] sm:$0xff]  ;;  %v2300_v34 = vpack.c.bf16 %v180_v26, %v172_v25  ;;  %v2548_v35 = vpack.c.bf16 %v182_v29, %v174_v27  ;;  %v188_v37 = vld [vmem:[#allocation5 + $0x400] sm:$0xff] }
  0x4d   :  { %2539 = vmatprep.subr.bf16.mxu1 %v2538_v4  ;;  %v199_v33 = vld [vmem:[#allocation5 + $0x458] sm:$0xff]  ;;  %v2302_v36 = vpack.c.bf16 %v197_v31, %v189_v30  ;;  %v196_v38 = vld [vmem:[#allocation5 + $0x440] sm:$0xff]  ;;  %v190_v39 = vld [vmem:[#allocation5 + $0x410] sm:$0xff] }
  0x4e   :  { %v2550_v40 = vpack.c.bf16 %v199_v33, %v191_v32  ;;  %v198_v41 = vld [vmem:[#allocation5 + $0x450] sm:$0xff]  ;;  %v205_v42 = vld [vmem:[#allocation5 + $0x488] sm:$0xff]  ;;  %v207_v44 = vld [vmem:[#allocation5 + $0x498] sm:$0xff]  ;;  %v2304_v46 = vpack.c.bf16 %v196_v38, %v188_v37 }
  0x4f   :  { %2293 = vmatpush1.bf16.msra.mxu0 %v2292_v10  ;;  %v213_v43 = vld [vmem:[#allocation5 + $0x4c8] sm:$0xff]  ;;  %v215_v45 = vld [vmem:[#allocation5 + $0x4d8] sm:$0xff]  ;;  %v2552_v47 = vpack.c.bf16 %v198_v41, %v190_v39  ;;  %v204_v49 = vld [vmem:[#allocation5 + $0x480] sm:$0xff] }
  0x50   :  { %2541 = vmatpush1.bf16.msra.mxu1 %v2540_v11  ;;  %2295 = vmatprep.subr.bf16.mxu0 %v2294_v12  ;;  %v2306_v48 = vpack.c.bf16 %v213_v43, %v205_v42  ;;  %v212_v50 = vld [vmem:[#allocation5 + $0x4c0] sm:$0xff]  ;;  %v206_v51 = vld [vmem:[#allocation5 + $0x490] sm:$0xff]  ;;  %v2554_v52 = vpack.c.bf16 %v215_v45, %v207_v44  ;;  %v221_v54 = vld [vmem:[#allocation5 + $0x508] sm:$0xff] }
  0x51   :  { %2543 = vmatprep.subr.bf16.mxu1 %v2542_v16  ;;  %v214_v53 = vld [vmem:[#allocation5 + $0x4d0] sm:$0xff]  ;;  %v229_v55 = vld [vmem:[#allocation5 + $0x548] sm:$0xff]  ;;  %v223_v56 = vld [vmem:[#allocation5 + $0x518] sm:$0xff]  ;;  %v2308_v58 = vpack.c.bf16 %v212_v50, %v204_v49 }
  0x52   :  { %v231_v57 = vld [vmem:[#allocation5 + $0x558] sm:$0xff]  ;;  %v2556_v59 = vpack.c.bf16 %v214_v53, %v206_v51  ;;  %v2310_v60 = vpack.c.bf16 %v229_v55, %v221_v54  ;;  %v220_v61 = vld [vmem:[#allocation5 + $0x500] sm:$0xff]  ;;  %v222_v63 = vld [vmem:[#allocation5 + $0x510] sm:$0xff] }
  0x53   :  { %2297 = vmatpush1.bf16.msra.mxu0 %v2296_v22  ;;  %v228_v62 = vld [vmem:[#allocation5 + $0x540] sm:$0xff]  ;;  %v2558_v0 = vpack.c.bf16 %v231_v57, %v223_v56  ;;  %v230_v1 = vld [vmem:[#allocation5 + $0x550] sm:$0xff]  ;;  %v237_v2 = vld [vmem:[#allocation5 + $0x588] sm:$0xff] }
  0x54   :  { %2545 = vmatpush1.bf16.msra.mxu1 %v2544_v23  ;;  %2299 = vmatprep.subr.bf16.mxu0 %v2298_v24  ;;  %v245_v3 = vld [vmem:[#allocation5 + $0x5c8] sm:$0xff]  ;;  %v239_v4 = vld [vmem:[#allocation5 + $0x598] sm:$0xff]  ;;  %v2312_v6 = vpack.c.bf16 %v228_v62, %v220_v61  ;;  %v236_v7 = vld [vmem:[#allocation5 + $0x580] sm:$0xff]  ;;  %v2560_v8 = vpack.c.bf16 %v230_v1, %v222_v63 }
  0x55   :  { %2547 = vmatprep.subr.bf16.mxu1 %v2546_v28  ;;  %v247_v5 = vld [vmem:[#allocation5 + $0x5d8] sm:$0xff]  ;;  %v2314_v9 = vpack.c.bf16 %v245_v3, %v237_v2  ;;  %v244_v10 = vld [vmem:[#allocation5 + $0x5c0] sm:$0xff]  ;;  %v238_v11 = vld [vmem:[#allocation5 + $0x590] sm:$0xff] }
  0x56   :  { %v246_v12 = vld [vmem:[#allocation5 + $0x5d0] sm:$0xff]  ;;  %v2562_v13 = vpack.c.bf16 %v247_v5, %v239_v4  ;;  %v253_v14 = vld [vmem:[#allocation5 + $0x608] sm:$0xff]  ;;  %v255_v17 = vld [vmem:[#allocation5 + $0x618] sm:$0xff]  ;;  %v2316_v19 = vpack.c.bf16 %v244_v10, %v236_v7 }
  0x57   :  { %2301 = vmatpush1.bf16.msra.mxu0 %v2300_v34  ;;  %v261_v15 = vld [vmem:[#allocation5 + $0x648] sm:$0xff]  ;;  %v263_v18 = vld [vmem:[#allocation5 + $0x658] sm:$0xff]  ;;  %v2564_v20 = vpack.c.bf16 %v246_v12, %v238_v11  ;;  %v252_v22 = vld [vmem:[#allocation5 + $0x600] sm:$0xff] }
  0x58   :  { %2549 = vmatpush1.bf16.msra.mxu1 %v2548_v35  ;;  %2303 = vmatprep.subr.bf16.mxu0 %v2302_v36  ;;  %v53_v16 = vld [vmem:[#allocation2 + $0x8] sm:$0xff]  ;;  %v2318_v21 = vpack.c.bf16 %v261_v15, %v253_v14  ;;  %v260_v23 = vld [vmem:[#allocation5 + $0x640] sm:$0xff]  ;;  %v254_v24 = vld [vmem:[#allocation5 + $0x610] sm:$0xff]  ;;  %v2566_v25 = vpack.c.bf16 %v263_v18, %v255_v17 }
  0x59   :  { %2551 = vmatprep.subr.bf16.mxu1 %v2550_v40  ;;  %1170 = vmatprep.mubr.f32.mxu0 %v53_v16  ;;  %v262_v26 = vld [vmem:[#allocation5 + $0x650] sm:$0xff]  ;;  %v269_v27 = vld [vmem:[#allocation5 + $0x688] sm:$0xff]  ;;  %v271_v29 = vld [vmem:[#allocation5 + $0x698] sm:$0xff]  ;;  %v2320_v31 = vpack.c.bf16 %v260_v23, %v252_v22 }
  0x5a   :  { %1454 = vmatprep.mubr.f32.mxu1 %v53_v16  ;;  %v277_v28 = vld [vmem:[#allocation5 + $0x6c8] sm:$0xff]  ;;  %v279_v30 = vld [vmem:[#allocation5 + $0x6d8] sm:$0xff]  ;;  %v2568_v32 = vpack.c.bf16 %v262_v26, %v254_v24  ;;  %v268_v34 = vld [vmem:[#allocation5 + $0x680] sm:$0xff] }
  0x5b   :  { %2305 = vmatpush1.bf16.msra.mxu0 %v2304_v46  ;;  %v2322_v33 = vpack.c.bf16 %v277_v28, %v269_v27  ;;  %v276_v35 = vld [vmem:[#allocation5 + $0x6c0] sm:$0xff]  ;;  %v270_v36 = vld [vmem:[#allocation5 + $0x690] sm:$0xff]  ;;  %v2570_v37 = vpack.c.bf16 %v279_v30, %v271_v29  ;;  %v285_v39 = vld [vmem:[#allocation5 + $0x708] sm:$0xff] }
  0x5c   :  { %2553 = vmatpush1.bf16.msra.mxu1 %v2552_v47  ;;  %2307 = vmatprep.subr.bf16.mxu0 %v2306_v48  ;;  %v278_v38 = vld [vmem:[#allocation5 + $0x6d0] sm:$0xff]  ;;  %v293_v40 = vld [vmem:[#allocation5 + $0x748] sm:$0xff]  ;;  %v287_v41 = vld [vmem:[#allocation5 + $0x718] sm:$0xff]  ;;  %v2324_v43 = vpack.c.bf16 %v276_v35, %v268_v34 }
  0x5d   :  { %2555 = vmatprep.subr.bf16.mxu1 %v2554_v52  ;;  %v295_v42 = vld [vmem:[#allocation5 + $0x758] sm:$0xff]  ;;  %v2572_v44 = vpack.c.bf16 %v278_v38, %v270_v36  ;;  %v2326_v45 = vpack.c.bf16 %v293_v40, %v285_v39  ;;  %v284_v46 = vld [vmem:[#allocation5 + $0x700] sm:$0xff]  ;;  %v286_v48 = vld [vmem:[#allocation5 + $0x710] sm:$0xff] }
  0x5e   :  { %v292_v47 = vld [vmem:[#allocation5 + $0x740] sm:$0xff]  ;;  %v2574_v49 = vpack.c.bf16 %v295_v42, %v287_v41  ;;  %v294_v50 = vld [vmem:[#allocation5 + $0x750] sm:$0xff]  ;;  %v301_v51 = vld [vmem:[#allocation5 + $0x788] sm:$0xff] }
  0x5f   :  { %2309 = vmatpush1.bf16.msra.mxu0 %v2308_v58  ;;  %v309_v52 = vld [vmem:[#allocation5 + $0x7c8] sm:$0xff]  ;;  %v303_v53 = vld [vmem:[#allocation5 + $0x798] sm:$0xff]  ;;  %v2328_v55 = vpack.c.bf16 %v292_v47, %v284_v46  ;;  %v2576_v56 = vpack.c.bf16 %v294_v50, %v286_v48  ;;  %v300_v58 = vld [vmem:[#allocation5 + $0x780] sm:$0xff] }
  0x60   :  { %2557 = vmatpush1.bf16.msra.mxu1 %v2556_v59  ;;  %2311 = vmatprep.subr.bf16.mxu0 %v2310_v60  ;;  %v311_v54 = vld [vmem:[#allocation5 + $0x7d8] sm:$0xff]  ;;  %v2330_v57 = vpack.c.bf16 %v309_v52, %v301_v51  ;;  %v308_v59 = vld [vmem:[#allocation5 + $0x7c0] sm:$0xff]  ;;  %v302_v60 = vld [vmem:[#allocation5 + $0x790] sm:$0xff] }
  0x61   :  { %2559 = vmatprep.subr.bf16.mxu1 %v2558_v0  ;;  %v2578_v61 = vpack.c.bf16 %v311_v54, %v303_v53  ;;  %v310_v62 = vld [vmem:[#allocation5 + $0x7d0] sm:$0xff]  ;;  %v317_v63 = vld [vmem:[#allocation5 + $0x808] sm:$0xff]  ;;  %v319_v1 = vld [vmem:[#allocation5 + $0x818] sm:$0xff]  ;;  %v2332_v3 = vpack.c.bf16 %v308_v59, %v300_v58 }
  0x62   :  { %v325_v0 = vld [vmem:[#allocation5 + $0x848] sm:$0xff]  ;;  %v327_v2 = vld [vmem:[#allocation5 + $0x858] sm:$0xff]  ;;  %v2580_v4 = vpack.c.bf16 %v310_v62, %v302_v60  ;;  %v324_v7 = vld [vmem:[#allocation5 + $0x840] sm:$0xff] }
  0x63   :  { %2313 = vmatpush1.bf16.msra.mxu0 %v2312_v6  ;;  %v2334_v5 = vpack.c.bf16 %v325_v0, %v317_v63  ;;  %v316_v6 = vld [vmem:[#allocation5 + $0x800] sm:$0xff]  ;;  %v326_v10 = vld [vmem:[#allocation5 + $0x850] sm:$0xff]  ;;  %v333_v11 = vld [vmem:[#allocation5 + $0x888] sm:$0xff] }
  0x64   :  { %2561 = vmatpush1.bf16.msra.mxu1 %v2560_v8  ;;  %2315 = vmatprep.subr.bf16.mxu0 %v2314_v9  ;;  %v318_v8 = vld [vmem:[#allocation5 + $0x810] sm:$0xff]  ;;  %v2582_v9 = vpack.c.bf16 %v327_v2, %v319_v1  ;;  %v341_v12 = vld [vmem:[#allocation5 + $0x8c8] sm:$0xff]  ;;  %v343_v14 = vld [vmem:[#allocation5 + $0x8d8] sm:$0xff]  ;;  %v2336_v16 = vpack.c.bf16 %v324_v7, %v316_v6 }
  0x65   :  { %2563 = vmatprep.subr.bf16.mxu1 %v2562_v13  ;;  %v335_v13 = vld [vmem:[#allocation5 + $0x898] sm:$0xff]  ;;  %v52_v15 = vld [vmem:[#allocation2] sm:$0xff]  ;;  %v2584_v17 = vpack.c.bf16 %v326_v10, %v318_v8  ;;  %v2338_v18 = vpack.c.bf16 %v341_v12, %v333_v11  ;;  %v342_v23 = vld [vmem:[#allocation5 + $0x8d0] sm:$0xff] }
  0x66   :  { %v2586_v22 = vpack.c.bf16 %v343_v14, %v335_v13  ;;  %v349_v24 = vld [vmem:[#allocation5 + $0x908] sm:$0xff]  ;;  %v351_v26 = vld [vmem:[#allocation5 + $0x918] sm:$0xff]  ;;  %v358_v35 = vld [vmem:[#allocation5 + $0x950] sm:$0xff] }
  0x67   :  { %2317 = vmatpush1.bf16.msra.mxu0 %v2316_v19  ;;  %v332_v19 = vld [vmem:[#allocation5 + $0x880] sm:$0xff]  ;;  %v359_v27 = vld [vmem:[#allocation5 + $0x958] sm:$0xff]  ;;  %v365_v36 = vld [vmem:[#allocation5 + $0x988] sm:$0xff] }
  0x68   :  { %2565 = vmatpush1.bf16.msra.mxu1 %v2564_v20  ;;  %2319 = vmatprep.subr.bf16.mxu0 %v2318_v21  ;;  %v340_v20 = vld [vmem:[#allocation5 + $0x8c0] sm:$0xff]  ;;  %v334_v21 = vld [vmem:[#allocation5 + $0x890] sm:$0xff]  ;;  %v2590_v34 = vpack.c.bf16 %v359_v27, %v351_v26  ;;  %v367_v38 = vld [vmem:[#allocation5 + $0x998] sm:$0xff] }
  0x69   :  { %2567 = vmatprep.subr.bf16.mxu1 %v2566_v25  ;;  %v357_v25 = vld [vmem:[#allocation5 + $0x948] sm:$0xff]  ;;  %v2340_v28 = vpack.c.bf16 %v340_v20, %v332_v19  ;;  %v2588_v29 = vpack.c.bf16 %v342_v23, %v334_v21  ;;  %v375_v39 = vld [vmem:[#allocation5 + $0x9d8] sm:$0xff]  ;;  %v374_v47 = vld [vmem:[#allocation5 + $0x9d0] sm:$0xff] }
  0x6a   :  { %v2342_v30 = vpack.c.bf16 %v357_v25, %v349_v24  ;;  %v2594_v46 = vpack.c.bf16 %v375_v39, %v367_v38  ;;  %v381_v48 = vld [vmem:[#allocation5 + $0xa08] sm:$0xff]  ;;  %v383_v50 = vld [vmem:[#allocation5 + $0xa18] sm:$0xff]  ;;  %v390_v59 = vld [vmem:[#allocation5 + $0xa50] sm:$0xff] }
  0x6b   :  { %2321 = vmatpush1.bf16.msra.mxu0 %v2320_v31  ;;  %v348_v31 = vld [vmem:[#allocation5 + $0x900] sm:$0xff]  ;;  %v391_v51 = vld [vmem:[#allocation5 + $0xa58] sm:$0xff]  ;;  %v397_v60 = vld [vmem:[#allocation5 + $0xa88] sm:$0xff] }
  0x6c   :  { %2569 = vmatpush1.bf16.msra.mxu1 %v2568_v32  ;;  %2323 = vmatprep.subr.bf16.mxu0 %v2322_v33  ;;  %v356_v32 = vld [vmem:[#allocation5 + $0x940] sm:$0xff]  ;;  %v350_v33 = vld [vmem:[#allocation5 + $0x910] sm:$0xff]  ;;  %v2598_v58 = vpack.c.bf16 %v391_v51, %v383_v50  ;;  %v399_v62 = vld [vmem:[#allocation5 + $0xa98] sm:$0xff] }
  0x6d   :  { %2571 = vmatprep.subr.bf16.mxu1 %v2570_v37  ;;  %v373_v37 = vld [vmem:[#allocation5 + $0x9c8] sm:$0xff]  ;;  %v2344_v40 = vpack.c.bf16 %v356_v32, %v348_v31  ;;  %v2592_v41 = vpack.c.bf16 %v358_v35, %v350_v33  ;;  %v407_v63 = vld [vmem:[#allocation5 + $0xad8] sm:$0xff]  ;;  %v406_v7 = vld [vmem:[#allocation5 + $0xad0] sm:$0xff] }
  0x6e   :  { %v2346_v42 = vpack.c.bf16 %v373_v37, %v365_v36  ;;  %v2602_v6 = vpack.c.bf16 %v407_v63, %v399_v62  ;;  %v413_v8 = vld [vmem:[#allocation5 + $0xb08] sm:$0xff]  ;;  %v415_v10 = vld [vmem:[#allocation5 + $0xb18] sm:$0xff]  ;;  %v412_v13 = vld [vmem:[#allocation5 + $0xb00] sm:$0xff] }
  0x6f   :  { %2325 = vmatpush1.bf16.msra.mxu0 %v2324_v43  ;;  %v364_v43 = vld [vmem:[#allocation5 + $0x980] sm:$0xff]  ;;  %v423_v11 = vld [vmem:[#allocation5 + $0xb58] sm:$0xff]  ;;  %v429_v20 = vld [vmem:[#allocation5 + $0xb88] sm:$0xff] }
  0x70   :  { %2573 = vmatpush1.bf16.msra.mxu1 %v2572_v44  ;;  %2327 = vmatprep.subr.bf16.mxu0 %v2326_v45  ;;  %v372_v44 = vld [vmem:[#allocation5 + $0x9c0] sm:$0xff]  ;;  %v366_v45 = vld [vmem:[#allocation5 + $0x990] sm:$0xff]  ;;  %v2606_v19 = vpack.c.bf16 %v423_v11, %v415_v10  ;;  %v437_v21 = vld [vmem:[#allocation5 + $0xbc8] sm:$0xff] }
  0x71   :  { %2575 = vmatprep.subr.bf16.mxu1 %v2574_v49  ;;  %v389_v49 = vld [vmem:[#allocation5 + $0xa48] sm:$0xff]  ;;  %v2348_v52 = vpack.c.bf16 %v372_v44, %v364_v43  ;;  %v2596_v53 = vpack.c.bf16 %v374_v47, %v366_v45  ;;  %v431_v23 = vld [vmem:[#allocation5 + $0xb98] sm:$0xff]  ;;  %v2362_v27 = vpack.c.bf16 %v437_v21, %v429_v20  ;;  %v438_v32 = vld [vmem:[#allocation5 + $0xbd0] sm:$0xff] }
  0x72   :  { %v2350_v54 = vpack.c.bf16 %v389_v49, %v381_v48  ;;  %v439_v24 = vld [vmem:[#allocation5 + $0xbd8] sm:$0xff]  ;;  %v445_v33 = vld [vmem:[#allocation5 + $0xc08] sm:$0xff]  ;;  %v454_v44 = vld [vmem:[#allocation5 + $0xc50] sm:$0xff] }
  0x73   :  { %2329 = vmatpush1.bf16.msra.mxu0 %v2328_v55  ;;  %v380_v55 = vld [vmem:[#allocation5 + $0xa00] sm:$0xff]  ;;  %v2610_v31 = vpack.c.bf16 %v439_v24, %v431_v23  ;;  %v447_v35 = vld [vmem:[#allocation5 + $0xc18] sm:$0xff]  ;;  %v461_v45 = vld [vmem:[#allocation5 + $0xc88] sm:$0xff] }
  0x74   :  { %2577 = vmatpush1.bf16.msra.mxu1 %v2576_v56  ;;  %2331 = vmatprep.subr.bf16.mxu0 %v2330_v57  ;;  %v388_v56 = vld [vmem:[#allocation5 + $0xa40] sm:$0xff]  ;;  %v382_v57 = vld [vmem:[#allocation5 + $0xa10] sm:$0xff]  ;;  %v455_v36 = vld [vmem:[#allocation5 + $0xc58] sm:$0xff] }
  0x75   :  { %2579 = vmatprep.subr.bf16.mxu1 %v2578_v61  ;;  %v405_v61 = vld [vmem:[#allocation5 + $0xac8] sm:$0xff]  ;;  %v2352_v0 = vpack.c.bf16 %v388_v56, %v380_v55  ;;  %v2600_v1 = vpack.c.bf16 %v390_v59, %v382_v57  ;;  %v2614_v43 = vpack.c.bf16 %v455_v36, %v447_v35  ;;  %v463_v47 = vld [vmem:[#allocation5 + $0xc98] sm:$0xff]  ;;  %v470_v56 = vld [vmem:[#allocation5 + $0xcd0] sm:$0xff] }
  0x76   :  { %v2354_v2 = vpack.c.bf16 %v405_v61, %v397_v60  ;;  %v471_v48 = vld [vmem:[#allocation5 + $0xcd8] sm:$0xff]  ;;  %v477_v57 = vld [vmem:[#allocation5 + $0xd08] sm:$0xff]  ;;  %v508_v24 = vld [vmem:[#allocation5 + $0xe00] sm:$0xff] }
  0x77   :  { %2333 = vmatpush1.bf16.msra.mxu0 %v2332_v3  ;;  %v396_v3 = vld [vmem:[#allocation5 + $0xa80] sm:$0xff]  ;;  %v2618_v55 = vpack.c.bf16 %v471_v48, %v463_v47  ;;  %v479_v59 = vld [vmem:[#allocation5 + $0xd18] sm:$0xff] }
  0x78   :  { %2581 = vmatpush1.bf16.msra.mxu1 %v2580_v4  ;;  %2335 = vmatprep.subr.bf16.mxu0 %v2334_v5  ;;  %v404_v4 = vld [vmem:[#allocation5 + $0xac0] sm:$0xff]  ;;  %v398_v5 = vld [vmem:[#allocation5 + $0xa90] sm:$0xff]  ;;  %v487_v60 = vld [vmem:[#allocation5 + $0xd58] sm:$0xff] }
  0x79   :  { %2583 = vmatprep.subr.bf16.mxu1 %v2582_v9  ;;  %v421_v9 = vld [vmem:[#allocation5 + $0xb48] sm:$0xff]  ;;  %v2356_v12 = vpack.c.bf16 %v404_v4, %v396_v3  ;;  %v2604_v14 = vpack.c.bf16 %v406_v7, %v398_v5  ;;  %v2622_v3 = vpack.c.bf16 %v487_v60, %v479_v59  ;;  %v486_v4 = vld [vmem:[#allocation5 + $0xd50] sm:$0xff]  ;;  %v495_v7 = vld [vmem:[#allocation5 + $0xd98] sm:$0xff] }
  0x7a   :  { %1171 = vmatmul.mubr.f32.vlgmr.msra.gmra.mrb[0].mxu0 %v52_v15  ;;  %v493_v5 = vld [vmem:[#allocation5 + $0xd88] sm:$0xff]  ;;  %v519_v20 = vld [vmem:[#allocation5 + $0xe58] sm:$0xff]  ;;  %v524_v36 = vld [vmem:[#allocation5 + $0xe80] sm:$0xff] }
  0x7b   :  { %2337 = vmatpush1.bf16.msra.mxu0 %v2336_v16  ;;  %1455 = vmatmul.mubr.f32.vlgmr.msra.gmra.mrb[0].mxu1 %v52_v15  ;;  %v2358_v15 = vpack.c.bf16 %v421_v9, %v413_v8  ;;  %v420_v16 = vld [vmem:[#allocation5 + $0xb40] sm:$0xff]  ;;  %v503_v8 = vld [vmem:[#allocation5 + $0xdd8] sm:$0xff] }
  0x7c   :  { %2585 = vmatpush1.bf16.msra.mxu1 %v2584_v17  ;;  %2339 = vmatprep.subr.bf16.mxu0 %v2338_v18  ;;  %v414_v17 = vld [vmem:[#allocation5 + $0xb10] sm:$0xff]  ;;  %v2360_v25 = vpack.c.bf16 %v420_v16, %v412_v13  ;;  %v500_v13 = vld [vmem:[#allocation5 + $0xdc0] sm:$0xff] }
  0x7d   :  { %2587 = vmatprep.subr.bf16.mxu1 %v2586_v22  ;;  %v422_v18 = vld [vmem:[#allocation5 + $0xb50] sm:$0xff]  ;;  %v55_v22 = vld [vmem:[#allocation2 + $0x18] sm:$0xff]  ;;  %v540_v48 = vld [vmem:[#allocation5 + $0xf00] sm:$0xff] }
  0x7e   :  { %1241 = vmatprep.mubr.f32.mxu0 %v55_v22  ;;  %1525 = vmatprep.mubr.f32.mxu1 %v55_v22  ;;  %v2608_v26 = vpack.c.bf16 %v422_v18, %v414_v17  ;;  %v502_v16 = vld [vmem:[#allocation5 + $0xdd0] sm:$0xff]  ;;  %v509_v17 = vld [vmem:[#allocation5 + $0xe08] sm:$0xff]  ;;  %v556_v60 = vld [vmem:[#allocation5 + $0xf80] sm:$0xff] }
  0x7f   :  { %2341 = vmatpush1.bf16.msra.mxu0 %v2340_v28  ;;  %v428_v28 = vld [vmem:[#allocation5 + $0xb80] sm:$0xff]  ;;  %v517_v18 = vld [vmem:[#allocation5 + $0xe48] sm:$0xff] }
  0x80   :  { %2589 = vmatpush1.bf16.msra.mxu1 %v2588_v29  ;;  %2343 = vmatprep.subr.bf16.mxu0 %v2342_v30  ;;  %v436_v29 = vld [vmem:[#allocation5 + $0xbc0] sm:$0xff]  ;;  %v430_v30 = vld [vmem:[#allocation5 + $0xb90] sm:$0xff]  ;;  %v2382_v23 = vpack.c.bf16 %v517_v18, %v509_v17 }
  0x81   :  { %2591 = vmatprep.subr.bf16.mxu1 %v2590_v34  ;;  %v453_v34 = vld [vmem:[#allocation5 + $0xc48] sm:$0xff]  ;;  %v2364_v37 = vpack.c.bf16 %v436_v29, %v428_v28  ;;  %v2612_v38 = vpack.c.bf16 %v438_v32, %v430_v30  ;;  %v518_v28 = vld [vmem:[#allocation5 + $0xe50] sm:$0xff]  ;;  %v535_v32 = vld [vmem:[#allocation5 + $0xed8] sm:$0xff] }
  0x82   :  { %v2366_v39 = vpack.c.bf16 %v453_v34, %v445_v33  ;;  %v525_v29 = vld [vmem:[#allocation5 + $0xe88] sm:$0xff]  ;;  %v54_v17 = vld [vmem:[#allocation2 + $0x10] sm:$0xff] }
  0x83   :  { %2345 = vmatpush1.bf16.msra.mxu0 %v2344_v40  ;;  %v444_v40 = vld [vmem:[#allocation5 + $0xc00] sm:$0xff]  ;;  %v533_v30 = vld [vmem:[#allocation5 + $0xec8] sm:$0xff] }
  0x84   :  { %2593 = vmatpush1.bf16.msra.mxu1 %v2592_v41  ;;  %2347 = vmatprep.subr.bf16.mxu0 %v2346_v42  ;;  %v452_v41 = vld [vmem:[#allocation5 + $0xc40] sm:$0xff]  ;;  %v446_v42 = vld [vmem:[#allocation5 + $0xc10] sm:$0xff]  ;;  %v2386_v35 = vpack.c.bf16 %v533_v30, %v525_v29  ;;  %v615_v29 = vld [vmem:[#allocation5 + $0x1158] sm:$0xff] }
  0x85   :  { %2595 = vmatprep.subr.bf16.mxu1 %v2594_v46  ;;  %v469_v46 = vld [vmem:[#allocation5 + $0xcc8] sm:$0xff]  ;;  %v2368_v49 = vpack.c.bf16 %v452_v41, %v444_v40  ;;  %v2616_v50 = vpack.c.bf16 %v454_v44, %v446_v42  ;;  %v534_v40 = vld [vmem:[#allocation5 + $0xed0] sm:$0xff]  ;;  %v551_v44 = vld [vmem:[#allocation5 + $0xf58] sm:$0xff] }
  0x86   :  { %v2370_v51 = vpack.c.bf16 %v469_v46, %v461_v45  ;;  %v541_v41 = vld [vmem:[#allocation5 + $0xf08] sm:$0xff] }
  0x87   :  { %2349 = vmatpush1.bf16.msra.mxu0 %v2348_v52  ;;  %v460_v52 = vld [vmem:[#allocation5 + $0xc80] sm:$0xff]  ;;  %v549_v42 = vld [vmem:[#allocation5 + $0xf48] sm:$0xff] }
  0x88   :  { %2597 = vmatpush1.bf16.msra.mxu1 %v2596_v53  ;;  %2351 = vmatprep.subr.bf16.mxu0 %v2350_v54  ;;  %v468_v53 = vld [vmem:[#allocation5 + $0xcc0] sm:$0xff]  ;;  %v462_v54 = vld [vmem:[#allocation5 + $0xc90] sm:$0xff]  ;;  %v2390_v47 = vpack.c.bf16 %v549_v42, %v541_v41  ;;  %v57_v30 = vld [vmem:[#allocation2 + $0x28] sm:$0xff] }
  0x89   :  { %2599 = vmatprep.subr.bf16.mxu1 %v2598_v58  ;;  %v485_v58 = vld [vmem:[#allocation5 + $0xd48] sm:$0xff]  ;;  %v2372_v61 = vpack.c.bf16 %v468_v53, %v460_v52  ;;  %v2620_v62 = vpack.c.bf16 %v470_v56, %v462_v54  ;;  %v550_v52 = vld [vmem:[#allocation5 + $0xf50] sm:$0xff]  ;;  %v567_v56 = vld [vmem:[#allocation5 + $0xfd8] sm:$0xff] }
  0x8a   :  { %v2374_v63 = vpack.c.bf16 %v485_v58, %v477_v57  ;;  %v557_v53 = vld [vmem:[#allocation5 + $0xf88] sm:$0xff]  ;;  %v623_v41 = vld [vmem:[#allocation5 + $0x1198] sm:$0xff] }
  0x8b   :  { %2353 = vmatpush1.bf16.msra.mxu0 %v2352_v0  ;;  %v476_v0 = vld [vmem:[#allocation5 + $0xd00] sm:$0xff]  ;;  %v565_v54 = vld [vmem:[#allocation5 + $0xfc8] sm:$0xff]  ;;  %v631_v42 = vld [vmem:[#allocation5 + $0x11d8] sm:$0xff] }
  0x8c   :  { %2601 = vmatpush1.bf16.msra.mxu1 %v2600_v1  ;;  %2355 = vmatprep.subr.bf16.mxu0 %v2354_v2  ;;  %v484_v1 = vld [vmem:[#allocation5 + $0xd40] sm:$0xff]  ;;  %v478_v2 = vld [vmem:[#allocation5 + $0xd10] sm:$0xff]  ;;  %v2394_v59 = vpack.c.bf16 %v565_v54, %v557_v53  ;;  %v639_v53 = vld [vmem:[#allocation5 + $0x1218] sm:$0xff] }
  0x8d   :  { %2603 = vmatprep.subr.bf16.mxu1 %v2602_v6  ;;  %v501_v6 = vld [vmem:[#allocation5 + $0xdc8] sm:$0xff]  ;;  %v2376_v9 = vpack.c.bf16 %v484_v1, %v476_v0  ;;  %v2624_v10 = vpack.c.bf16 %v486_v4, %v478_v2  ;;  %v566_v0 = vld [vmem:[#allocation5 + $0xfd0] sm:$0xff]  ;;  %v583_v4 = vld [vmem:[#allocation5 + $0x1058] sm:$0xff] }
  0x8e   :  { %v2378_v11 = vpack.c.bf16 %v501_v6, %v493_v5  ;;  %v573_v1 = vld [vmem:[#allocation5 + $0x1008] sm:$0xff]  ;;  %v647_v54 = vld [vmem:[#allocation5 + $0x1258] sm:$0xff] }
  0x8f   :  { %2357 = vmatpush1.bf16.msra.mxu0 %v2356_v12  ;;  %v492_v12 = vld [vmem:[#allocation5 + $0xd80] sm:$0xff]  ;;  %v581_v2 = vld [vmem:[#allocation5 + $0x1048] sm:$0xff] }
  0x90   :  { %2605 = vmatpush1.bf16.msra.mxu1 %v2604_v14  ;;  %2359 = vmatprep.subr.bf16.mxu0 %v2358_v15  ;;  %v494_v14 = vld [vmem:[#allocation5 + $0xd90] sm:$0xff]  ;;  %v2626_v15 = vpack.c.bf16 %v503_v8, %v495_v7  ;;  %v2380_v21 = vpack.c.bf16 %v500_v13, %v492_v12  ;;  %v2398_v7 = vpack.c.bf16 %v581_v2, %v573_v1  ;;  %v572_v8 = vld [vmem:[#allocation5 + $0x1000] sm:$0xff]  ;;  %v589_v13 = vld [vmem:[#allocation5 + $0x1088] sm:$0xff] }
  0x91   :  { %2607 = vmatprep.subr.bf16.mxu1 %v2606_v19  ;;  %v511_v19 = vld [vmem:[#allocation5 + $0xe18] sm:$0xff]  ;;  %v2628_v22 = vpack.c.bf16 %v502_v16, %v494_v14  ;;  %v582_v12 = vld [vmem:[#allocation5 + $0x1050] sm:$0xff]  ;;  %v597_v14 = vld [vmem:[#allocation5 + $0x10c8] sm:$0xff] }
  0x92   :  { %v599_v16 = vld [vmem:[#allocation5 + $0x10d8] sm:$0xff] }
  0x93   :  { %2361 = vmatpush1.bf16.msra.mxu0 %v2360_v25  ;;  %v516_v25 = vld [vmem:[#allocation5 + $0xe40] sm:$0xff]  ;;  %v655_v1 = vld [vmem:[#allocation5 + $0x1298] sm:$0xff] }
  0x94   :  { %2609 = vmatpush1.bf16.msra.mxu1 %v2608_v26  ;;  %2363 = vmatprep.subr.bf16.mxu0 %v2362_v27  ;;  %v510_v26 = vld [vmem:[#allocation5 + $0xe10] sm:$0xff]  ;;  %v2630_v27 = vpack.c.bf16 %v519_v20, %v511_v19  ;;  %v2384_v33 = vpack.c.bf16 %v516_v25, %v508_v24  ;;  %v2402_v20 = vpack.c.bf16 %v597_v14, %v589_v13  ;;  %v663_v2 = vld [vmem:[#allocation5 + $0x12d8] sm:$0xff] }
  0x95   :  { %2611 = vmatprep.subr.bf16.mxu1 %v2610_v31  ;;  %v527_v31 = vld [vmem:[#allocation5 + $0xe98] sm:$0xff]  ;;  %v2632_v34 = vpack.c.bf16 %v518_v28, %v510_v26  ;;  %v598_v25 = vld [vmem:[#allocation5 + $0x10d0] sm:$0xff]  ;;  %v605_v26 = vld [vmem:[#allocation5 + $0x1108] sm:$0xff] }
  0x96   :  { %v607_v28 = vld [vmem:[#allocation5 + $0x1118] sm:$0xff] }
  0x97   :  { %2365 = vmatpush1.bf16.msra.mxu0 %v2364_v37  ;;  %v532_v37 = vld [vmem:[#allocation5 + $0xec0] sm:$0xff]  ;;  %v671_v13 = vld [vmem:[#allocation5 + $0x1318] sm:$0xff] }
  0x98   :  { %2613 = vmatpush1.bf16.msra.mxu1 %v2612_v38  ;;  %2367 = vmatprep.subr.bf16.mxu0 %v2366_v39  ;;  %v526_v38 = vld [vmem:[#allocation5 + $0xe90] sm:$0xff]  ;;  %v2634_v39 = vpack.c.bf16 %v535_v32, %v527_v31  ;;  %v2388_v45 = vpack.c.bf16 %v532_v37, %v524_v36  ;;  %v2654_v37 = vpack.c.bf16 %v615_v29, %v607_v28  ;;  %v679_v14 = vld [vmem:[#allocation5 + $0x1358] sm:$0xff] }
  0x99   :  { %2615 = vmatprep.subr.bf16.mxu1 %v2614_v43  ;;  %v543_v43 = vld [vmem:[#allocation5 + $0xf18] sm:$0xff]  ;;  %v2636_v46 = vpack.c.bf16 %v534_v40, %v526_v38  ;;  %v606_v36 = vld [vmem:[#allocation5 + $0x1110] sm:$0xff]  ;;  %v629_v40 = vld [vmem:[#allocation5 + $0x11c8] sm:$0xff] }
  0x9a   :  { %v614_v38 = vld [vmem:[#allocation5 + $0x1150] sm:$0xff] }
  0x9b   :  { %2369 = vmatpush1.bf16.msra.mxu0 %v2368_v49  ;;  %v548_v49 = vld [vmem:[#allocation5 + $0xf40] sm:$0xff] }
  0x9c   :  { %2617 = vmatpush1.bf16.msra.mxu1 %v2616_v50  ;;  %2371 = vmatprep.subr.bf16.mxu0 %v2370_v51  ;;  %v542_v50 = vld [vmem:[#allocation5 + $0xf10] sm:$0xff]  ;;  %v2638_v51 = vpack.c.bf16 %v551_v44, %v543_v43  ;;  %v2392_v57 = vpack.c.bf16 %v548_v49, %v540_v48  ;;  %v2656_v44 = vpack.c.bf16 %v614_v38, %v606_v36  ;;  %v709_v36 = vld [vmem:[#allocation5 + $0x1448] sm:$0xff]  ;;  %v711_v38 = vld [vmem:[#allocation5 + $0x1458] sm:$0xff] }
  0x9d   :  { %2619 = vmatprep.subr.bf16.mxu1 %v2618_v55  ;;  %v559_v55 = vld [vmem:[#allocation5 + $0xf98] sm:$0xff]  ;;  %v2640_v58 = vpack.c.bf16 %v550_v52, %v542_v50  ;;  %v622_v48 = vld [vmem:[#allocation5 + $0x1190] sm:$0xff]  ;;  %v2658_v49 = vpack.c.bf16 %v631_v42, %v623_v41  ;;  %v645_v52 = vld [vmem:[#allocation5 + $0x1248] sm:$0xff] }
  0x9e   :  { %v630_v50 = vld [vmem:[#allocation5 + $0x11d0] sm:$0xff]  ;;  %v700_v42 = vld [vmem:[#allocation5 + $0x1400] sm:$0xff] }
  0x9f   :  { %2373 = vmatpush1.bf16.msra.mxu0 %v2372_v61  ;;  %v564_v61 = vld [vmem:[#allocation5 + $0xfc0] sm:$0xff] }
  0xa0   :  { %2621 = vmatpush1.bf16.msra.mxu1 %v2620_v62  ;;  %2375 = vmatprep.subr.bf16.mxu0 %v2374_v63  ;;  %v558_v62 = vld [vmem:[#allocation5 + $0xf90] sm:$0xff]  ;;  %v2642_v63 = vpack.c.bf16 %v567_v56, %v559_v55  ;;  %v2396_v5 = vpack.c.bf16 %v564_v61, %v556_v60  ;;  %v2660_v56 = vpack.c.bf16 %v630_v50, %v622_v48  ;;  %v725_v48 = vld [vmem:[#allocation5 + $0x14c8] sm:$0xff]  ;;  %v727_v50 = vld [vmem:[#allocation5 + $0x14d8] sm:$0xff] }
  0xa1   :  { %2623 = vmatprep.subr.bf16.mxu1 %v2622_v3  ;;  %v575_v3 = vld [vmem:[#allocation5 + $0x1018] sm:$0xff]  ;;  %v2644_v6 = vpack.c.bf16 %v566_v0, %v558_v62  ;;  %v638_v60 = vld [vmem:[#allocation5 + $0x1210] sm:$0xff]  ;;  %v2662_v61 = vpack.c.bf16 %v647_v54, %v639_v53  ;;  %v661_v0 = vld [vmem:[#allocation5 + $0x12c8] sm:$0xff] }
  0xa2   :  { %v646_v62 = vld [vmem:[#allocation5 + $0x1250] sm:$0xff]  ;;  %v716_v54 = vld [vmem:[#allocation5 + $0x1480] sm:$0xff] }
  0xa3   :  { %2377 = vmatpush1.bf16.msra.mxu0 %v2376_v9  ;;  %v580_v9 = vld [vmem:[#allocation5 + $0x1040] sm:$0xff] }
  0xa4   :  { %2625 = vmatpush1.bf16.msra.mxu1 %v2624_v10  ;;  %2379 = vmatprep.subr.bf16.mxu0 %v2378_v11  ;;  %v574_v10 = vld [vmem:[#allocation5 + $0x1010] sm:$0xff]  ;;  %v2646_v11 = vpack.c.bf16 %v583_v4, %v575_v3  ;;  %v2400_v18 = vpack.c.bf16 %v580_v9, %v572_v8  ;;  %v2664_v4 = vpack.c.bf16 %v646_v62, %v638_v60  ;;  %v741_v60 = vld [vmem:[#allocation5 + $0x1548] sm:$0xff]  ;;  %v743_v62 = vld [vmem:[#allocation5 + $0x1558] sm:$0xff] }
  0xa5   :  { %2627 = vmatprep.subr.bf16.mxu1 %v2626_v15  ;;  %v591_v15 = vld [vmem:[#allocation5 + $0x1098] sm:$0xff]  ;;  %v2648_v19 = vpack.c.bf16 %v582_v12, %v574_v10  ;;  %v654_v8 = vld [vmem:[#allocation5 + $0x1290] sm:$0xff]  ;;  %v2666_v9 = vpack.c.bf16 %v663_v2, %v655_v1  ;;  %v677_v12 = vld [vmem:[#allocation5 + $0x1348] sm:$0xff] }
  0xa6   :  { %v2650_v24 = vpack.c.bf16 %v599_v16, %v591_v15  ;;  %v662_v10 = vld [vmem:[#allocation5 + $0x12d0] sm:$0xff]  ;;  %v732_v2 = vld [vmem:[#allocation5 + $0x1500] sm:$0xff] }
  0xa7   :  { %2381 = vmatpush1.bf16.msra.mxu0 %v2380_v21  ;;  %v588_v21 = vld [vmem:[#allocation5 + $0x1080] sm:$0xff]  ;;  %v2668_v16 = vpack.c.bf16 %v662_v10, %v654_v8  ;;  %v757_v8 = vld [vmem:[#allocation5 + $0x15c8] sm:$0xff]  ;;  %v759_v10 = vld [vmem:[#allocation5 + $0x15d8] sm:$0xff] }
  0xa8   :  { %2629 = vmatpush1.bf16.msra.mxu1 %v2628_v22  ;;  %2383 = vmatprep.subr.bf16.mxu0 %v2382_v23  ;;  %v596_v22 = vld [vmem:[#allocation5 + $0x10c0] sm:$0xff]  ;;  %v590_v23 = vld [vmem:[#allocation5 + $0x1090] sm:$0xff] }
  0xa9   :  { %2631 = vmatprep.subr.bf16.mxu1 %v2630_v27  ;;  %v613_v27 = vld [vmem:[#allocation5 + $0x1148] sm:$0xff]  ;;  %v2404_v31 = vpack.c.bf16 %v596_v22, %v588_v21  ;;  %v2652_v32 = vpack.c.bf16 %v598_v25, %v590_v23  ;;  %v2670_v21 = vpack.c.bf16 %v679_v14, %v671_v13  ;;  %v678_v22 = vld [vmem:[#allocation5 + $0x1350] sm:$0xff]  ;;  %v687_v25 = vld [vmem:[#allocation5 + $0x1398] sm:$0xff] }
  0xaa   :  { %v685_v23 = vld [vmem:[#allocation5 + $0x1388] sm:$0xff]  ;;  %v748_v14 = vld [vmem:[#allocation5 + $0x1580] sm:$0xff] }
  0xab   :  { %2385 = vmatpush1.bf16.msra.mxu0 %v2384_v33  ;;  %v2406_v33 = vpack.c.bf16 %v613_v27, %v605_v26  ;;  %v695_v26 = vld [vmem:[#allocation5 + $0x13d8] sm:$0xff] }
  0xac   :  { %2633 = vmatpush1.bf16.msra.mxu1 %v2632_v34  ;;  %2387 = vmatprep.subr.bf16.mxu0 %v2386_v35  ;;  %v604_v34 = vld [vmem:[#allocation5 + $0x1100] sm:$0xff] }
  0xad   :  { %2635 = vmatprep.subr.bf16.mxu1 %v2634_v39  ;;  %v612_v35 = vld [vmem:[#allocation5 + $0x1140] sm:$0xff]  ;;  %v621_v39 = vld [vmem:[#allocation5 + $0x1188] sm:$0xff] }
  0xae   :  { %v2408_v43 = vpack.c.bf16 %v612_v35, %v604_v34  ;;  %v694_v34 = vld [vmem:[#allocation5 + $0x13d0] sm:$0xff]  ;;  %v701_v35 = vld [vmem:[#allocation5 + $0x1408] sm:$0xff] }
  0xaf   :  { %2389 = vmatpush1.bf16.msra.mxu0 %v2388_v45  ;;  %v2410_v45 = vpack.c.bf16 %v629_v40, %v621_v39  ;;  %v2430_v41 = vpack.c.bf16 %v709_v36, %v701_v35 }
  0xb0   :  { %2637 = vmatpush1.bf16.msra.mxu1 %v2636_v46  ;;  %2391 = vmatprep.subr.bf16.mxu0 %v2390_v47  ;;  %v620_v46 = vld [vmem:[#allocation5 + $0x1180] sm:$0xff] }
  0xb1   :  { %2639 = vmatprep.subr.bf16.mxu1 %v2638_v51  ;;  %v628_v47 = vld [vmem:[#allocation5 + $0x11c0] sm:$0xff]  ;;  %v637_v51 = vld [vmem:[#allocation5 + $0x1208] sm:$0xff] }
  0xb2   :  { %v2412_v55 = vpack.c.bf16 %v628_v47, %v620_v46  ;;  %v710_v46 = vld [vmem:[#allocation5 + $0x1450] sm:$0xff]  ;;  %v717_v47 = vld [vmem:[#allocation5 + $0x1488] sm:$0xff] }
  0xb3   :  { %2393 = vmatpush1.bf16.msra.mxu0 %v2392_v57  ;;  %v2414_v57 = vpack.c.bf16 %v645_v52, %v637_v51  ;;  %v2434_v53 = vpack.c.bf16 %v725_v48, %v717_v47 }
  0xb4   :  { %2641 = vmatpush1.bf16.msra.mxu1 %v2640_v58  ;;  %2395 = vmatprep.subr.bf16.mxu0 %v2394_v59  ;;  %v636_v58 = vld [vmem:[#allocation5 + $0x1200] sm:$0xff] }
  0xb5   :  { %2643 = vmatprep.subr.bf16.mxu1 %v2642_v63  ;;  %v644_v59 = vld [vmem:[#allocation5 + $0x1240] sm:$0xff]  ;;  %v653_v63 = vld [vmem:[#allocation5 + $0x1288] sm:$0xff] }
  0xb6   :  { %v2416_v3 = vpack.c.bf16 %v644_v59, %v636_v58  ;;  %v726_v58 = vld [vmem:[#allocation5 + $0x14d0] sm:$0xff]  ;;  %v733_v59 = vld [vmem:[#allocation5 + $0x1508] sm:$0xff] }
  0xb7   :  { %2397 = vmatpush1.bf16.msra.mxu0 %v2396_v5  ;;  %v2418_v5 = vpack.c.bf16 %v661_v0, %v653_v63  ;;  %v2438_v1 = vpack.c.bf16 %v741_v60, %v733_v59 }
  0xb8   :  { %2645 = vmatpush1.bf16.msra.mxu1 %v2644_v6  ;;  %2399 = vmatprep.subr.bf16.mxu0 %v2398_v7  ;;  %v652_v6 = vld [vmem:[#allocation5 + $0x1280] sm:$0xff] }
  0xb9   :  { %2647 = vmatprep.subr.bf16.mxu1 %v2646_v11  ;;  %v660_v7 = vld [vmem:[#allocation5 + $0x12c0] sm:$0xff]  ;;  %v669_v11 = vld [vmem:[#allocation5 + $0x1308] sm:$0xff] }
  0xba   :  { %1242 = vmatmul.mubr.f32.vlgmr.msra.gmra.mrb[0].mxu0 %v54_v17  ;;  %v2420_v15 = vpack.c.bf16 %v660_v7, %v652_v6  ;;  %v742_v6 = vld [vmem:[#allocation5 + $0x1550] sm:$0xff]  ;;  %v749_v7 = vld [vmem:[#allocation5 + $0x1588] sm:$0xff] }
  0xbb   :  { %2401 = vmatpush1.bf16.msra.mxu0 %v2400_v18  ;;  %1526 = vmatmul.mubr.f32.vlgmr.msra.gmra.mrb[0].mxu1 %v54_v17  ;;  %v2422_v17 = vpack.c.bf16 %v677_v12, %v669_v11  ;;  %v668_v18 = vld [vmem:[#allocation5 + $0x1300] sm:$0xff]  ;;  %v2442_v13 = vpack.c.bf16 %v757_v8, %v749_v7 }
  0xbc   :  { %2649 = vmatpush1.bf16.msra.mxu1 %v2648_v19  ;;  %2403 = vmatprep.subr.bf16.mxu0 %v2402_v20  ;;  %v676_v19 = vld [vmem:[#allocation5 + $0x1340] sm:$0xff]  ;;  %v670_v20 = vld [vmem:[#allocation5 + $0x1310] sm:$0xff] }
  0xbd   :  { %2651 = vmatprep.subr.bf16.mxu1 %v2650_v24  ;;  %1312 = vmatprep.mubr.f32.mxu0 %v57_v30  ;;  %v693_v24 = vld [vmem:[#allocation5 + $0x13c8] sm:$0xff]  ;;  %v2424_v27 = vpack.c.bf16 %v676_v19, %v668_v18  ;;  %v2672_v28 = vpack.c.bf16 %v678_v22, %v670_v20  ;;  %v758_v18 = vld [vmem:[#allocation5 + $0x15d0] sm:$0xff]  ;;  %v775_v22 = vld [vmem:[#allocation5 + $0x1658] sm:$0xff] }
  0xbe   :  { %1596 = vmatprep.mubr.f32.mxu1 %v57_v30  ;;  %v2426_v29 = vpack.c.bf16 %v693_v24, %v685_v23  ;;  %v684_v30 = vld [vmem:[#allocation5 + $0x1380] sm:$0xff]  ;;  %v765_v19 = vld [vmem:[#allocation5 + $0x1608] sm:$0xff] }
  0xbf   :  { %2405 = vmatpush1.bf16.msra.mxu0 %v2404_v31  ;;  %v692_v31 = vld [vmem:[#allocation5 + $0x13c0] sm:$0xff]  ;;  %v773_v20 = vld [vmem:[#allocation5 + $0x1648] sm:$0xff] }
  0xc0   :  { %2653 = vmatpush1.bf16.msra.mxu1 %v2652_v32  ;;  %2407 = vmatprep.subr.bf16.mxu0 %v2406_v33  ;;  %v686_v32 = vld [vmem:[#allocation5 + $0x1390] sm:$0xff]  ;;  %v2674_v33 = vpack.c.bf16 %v695_v26, %v687_v25  ;;  %v2428_v39 = vpack.c.bf16 %v692_v31, %v684_v30  ;;  %v2446_v25 = vpack.c.bf16 %v773_v20, %v765_v19  ;;  %v764_v26 = vld [vmem:[#allocation5 + $0x1600] sm:$0xff]  ;;  %v781_v31 = vld [vmem:[#allocation5 + $0x1688] sm:$0xff] }
  0xc1   :  { %2655 = vmatprep.subr.bf16.mxu1 %v2654_v37  ;;  %v703_v37 = vld [vmem:[#allocation5 + $0x1418] sm:$0xff]  ;;  %v2676_v40 = vpack.c.bf16 %v694_v34, %v686_v32  ;;  %v774_v30 = vld [vmem:[#allocation5 + $0x1650] sm:$0xff]  ;;  %v789_v32 = vld [vmem:[#allocation5 + $0x16c8] sm:$0xff] }
  0xc2   :  { %v791_v34 = vld [vmem:[#allocation5 + $0x16d8] sm:$0xff]  ;;  %v56_v19 = vld [vmem:[#allocation2 + $0x20] sm:$0xff] }
  0xc3   :  { %2409 = vmatpush1.bf16.msra.mxu0 %v2408_v43  ;;  %v708_v43 = vld [vmem:[#allocation5 + $0x1440] sm:$0xff] }
  0xc4   :  { %2657 = vmatpush1.bf16.msra.mxu1 %v2656_v44  ;;  %2411 = vmatprep.subr.bf16.mxu0 %v2410_v45  ;;  %v702_v44 = vld [vmem:[#allocation5 + $0x1410] sm:$0xff]  ;;  %v2678_v45 = vpack.c.bf16 %v711_v38, %v703_v37  ;;  %v2432_v51 = vpack.c.bf16 %v708_v43, %v700_v42  ;;  %v2450_v37 = vpack.c.bf16 %v789_v32, %v781_v31  ;;  %v780_v38 = vld [vmem:[#allocation5 + $0x1680] sm:$0xff]  ;;  %v797_v43 = vld [vmem:[#allocation5 + $0x1708] sm:$0xff] }
  0xc5   :  { %2659 = vmatprep.subr.bf16.mxu1 %v2658_v49  ;;  %v719_v49 = vld [vmem:[#allocation5 + $0x1498] sm:$0xff]  ;;  %v2680_v52 = vpack.c.bf16 %v710_v46, %v702_v44  ;;  %v790_v42 = vld [vmem:[#allocation5 + $0x16d0] sm:$0xff]  ;;  %v805_v44 = vld [vmem:[#allocation5 + $0x1748] sm:$0xff] }
  0xc6   :  { %v807_v46 = vld [vmem:[#allocation5 + $0x1758] sm:$0xff] }
  0xc7   :  { %2413 = vmatpush1.bf16.msra.mxu0 %v2412_v55  ;;  %v724_v55 = vld [vmem:[#allocation5 + $0x14c0] sm:$0xff]  ;;  %v871_v31 = vld [vmem:[#allocation5 + $0x1958] sm:$0xff] }
  0xc8   :  { %2661 = vmatpush1.bf16.msra.mxu1 %v2660_v56  ;;  %2415 = vmatprep.subr.bf16.mxu0 %v2414_v57  ;;  %v718_v56 = vld [vmem:[#allocation5 + $0x1490] sm:$0xff]  ;;  %v2682_v57 = vpack.c.bf16 %v727_v50, %v719_v49  ;;  %v2436_v63 = vpack.c.bf16 %v724_v55, %v716_v54  ;;  %v2454_v49 = vpack.c.bf16 %v805_v44, %v797_v43  ;;  %v796_v50 = vld [vmem:[#allocation5 + $0x1700] sm:$0xff]  ;;  %v813_v55 = vld [vmem:[#allocation5 + $0x1788] sm:$0xff] }
  0xc9   :  { %2663 = vmatprep.subr.bf16.mxu1 %v2662_v61  ;;  %v735_v61 = vld [vmem:[#allocation5 + $0x1518] sm:$0xff]  ;;  %v2684_v0 = vpack.c.bf16 %v726_v58, %v718_v56  ;;  %v806_v54 = vld [vmem:[#allocation5 + $0x1750] sm:$0xff]  ;;  %v821_v56 = vld [vmem:[#allocation5 + $0x17c8] sm:$0xff] }
  0xca   :  { %v823_v58 = vld [vmem:[#allocation5 + $0x17d8] sm:$0xff] }
  0xcb   :  { %2417 = vmatpush1.bf16.msra.mxu0 %v2416_v3  ;;  %v740_v3 = vld [vmem:[#allocation5 + $0x1540] sm:$0xff]  ;;  %v59_v32 = vld [vmem:[#allocation2 + $0x38] sm:$0xff] }
  0xcc   :  { %2665 = vmatpush1.bf16.msra.mxu1 %v2664_v4  ;;  %2419 = vmatprep.subr.bf16.mxu0 %v2418_v5  ;;  %v734_v4 = vld [vmem:[#allocation5 + $0x1510] sm:$0xff]  ;;  %v2686_v5 = vpack.c.bf16 %v743_v62, %v735_v61  ;;  %v2440_v11 = vpack.c.bf16 %v740_v3, %v732_v2  ;;  %v2458_v61 = vpack.c.bf16 %v821_v56, %v813_v55  ;;  %v812_v62 = vld [vmem:[#allocation5 + $0x1780] sm:$0xff]  ;;  %v829_v3 = vld [vmem:[#allocation5 + $0x1808] sm:$0xff] }
  0xcd   :  { %2667 = vmatprep.subr.bf16.mxu1 %v2666_v9  ;;  %v751_v9 = vld [vmem:[#allocation5 + $0x1598] sm:$0xff]  ;;  %v2688_v12 = vpack.c.bf16 %v742_v6, %v734_v4  ;;  %v822_v2 = vld [vmem:[#allocation5 + $0x17d0] sm:$0xff]  ;;  %v837_v4 = vld [vmem:[#allocation5 + $0x1848] sm:$0xff] }
  0xce   :  { %v839_v6 = vld [vmem:[#allocation5 + $0x1858] sm:$0xff] }
  0xcf   :  { %2421 = vmatpush1.bf16.msra.mxu0 %v2420_v15  ;;  %v756_v15 = vld [vmem:[#allocation5 + $0x15c0] sm:$0xff]  ;;  %v879_v43 = vld [vmem:[#allocation5 + $0x1998] sm:$0xff] }
  0xd0   :  { %2669 = vmatpush1.bf16.msra.mxu1 %v2668_v16  ;;  %2423 = vmatprep.subr.bf16.mxu0 %v2422_v17  ;;  %v750_v16 = vld [vmem:[#allocation5 + $0x1590] sm:$0xff]  ;;  %v2690_v17 = vpack.c.bf16 %v759_v10, %v751_v9  ;;  %v2444_v23 = vpack.c.bf16 %v756_v15, %v748_v14  ;;  %v2462_v9 = vpack.c.bf16 %v837_v4, %v829_v3  ;;  %v828_v10 = vld [vmem:[#allocation5 + $0x1800] sm:$0xff]  ;;  %v845_v15 = vld [vmem:[#allocation5 + $0x1888] sm:$0xff] }
  0xd1   :  { %2671 = vmatprep.subr.bf16.mxu1 %v2670_v21  ;;  %v767_v21 = vld [vmem:[#allocation5 + $0x1618] sm:$0xff]  ;;  %v2692_v24 = vpack.c.bf16 %v758_v18, %v750_v16  ;;  %v838_v14 = vld [vmem:[#allocation5 + $0x1850] sm:$0xff]  ;;  %v853_v16 = vld [vmem:[#allocation5 + $0x18c8] sm:$0xff] }
  0xd2   :  { %v855_v18 = vld [vmem:[#allocation5 + $0x18d8] sm:$0xff] }
  0xd3   :  { %2425 = vmatpush1.bf16.msra.mxu0 %v2424_v27  ;;  %v772_v27 = vld [vmem:[#allocation5 + $0x1640] sm:$0xff]  ;;  %v887_v44 = vld [vmem:[#allocation5 + $0x19d8] sm:$0xff] }
  0xd4   :  { %2673 = vmatpush1.bf16.msra.mxu1 %v2672_v28  ;;  %2427 = vmatprep.subr.bf16.mxu0 %v2426_v29  ;;  %v766_v28 = vld [vmem:[#allocation5 + $0x1610] sm:$0xff]  ;;  %v2694_v29 = vpack.c.bf16 %v775_v22, %v767_v21  ;;  %v2448_v35 = vpack.c.bf16 %v772_v27, %v764_v26  ;;  %v2466_v22 = vpack.c.bf16 %v853_v16, %v845_v15  ;;  %v895_v55 = vld [vmem:[#allocation5 + $0x1a18] sm:$0xff] }
  0xd5   :  { %2675 = vmatprep.subr.bf16.mxu1 %v2674_v33  ;;  %v783_v33 = vld [vmem:[#allocation5 + $0x1698] sm:$0xff]  ;;  %v2696_v36 = vpack.c.bf16 %v774_v30, %v766_v28  ;;  %v854_v27 = vld [vmem:[#allocation5 + $0x18d0] sm:$0xff]  ;;  %v861_v28 = vld [vmem:[#allocation5 + $0x1908] sm:$0xff] }
  0xd6   :  { %v863_v30 = vld [vmem:[#allocation5 + $0x1918] sm:$0xff] }
  0xd7   :  { %2429 = vmatpush1.bf16.msra.mxu0 %v2428_v39  ;;  %v788_v39 = vld [vmem:[#allocation5 + $0x16c0] sm:$0xff]  ;;  %v903_v56 = vld [vmem:[#allocation5 + $0x1a58] sm:$0xff] }
  0xd8   :  { %2677 = vmatpush1.bf16.msra.mxu1 %v2676_v40  ;;  %2431 = vmatprep.subr.bf16.mxu0 %v2430_v41  ;;  %v782_v40 = vld [vmem:[#allocation5 + $0x1690] sm:$0xff]  ;;  %v2698_v41 = vpack.c.bf16 %v791_v34, %v783_v33  ;;  %v2452_v47 = vpack.c.bf16 %v788_v39, %v780_v38  ;;  %v2718_v39 = vpack.c.bf16 %v871_v31, %v863_v30  ;;  %v911_v3 = vld [vmem:[#allocation5 + $0x1a98] sm:$0xff] }
  0xd9   :  { %2679 = vmatprep.subr.bf16.mxu1 %v2678_v45  ;;  %v799_v45 = vld [vmem:[#allocation5 + $0x1718] sm:$0xff]  ;;  %v2700_v48 = vpack.c.bf16 %v790_v42, %v782_v40  ;;  %v862_v38 = vld [vmem:[#allocation5 + $0x1910] sm:$0xff]  ;;  %v885_v42 = vld [vmem:[#allocation5 + $0x19c8] sm:$0xff] }
  0xda   :  { %v870_v40 = vld [vmem:[#allocation5 + $0x1950] sm:$0xff]  ;;  %v919_v4 = vld [vmem:[#allocation5 + $0x1ad8] sm:$0xff] }
  0xdb   :  { %2433 = vmatpush1.bf16.msra.mxu0 %v2432_v51  ;;  %v804_v51 = vld [vmem:[#allocation5 + $0x1740] sm:$0xff]  ;;  %v927_v15 = vld [vmem:[#allocation5 + $0x1b18] sm:$0xff] }
  0xdc   :  { %2681 = vmatpush1.bf16.msra.mxu1 %v2680_v52  ;;  %2435 = vmatprep.subr.bf16.mxu0 %v2434_v53  ;;  %v798_v52 = vld [vmem:[#allocation5 + $0x1710] sm:$0xff]  ;;  %v2702_v53 = vpack.c.bf16 %v807_v46, %v799_v45  ;;  %v2456_v59 = vpack.c.bf16 %v804_v51, %v796_v50  ;;  %v2720_v46 = vpack.c.bf16 %v870_v40, %v862_v38  ;;  %v935_v16 = vld [vmem:[#allocation5 + $0x1b58] sm:$0xff]  ;;  %v965_v38 = vld [vmem:[#allocation5 + $0x1c48] sm:$0xff] }
  0xdd   :  { %2683 = vmatprep.subr.bf16.mxu1 %v2682_v57  ;;  %v815_v57 = vld [vmem:[#allocation5 + $0x1798] sm:$0xff]  ;;  %v2704_v60 = vpack.c.bf16 %v806_v54, %v798_v52  ;;  %v878_v50 = vld [vmem:[#allocation5 + $0x1990] sm:$0xff]  ;;  %v2722_v51 = vpack.c.bf16 %v887_v44, %v879_v43  ;;  %v901_v54 = vld [vmem:[#allocation5 + $0x1a48] sm:$0xff] }
  0xde   :  { %v886_v52 = vld [vmem:[#allocation5 + $0x19d0] sm:$0xff]  ;;  %v967_v40 = vld [vmem:[#allocation5 + $0x1c58] sm:$0xff]  ;;  %v956_v44 = vld [vmem:[#allocation5 + $0x1c00] sm:$0xff] }
  0xdf   :  { %2437 = vmatpush1.bf16.msra.mxu0 %v2436_v63  ;;  %v820_v63 = vld [vmem:[#allocation5 + $0x17c0] sm:$0xff] }
  0xe0   :  { %2685 = vmatpush1.bf16.msra.mxu1 %v2684_v0  ;;  %2439 = vmatprep.subr.bf16.mxu0 %v2438_v1  ;;  %v814_v0 = vld [vmem:[#allocation5 + $0x1790] sm:$0xff]  ;;  %v2706_v1 = vpack.c.bf16 %v823_v58, %v815_v57  ;;  %v2460_v7 = vpack.c.bf16 %v820_v63, %v812_v62  ;;  %v2724_v58 = vpack.c.bf16 %v886_v52, %v878_v50  ;;  %v981_v50 = vld [vmem:[#allocation5 + $0x1cc8] sm:$0xff]  ;;  %v983_v52 = vld [vmem:[#allocation5 + $0x1cd8] sm:$0xff] }
  0xe1   :  { %2687 = vmatprep.subr.bf16.mxu1 %v2686_v5  ;;  %v831_v5 = vld [vmem:[#allocation5 + $0x1818] sm:$0xff]  ;;  %v2708_v8 = vpack.c.bf16 %v822_v2, %v814_v0  ;;  %v894_v62 = vld [vmem:[#allocation5 + $0x1a10] sm:$0xff]  ;;  %v2726_v63 = vpack.c.bf16 %v903_v56, %v895_v55  ;;  %v917_v2 = vld [vmem:[#allocation5 + $0x1ac8] sm:$0xff] }
  0xe2   :  { %v902_v0 = vld [vmem:[#allocation5 + $0x1a50] sm:$0xff]  ;;  %v972_v56 = vld [vmem:[#allocation5 + $0x1c80] sm:$0xff] }
  0xe3   :  { %2441 = vmatpush1.bf16.msra.mxu0 %v2440_v11  ;;  %v836_v11 = vld [vmem:[#allocation5 + $0x1840] sm:$0xff] }
  0xe4   :  { %2689 = vmatpush1.bf16.msra.mxu1 %v2688_v12  ;;  %2443 = vmatprep.subr.bf16.mxu0 %v2442_v13  ;;  %v830_v12 = vld [vmem:[#allocation5 + $0x1810] sm:$0xff]  ;;  %v2710_v13 = vpack.c.bf16 %v839_v6, %v831_v5  ;;  %v2464_v20 = vpack.c.bf16 %v836_v11, %v828_v10  ;;  %v2728_v6 = vpack.c.bf16 %v902_v0, %v894_v62  ;;  %v997_v62 = vld [vmem:[#allocation5 + $0x1d48] sm:$0xff]  ;;  %v999_v0 = vld [vmem:[#allocation5 + $0x1d58] sm:$0xff] }
  0xe5   :  { %2691 = vmatprep.subr.bf16.mxu1 %v2690_v17  ;;  %v847_v17 = vld [vmem:[#allocation5 + $0x1898] sm:$0xff]  ;;  %v2712_v21 = vpack.c.bf16 %v838_v14, %v830_v12  ;;  %v910_v10 = vld [vmem:[#allocation5 + $0x1a90] sm:$0xff]  ;;  %v2730_v11 = vpack.c.bf16 %v919_v4, %v911_v3  ;;  %v933_v14 = vld [vmem:[#allocation5 + $0x1b48] sm:$0xff] }
  0xe6   :  { %v2714_v26 = vpack.c.bf16 %v855_v18, %v847_v17  ;;  %v918_v12 = vld [vmem:[#allocation5 + $0x1ad0] sm:$0xff]  ;;  %v988_v4 = vld [vmem:[#allocation5 + $0x1d00] sm:$0xff] }
  0xe7   :  { %2445 = vmatpush1.bf16.msra.mxu0 %v2444_v23  ;;  %v844_v23 = vld [vmem:[#allocation5 + $0x1880] sm:$0xff]  ;;  %v2732_v18 = vpack.c.bf16 %v918_v12, %v910_v10  ;;  %v1013_v10 = vld [vmem:[#allocation5 + $0x1dc8] sm:$0xff]  ;;  %v1015_v12 = vld [vmem:[#allocation5 + $0x1dd8] sm:$0xff] }
  0xe8   :  { %2693 = vmatpush1.bf16.msra.mxu1 %v2692_v24  ;;  %2447 = vmatprep.subr.bf16.mxu0 %v2446_v25  ;;  %v852_v24 = vld [vmem:[#allocation5 + $0x18c0] sm:$0xff]  ;;  %v846_v25 = vld [vmem:[#allocation5 + $0x1890] sm:$0xff] }
  0xe9   :  { %2695 = vmatprep.subr.bf16.mxu1 %v2694_v29  ;;  %v869_v29 = vld [vmem:[#allocation5 + $0x1948] sm:$0xff]  ;;  %v2468_v33 = vpack.c.bf16 %v852_v24, %v844_v23  ;;  %v2716_v34 = vpack.c.bf16 %v854_v27, %v846_v25  ;;  %v2734_v23 = vpack.c.bf16 %v935_v16, %v927_v15  ;;  %v934_v24 = vld [vmem:[#allocation5 + $0x1b50] sm:$0xff]  ;;  %v943_v27 = vld [vmem:[#allocation5 + $0x1b98] sm:$0xff] }
  0xea   :  { %v941_v25 = vld [vmem:[#allocation5 + $0x1b88] sm:$0xff]  ;;  %v1004_v16 = vld [vmem:[#allocation5 + $0x1d80] sm:$0xff] }
  0xeb   :  { %2449 = vmatpush1.bf16.msra.mxu0 %v2448_v35  ;;  %v2470_v35 = vpack.c.bf16 %v869_v29, %v861_v28  ;;  %v951_v28 = vld [vmem:[#allocation5 + $0x1bd8] sm:$0xff] }
  0xec   :  { %2697 = vmatpush1.bf16.msra.mxu1 %v2696_v36  ;;  %2451 = vmatprep.subr.bf16.mxu0 %v2450_v37  ;;  %v860_v36 = vld [vmem:[#allocation5 + $0x1900] sm:$0xff] }
  0xed   :  { %2699 = vmatprep.subr.bf16.mxu1 %v2698_v41  ;;  %v868_v37 = vld [vmem:[#allocation5 + $0x1940] sm:$0xff]  ;;  %v877_v41 = vld [vmem:[#allocation5 + $0x1988] sm:$0xff] }
  0xee   :  { %v2472_v45 = vpack.c.bf16 %v868_v37, %v860_v36  ;;  %v950_v36 = vld [vmem:[#allocation5 + $0x1bd0] sm:$0xff]  ;;  %v957_v37 = vld [vmem:[#allocation5 + $0x1c08] sm:$0xff] }
  0xef   :  { %2453 = vmatpush1.bf16.msra.mxu0 %v2452_v47  ;;  %v2474_v47 = vpack.c.bf16 %v885_v42, %v877_v41  ;;  %v2494_v43 = vpack.c.bf16 %v965_v38, %v957_v37 }
  0xf0   :  { %2701 = vmatpush1.bf16.msra.mxu1 %v2700_v48  ;;  %2455 = vmatprep.subr.bf16.mxu0 %v2454_v49  ;;  %v876_v48 = vld [vmem:[#allocation5 + $0x1980] sm:$0xff] }
  0xf1   :  { %2703 = vmatprep.subr.bf16.mxu1 %v2702_v53  ;;  %v884_v49 = vld [vmem:[#allocation5 + $0x19c0] sm:$0xff]  ;;  %v893_v53 = vld [vmem:[#allocation5 + $0x1a08] sm:$0xff] }
  0xf2   :  { %v2476_v57 = vpack.c.bf16 %v884_v49, %v876_v48  ;;  %v966_v48 = vld [vmem:[#allocation5 + $0x1c50] sm:$0xff]  ;;  %v973_v49 = vld [vmem:[#allocation5 + $0x1c88] sm:$0xff] }
  0xf3   :  { %2457 = vmatpush1.bf16.msra.mxu0 %v2456_v59  ;;  %v2478_v59 = vpack.c.bf16 %v901_v54, %v893_v53  ;;  %v2498_v55 = vpack.c.bf16 %v981_v50, %v973_v49  ;;  %v65_v49 = vld [vmem:[#allocation5 + $0x28] sm:$0xff]  ;;  %v1052_v50 = vld [vmem:[#allocation5 + $0x1f00] sm:$0xff] }
  0xf4   :  { %2705 = vmatpush1.bf16.msra.mxu1 %v2704_v60  ;;  %2459 = vmatprep.subr.bf16.mxu0 %v2458_v61  ;;  %v892_v60 = vld [vmem:[#allocation5 + $0x1a00] sm:$0xff] }
  0xf5   :  { %2707 = vmatprep.subr.bf16.mxu1 %v2706_v1  ;;  %v900_v61 = vld [vmem:[#allocation5 + $0x1a40] sm:$0xff]  ;;  %v909_v1 = vld [vmem:[#allocation5 + $0x1a88] sm:$0xff] }
  0xf6   :  { %v2480_v5 = vpack.c.bf16 %v900_v61, %v892_v60  ;;  %v982_v60 = vld [vmem:[#allocation5 + $0x1cd0] sm:$0xff]  ;;  %v989_v61 = vld [vmem:[#allocation5 + $0x1d08] sm:$0xff] }
  0xf7   :  { %2461 = vmatpush1.bf16.msra.mxu0 %v2460_v7  ;;  %v2482_v7 = vpack.c.bf16 %v917_v2, %v909_v1  ;;  %v2502_v3 = vpack.c.bf16 %v997_v62, %v989_v61  ;;  %v58_v61 = vld [vmem:[#allocation2 + $0x30] sm:$0xff] }
  0xf8   :  { %2709 = vmatpush1.bf16.msra.mxu1 %v2708_v8  ;;  %2463 = vmatprep.subr.bf16.mxu0 %v2462_v9  ;;  %v908_v8 = vld [vmem:[#allocation5 + $0x1a80] sm:$0xff] }
  0xf9   :  { %2711 = vmatprep.subr.bf16.mxu1 %v2710_v13  ;;  %v916_v9 = vld [vmem:[#allocation5 + $0x1ac0] sm:$0xff]  ;;  %v925_v13 = vld [vmem:[#allocation5 + $0x1b08] sm:$0xff] }
  0xfa   :  { %1313 = vmatmul.mubr.f32.vlgmr.msra.gmra.mrb[0].mxu0 %v56_v19  ;;  %v2484_v17 = vpack.c.bf16 %v916_v9, %v908_v8  ;;  %v998_v8 = vld [vmem:[#allocation5 + $0x1d50] sm:$0xff]  ;;  %v1005_v9 = vld [vmem:[#allocation5 + $0x1d88] sm:$0xff] }
  0xfb   :  { %2465 = vmatpush1.bf16.msra.mxu0 %v2464_v20  ;;  %1597 = vmatmul.mubr.f32.vlgmr.msra.gmra.mrb[0].mxu1 %v56_v19  ;;  %v2486_v19 = vpack.c.bf16 %v933_v14, %v925_v13  ;;  %v924_v20 = vld [vmem:[#allocation5 + $0x1b00] sm:$0xff]  ;;  %v2506_v15 = vpack.c.bf16 %v1013_v10, %v1005_v9  ;;  %v90_v9 = vld [vmem:[#allocation5 + $0xf0] sm:$0xff]  ;;  %v97_v10 = vld [vmem:[#allocation5 + $0x128] sm:$0xff] }
  0xfc   :  { %2713 = vmatpush1.bf16.msra.mxu1 %v2712_v21  ;;  %2467 = vmatprep.subr.bf16.mxu0 %v2466_v22  ;;  %v932_v21 = vld [vmem:[#allocation5 + $0x1b40] sm:$0xff]  ;;  %v926_v22 = vld [vmem:[#allocation5 + $0x1b10] sm:$0xff] }
  0xfd   :  { %2715 = vmatprep.subr.bf16.mxu1 %v2714_v26  ;;  %2266 = vmatprep.mubr.msk.f32.mxu0 %vm1102_vm0, %v59_v32  ;;  %v949_v26 = vld [vmem:[#allocation5 + $0x1bc8] sm:$0xff]  ;;  %v2488_v29 = vpack.c.bf16 %v932_v21, %v924_v20  ;;  %v2736_v30 = vpack.c.bf16 %v934_v24, %v926_v22  ;;  %v1014_v20 = vld [vmem:[#allocation5 + $0x1dd0] sm:$0xff]  ;;  %v1031_v24 = vld [vmem:[#allocation5 + $0x1e58] sm:$0xff] }
  0xfe   :  { %2267 = vmatprep.mubr.msk.f32.mxu1 %vm1102_vm0, %v59_v32  ;;  %v2490_v31 = vpack.c.bf16 %v949_v26, %v941_v25  ;;  %v940_v32 = vld [vmem:[#allocation5 + $0x1b80] sm:$0xff]  ;;  %v1021_v21 = vld [vmem:[#allocation5 + $0x1e08] sm:$0xff] }
  0xff   :  { %2469 = vmatpush1.bf16.msra.mxu0 %v2468_v33  ;;  %v948_v33 = vld [vmem:[#allocation5 + $0x1bc0] sm:$0xff]  ;;  %v1029_v22 = vld [vmem:[#allocation5 + $0x1e48] sm:$0xff] }
 0x100   :  { %2717 = vmatpush1.bf16.msra.mxu1 %v2716_v34  ;;  %2471 = vmatprep.subr.bf16.mxu0 %v2470_v35  ;;  %v942_v34 = vld [vmem:[#allocation5 + $0x1b90] sm:$0xff]  ;;  %v2738_v35 = vpack.c.bf16 %v951_v28, %v943_v27  ;;  %v2492_v41 = vpack.c.bf16 %v948_v33, %v940_v32  ;;  %v2510_v27 = vpack.c.bf16 %v1029_v22, %v1021_v21  ;;  %v1020_v28 = vld [vmem:[#allocation5 + $0x1e00] sm:$0xff]  ;;  %v1037_v33 = vld [vmem:[#allocation5 + $0x1e88] sm:$0xff] }
 0x101   :  { %2719 = vmatprep.subr.bf16.mxu1 %v2718_v39  ;;  %v959_v39 = vld [vmem:[#allocation5 + $0x1c18] sm:$0xff]  ;;  %v2740_v42 = vpack.c.bf16 %v950_v36, %v942_v34  ;;  %v1030_v32 = vld [vmem:[#allocation5 + $0x1e50] sm:$0xff]  ;;  %v1045_v34 = vld [vmem:[#allocation5 + $0x1ec8] sm:$0xff] }
 0x102   :  { %v1047_v36 = vld [vmem:[#allocation5 + $0x1ed8] sm:$0xff]  ;;  %v106_v21 = vld [vmem:[#allocation5 + $0x170] sm:$0xff]  ;;  %v113_v22 = vld [vmem:[#allocation5 + $0x1a8] sm:$0xff] }
 0x103   :  { %2473 = vmatpush1.bf16.msra.mxu0 %v2472_v45  ;;  %v964_v45 = vld [vmem:[#allocation5 + $0x1c40] sm:$0xff] }
 0x104   :  { %2721 = vmatpush1.bf16.msra.mxu1 %v2720_v46  ;;  %2475 = vmatprep.subr.bf16.mxu0 %v2474_v47  ;;  %v958_v46 = vld [vmem:[#allocation5 + $0x1c10] sm:$0xff]  ;;  %v2742_v47 = vpack.c.bf16 %v967_v40, %v959_v39  ;;  %v2496_v53 = vpack.c.bf16 %v964_v45, %v956_v44  ;;  %v2514_v39 = vpack.c.bf16 %v1045_v34, %v1037_v33  ;;  %v1036_v40 = vld [vmem:[#allocation5 + $0x1e80] sm:$0xff] }
 0x105   :  { %2723 = vmatprep.subr.bf16.mxu1 %v2722_v51  ;;  %v975_v51 = vld [vmem:[#allocation5 + $0x1c98] sm:$0xff]  ;;  %v2744_v54 = vpack.c.bf16 %v966_v48, %v958_v46  ;;  %v1046_v44 = vld [vmem:[#allocation5 + $0x1ed0] sm:$0xff] }
 0x106   :  { %v1055_v48 = vld [vmem:[#allocation5 + $0x1f18] sm:$0xff]  ;;  %v122_v34 = vld [vmem:[#allocation5 + $0x1f0] sm:$0xff] }
 0x107   :  { %2477 = vmatpush1.bf16.msra.mxu0 %v2476_v57  ;;  %v980_v57 = vld [vmem:[#allocation5 + $0x1cc0] sm:$0xff] }
 0x108   :  { %2725 = vmatpush1.bf16.msra.mxu1 %v2724_v58  ;;  %2479 = vmatprep.subr.bf16.mxu0 %v2478_v59  ;;  %v974_v58 = vld [vmem:[#allocation5 + $0x1c90] sm:$0xff]  ;;  %v2746_v59 = vpack.c.bf16 %v983_v52, %v975_v51  ;;  %v2500_v1 = vpack.c.bf16 %v980_v57, %v972_v56  ;;  %v73_v51 = vld [vmem:[#allocation5 + $0x68] sm:$0xff]  ;;  %v67_v52 = vld [vmem:[#allocation5 + $0x38] sm:$0xff] }
 0x109   :  { %2727 = vmatprep.subr.bf16.mxu1 %v2726_v63  ;;  %v991_v63 = vld [vmem:[#allocation5 + $0x1d18] sm:$0xff]  ;;  %v2748_v2 = vpack.c.bf16 %v982_v60, %v974_v58  ;;  %v72_v56 = vld [vmem:[#allocation5 + $0x60] sm:$0xff]  ;;  %v66_v57 = vld [vmem:[#allocation5 + $0x30] sm:$0xff]  ;;  %v2766_v62 = vpack.c.bf16 %v73_v51, %v65_v49 }
 0x10a   :  { %v74_v58 = vld [vmem:[#allocation5 + $0x70] sm:$0xff]  ;;  %v89_v60 = vld [vmem:[#allocation5 + $0xe8] sm:$0xff]  ;;  %v147_v49 = vld [vmem:[#allocation5 + $0x2b8] sm:$0xff] }
 0x10b   :  { %2481 = vmatpush1.bf16.msra.mxu0 %v2480_v5  ;;  %v996_v5 = vld [vmem:[#allocation5 + $0x1d40] sm:$0xff] }
 0x10c   :  { %2729 = vmatpush1.bf16.msra.mxu1 %v2728_v6  ;;  %2483 = vmatprep.subr.bf16.mxu0 %v2482_v7  ;;  %v990_v6 = vld [vmem:[#allocation5 + $0x1d10] sm:$0xff]  ;;  %v2750_v7 = vpack.c.bf16 %v999_v0, %v991_v63  ;;  %v2504_v13 = vpack.c.bf16 %v996_v5, %v988_v4  ;;  %v83_v63 = vld [vmem:[#allocation5 + $0xb8] sm:$0xff]  ;;  %v80_v5 = vld [vmem:[#allocation5 + $0xa0] sm:$0xff] }
 0x10d   :  { %2731 = vmatprep.subr.bf16.mxu1 %v2730_v11  ;;  %v1007_v11 = vld [vmem:[#allocation5 + $0x1d98] sm:$0xff]  ;;  %v2752_v14 = vpack.c.bf16 %v998_v8, %v990_v6  ;;  %v88_v6 = vld [vmem:[#allocation5 + $0xe0] sm:$0xff] }
 0x10e   :  { %v91_v0 = vld [vmem:[#allocation5 + $0xf8] sm:$0xff] }
 0x10f   :  { %2485 = vmatpush1.bf16.msra.mxu0 %v2484_v17  ;;  %v1012_v17 = vld [vmem:[#allocation5 + $0x1dc0] sm:$0xff]  ;;  %v3018_v8 = vpack.c.bf16 %v91_v0, %v83_v63 }
 0x110   :  { %2733 = vmatpush1.bf16.msra.mxu1 %v2732_v18  ;;  %2487 = vmatprep.subr.bf16.mxu0 %v2486_v19  ;;  %v1006_v18 = vld [vmem:[#allocation5 + $0x1d90] sm:$0xff]  ;;  %v2754_v19 = vpack.c.bf16 %v1015_v12, %v1007_v11  ;;  %v2508_v25 = vpack.c.bf16 %v1012_v17, %v1004_v16  ;;  %v105_v11 = vld [vmem:[#allocation5 + $0x168] sm:$0xff]  ;;  %v99_v12 = vld [vmem:[#allocation5 + $0x138] sm:$0xff] }
 0x111   :  { %2735 = vmatprep.subr.bf16.mxu1 %v2734_v23  ;;  %v1023_v23 = vld [vmem:[#allocation5 + $0x1e18] sm:$0xff]  ;;  %v2756_v26 = vpack.c.bf16 %v1014_v20, %v1006_v18  ;;  %v2774_v16 = vpack.c.bf16 %v105_v11, %v97_v10  ;;  %v96_v17 = vld [vmem:[#allocation5 + $0x120] sm:$0xff] }
 0x112   :  { %v104_v18 = vld [vmem:[#allocation5 + $0x160] sm:$0xff]  ;;  %v187_v10 = vld [vmem:[#allocation5 + $0x3f8] sm:$0xff] }
 0x113   :  { %2489 = vmatpush1.bf16.msra.mxu0 %v2488_v29  ;;  %v1028_v29 = vld [vmem:[#allocation5 + $0x1e40] sm:$0xff] }
 0x114   :  { %2737 = vmatpush1.bf16.msra.mxu1 %v2736_v30  ;;  %2491 = vmatprep.subr.bf16.mxu0 %v2490_v31  ;;  %v1022_v30 = vld [vmem:[#allocation5 + $0x1e10] sm:$0xff]  ;;  %v2758_v31 = vpack.c.bf16 %v1031_v24, %v1023_v23  ;;  %v2512_v37 = vpack.c.bf16 %v1028_v29, %v1020_v28  ;;  %v121_v23 = vld [vmem:[#allocation5 + $0x1e8] sm:$0xff] }
 0x115   :  { %2739 = vmatprep.subr.bf16.mxu1 %v2738_v35  ;;  %v1039_v35 = vld [vmem:[#allocation5 + $0x1e98] sm:$0xff]  ;;  %v2760_v38 = vpack.c.bf16 %v1030_v32, %v1022_v30  ;;  %v3300_v24 = vld [vmem:[#allocation2 + $0x8] sm:$0xff]  ;;  %v2778_v29 = vpack.c.bf16 %v121_v23, %v113_v22  ;;  %v112_v30 = vld [vmem:[#allocation5 + $0x1a0] sm:$0xff] }
 0x116   :  { %v114_v32 = vld [vmem:[#allocation5 + $0x1b0] sm:$0xff]  ;;  %v203_v22 = vld [vmem:[#allocation5 + $0x478] sm:$0xff] }
 0x117   :  { %2493 = vmatpush1.bf16.msra.mxu0 %v2492_v41  ;;  %v1044_v41 = vld [vmem:[#allocation5 + $0x1ec0] sm:$0xff] }
 0x118   :  { %2741 = vmatpush1.bf16.msra.mxu1 %v2740_v42  ;;  %2495 = vmatprep.subr.bf16.mxu0 %v2494_v43  ;;  %v2762_v42 = vpack.c.bf16 %v1047_v36, %v1039_v35  ;;  %v1038_v43 = vld [vmem:[#allocation5 + $0x1e90] sm:$0xff]  ;;  %v2516_v45 = vpack.c.bf16 %v1044_v41, %v1036_v40  ;;  %v129_v35 = vld [vmem:[#allocation5 + $0x228] sm:$0xff]  ;;  %v3028_v40 = vpack.c.bf16 %v122_v34, %v114_v32  ;;  %v219_v34 = vld [vmem:[#allocation5 + $0x4f8] sm:$0xff] }
 0x119   :  { %2743 = vmatprep.subr.bf16.mxu1 %v2742_v47  ;;  %v2764_v46 = vpack.c.bf16 %v1046_v44, %v1038_v43  ;;  %v1053_v47 = vld [vmem:[#allocation5 + $0x1f08] sm:$0xff]  ;;  %v136_v43 = vld [vmem:[#allocation5 + $0x260] sm:$0xff]  ;;  %v130_v44 = vld [vmem:[#allocation5 + $0x230] sm:$0xff] }
 0x11a   :  { %v137_v36 = vld [vmem:[#allocation5 + $0x268] sm:$0xff] }
 0x11b   :  { %2497 = vmatpush1.bf16.msra.mxu0 %v2496_v53  ;;  %v75_v53 = vld [vmem:[#allocation5 + $0x78] sm:$0xff]  ;;  %v2782_v41 = vpack.c.bf16 %v137_v36, %v129_v35  ;;  %v217_v32 = vld [vmem:[#allocation5 + $0x4e8] sm:$0xff] }
 0x11c   :  { %2745 = vmatpush1.bf16.msra.mxu1 %v2744_v54  ;;  %2499 = vmatprep.subr.bf16.mxu0 %v2498_v55  ;;  %v1054_v54 = vld [vmem:[#allocation5 + $0x1f10] sm:$0xff]  ;;  %v64_v55 = vld [vmem:[#allocation5 + $0x20] sm:$0xff] }
 0x11d   :  { %2747 = vmatprep.subr.bf16.mxu1 %v2746_v59  ;;  %v81_v59 = vld [vmem:[#allocation5 + $0xa8] sm:$0xff] }
 0x11e   :  { %v2770_v4 = vpack.c.bf16 %v89_v60, %v81_v59  ;;  %v161_v59 = vld [vmem:[#allocation5 + $0x328] sm:$0xff] }
 0x11f   :  { %2501 = vmatpush1.bf16.msra.mxu0 %v2500_v1  ;;  %v3014_v1 = vpack.c.bf16 %v75_v53, %v67_v52  ;;  %v169_v60 = vld [vmem:[#allocation5 + $0x368] sm:$0xff] }
 0x120   :  { %2749 = vmatpush1.bf16.msra.mxu1 %v2748_v2  ;;  %2503 = vmatprep.subr.bf16.mxu0 %v2502_v3  ;;  %v2768_v2 = vpack.c.bf16 %v72_v56, %v64_v55  ;;  %v3016_v3 = vpack.c.bf16 %v74_v58, %v66_v57  ;;  %v152_v55 = vld [vmem:[#allocation5 + $0x2e0] sm:$0xff]  ;;  %v146_v56 = vld [vmem:[#allocation5 + $0x2b0] sm:$0xff] }
 0x121   :  { %2751 = vmatprep.subr.bf16.mxu1 %v2750_v7  ;;  %v82_v7 = vld [vmem:[#allocation5 + $0xb0] sm:$0xff] }
 0x122   :  { %v154_v58 = vld [vmem:[#allocation5 + $0x2f0] sm:$0xff] }
 0x123   :  { %2505 = vmatpush1.bf16.msra.mxu0 %v2504_v13  ;;  %v107_v13 = vld [vmem:[#allocation5 + $0x178] sm:$0xff]  ;;  %v3036_v0 = vpack.c.bf16 %v154_v58, %v146_v56  ;;  %v249_v56 = vld [vmem:[#allocation5 + $0x5e8] sm:$0xff] }
 0x124   :  { %2753 = vmatpush1.bf16.msra.mxu1 %v2752_v14  ;;  %2507 = vmatprep.subr.bf16.mxu0 %v2506_v15  ;;  %v2772_v14 = vpack.c.bf16 %v88_v6, %v80_v5  ;;  %v3020_v15 = vpack.c.bf16 %v90_v9, %v82_v7  ;;  %v3022_v20 = vpack.c.bf16 %v107_v13, %v99_v12  ;;  %v170_v6 = vld [vmem:[#allocation5 + $0x370] sm:$0xff]  ;;  %v177_v7 = vld [vmem:[#allocation5 + $0x3a8] sm:$0xff]  ;;  %v179_v9 = vld [vmem:[#allocation5 + $0x3b8] sm:$0xff] }
 0x125   :  { %2755 = vmatprep.subr.bf16.mxu1 %v2754_v19  ;;  %v98_v19 = vld [vmem:[#allocation5 + $0x130] sm:$0xff]  ;;  %v251_v58 = vld [vmem:[#allocation5 + $0x5f8] sm:$0xff] }
 0x126   :  { %v3024_v28 = vpack.c.bf16 %v106_v21, %v98_v19  ;;  %v193_v19 = vld [vmem:[#allocation5 + $0x428] sm:$0xff]  ;;  %v195_v21 = vld [vmem:[#allocation5 + $0x438] sm:$0xff] }
 0x127   :  { %2509 = vmatpush1.bf16.msra.mxu0 %v2508_v25  ;;  %v115_v25 = vld [vmem:[#allocation5 + $0x1b8] sm:$0xff] }
 0x128   :  { %2757 = vmatpush1.bf16.msra.mxu1 %v2756_v26  ;;  %2511 = vmatprep.subr.bf16.mxu0 %v2510_v27  ;;  %v123_v26 = vld [vmem:[#allocation5 + $0x1f8] sm:$0xff]  ;;  %v2776_v27 = vpack.c.bf16 %v104_v18, %v96_v17  ;;  %v3042_v17 = vpack.c.bf16 %v187_v10, %v179_v9  ;;  %v186_v18 = vld [vmem:[#allocation5 + $0x3f0] sm:$0xff]  ;;  %v256_v10 = vld [vmem:[#allocation5 + $0x620] sm:$0xff] }
 0x129   :  { %2759 = vmatprep.subr.bf16.mxu1 %v2758_v31  ;;  %v120_v31 = vld [vmem:[#allocation5 + $0x1e0] sm:$0xff]  ;;  %v3026_v33 = vpack.c.bf16 %v123_v26, %v115_v25 }
 0x12a   :  { %v192_v26 = vld [vmem:[#allocation5 + $0x420] sm:$0xff] }
 0x12b   :  { %2513 = vmatpush1.bf16.msra.mxu0 %v2512_v37  ;;  %v131_v37 = vld [vmem:[#allocation5 + $0x238] sm:$0xff] }
 0x12c   :  { %2761 = vmatpush1.bf16.msra.mxu1 %v2760_v38  ;;  %2515 = vmatprep.subr.bf16.mxu0 %v2514_v39  ;;  %v139_v38 = vld [vmem:[#allocation5 + $0x278] sm:$0xff]  ;;  %v2780_v39 = vpack.c.bf16 %v120_v31, %v112_v30  ;;  %v202_v30 = vld [vmem:[#allocation5 + $0x470] sm:$0xff]  ;;  %v209_v31 = vld [vmem:[#allocation5 + $0x4a8] sm:$0xff] }
 0x12d   :  { %2763 = vmatprep.subr.bf16.mxu1 %v2762_v42  ;;  %v128_v42 = vld [vmem:[#allocation5 + $0x220] sm:$0xff] }
 0x12e   :  { %v2784_v51 = vpack.c.bf16 %v136_v43, %v128_v42  ;;  %v218_v42 = vld [vmem:[#allocation5 + $0x4f0] sm:$0xff]  ;;  %v225_v43 = vld [vmem:[#allocation5 + $0x528] sm:$0xff] }
 0x12f   :  { %2517 = vmatpush1.bf16.msra.mxu0 %v2516_v45  ;;  %v3030_v45 = vpack.c.bf16 %v139_v38, %v131_v37  ;;  %v2802_v37 = vpack.c.bf16 %v217_v32, %v209_v31  ;;  %v208_v38 = vld [vmem:[#allocation5 + $0x4a0] sm:$0xff] }
 0x130   :  { %2765 = vmatpush1.bf16.msra.mxu1 %v2764_v46  ;;  %1375 = vmatprep.subr.mxu0 %v1053_v47  ;;  %v138_v46 = vld [vmem:[#allocation5 + $0x270] sm:$0xff]  ;;  %v145_v47 = vld [vmem:[#allocation5 + $0x2a8] sm:$0xff] }
 0x131   :  { %1659 = vmatprep.subr.mxu1 %v1055_v48  ;;  %v153_v48 = vld [vmem:[#allocation5 + $0x2e8] sm:$0xff]  ;;  %v3032_v52 = vpack.c.bf16 %v138_v46, %v130_v44  ;;  %v235_v46 = vld [vmem:[#allocation5 + $0x578] sm:$0xff] }
 0x132   :  { %v2786_v53 = vpack.c.bf16 %v153_v48, %v145_v47  ;;  %v233_v44 = vld [vmem:[#allocation5 + $0x568] sm:$0xff] }
 0x133   :  { %1376 = vmatpush1.msra.mxu0 %v1052_v50  ;;  %v155_v50 = vld [vmem:[#allocation5 + $0x2f8] sm:$0xff] }
 0x134   :  { %1660 = vmatpush1.msra.mxu1 %v1054_v54  ;;  %1384 = vmatmul.mubr.f32.vlgmr.msra.gmra.mrb[0].mxu0 %v58_v61  ;;  %v144_v54 = vld [vmem:[#allocation5 + $0x2a0] sm:$0xff]  ;;  %v3034_v57 = vpack.c.bf16 %v155_v50, %v147_v49  ;;  %v2806_v49 = vpack.c.bf16 %v233_v44, %v225_v43 }
 0x135   :  { %1668 = vmatmul.mubr.f32.vlgmr.msra.gmra.mrb[0].mxu1 %v58_v61  ;;  %2767 = vmatprep.subr.bf16.mxu0 %v2766_v62  ;;  %v163_v61 = vld [vmem:[#allocation5 + $0x338] sm:$0xff]  ;;  %v2788_v63 = vpack.c.bf16 %v152_v55, %v144_v54  ;;  %v224_v50 = vld [vmem:[#allocation5 + $0x520] sm:$0xff]  ;;  %v234_v54 = vld [vmem:[#allocation5 + $0x570] sm:$0xff] }
 0x136   :  { %3015 = vmatprep.subr.bf16.mxu1 %v3014_v1  ;;  %2769 = vmatpush1.bf16.msra.mxu0 %v2768_v2  ;;  %v171_v62 = vld [vmem:[#allocation5 + $0x378] sm:$0xff]  ;;  %v2790_v1 = vpack.c.bf16 %v169_v60, %v161_v59  ;;  %v160_v2 = vld [vmem:[#allocation5 + $0x320] sm:$0xff]  ;;  %v241_v55 = vld [vmem:[#allocation5 + $0x5a8] sm:$0xff] }
 0x137   :  { %3017 = vmatpush1.bf16.msra.mxu1 %v3016_v3  ;;  %2771 = vmatprep.subr.bf16.mxu0 %v2770_v4  ;;  %v168_v3 = vld [vmem:[#allocation5 + $0x360] sm:$0xff]  ;;  %v162_v4 = vld [vmem:[#allocation5 + $0x330] sm:$0xff]  ;;  %v3038_v5 = vpack.c.bf16 %v171_v62, %v163_v61  ;;  %v2810_v61 = vpack.c.bf16 %v249_v56, %v241_v55 }
 0x138   :  { %3019 = vmatprep.subr.bf16.mxu1 %v3018_v8  ;;  %1738 = vmatprep.mubr.f32.mxu0 %v3300_v24  ;;  %v185_v8 = vld [vmem:[#allocation5 + $0x3e8] sm:$0xff]  ;;  %v2792_v11 = vpack.c.bf16 %v168_v3, %v160_v2  ;;  %v3040_v12 = vpack.c.bf16 %v170_v6, %v162_v4  ;;  %v240_v62 = vld [vmem:[#allocation5 + $0x5a0] sm:$0xff]  ;;  %v250_v2 = vld [vmem:[#allocation5 + $0x5f0] sm:$0xff] }
 0x139   :  { %2022 = vmatprep.mubr.f32.mxu1 %v3300_v24  ;;  %v2794_v13 = vpack.c.bf16 %v185_v8, %v177_v7  ;;  %v257_v3 = vld [vmem:[#allocation5 + $0x628] sm:$0xff]  ;;  %v267_v6 = vld [vmem:[#allocation5 + $0x678] sm:$0xff] }
 0x13a   :  { %2773 = vmatpush1.bf16.msra.mxu0 %v2772_v14  ;;  %v176_v14 = vld [vmem:[#allocation5 + $0x3a0] sm:$0xff]  ;;  %v265_v4 = vld [vmem:[#allocation5 + $0x668] sm:$0xff] }
 0x13b   :  { %3021 = vmatpush1.bf16.msra.mxu1 %v3020_v15  ;;  %2775 = vmatprep.subr.bf16.mxu0 %v2774_v16  ;;  %v184_v15 = vld [vmem:[#allocation5 + $0x3e0] sm:$0xff]  ;;  %v178_v16 = vld [vmem:[#allocation5 + $0x3b0] sm:$0xff]  ;;  %v2814_v9 = vpack.c.bf16 %v265_v4, %v257_v3 }
 0x13c   :  { %3023 = vmatprep.subr.bf16.mxu1 %v3022_v20  ;;  %v201_v20 = vld [vmem:[#allocation5 + $0x468] sm:$0xff]  ;;  %v2796_v23 = vpack.c.bf16 %v184_v15, %v176_v14  ;;  %v3044_v24 = vpack.c.bf16 %v186_v18, %v178_v16  ;;  %v266_v14 = vld [vmem:[#allocation5 + $0x670] sm:$0xff]  ;;  %v283_v18 = vld [vmem:[#allocation5 + $0x6f8] sm:$0xff] }
 0x13d   :  { %v2798_v25 = vpack.c.bf16 %v201_v20, %v193_v19  ;;  %v273_v15 = vld [vmem:[#allocation5 + $0x6a8] sm:$0xff] }
 0x13e   :  { %2777 = vmatpush1.bf16.msra.mxu0 %v2776_v27  ;;  %v200_v27 = vld [vmem:[#allocation5 + $0x460] sm:$0xff]  ;;  %v281_v16 = vld [vmem:[#allocation5 + $0x6e8] sm:$0xff] }
 0x13f   :  { %3025 = vmatpush1.bf16.msra.mxu1 %v3024_v28  ;;  %2779 = vmatprep.subr.bf16.mxu0 %v2778_v29  ;;  %v194_v28 = vld [vmem:[#allocation5 + $0x430] sm:$0xff]  ;;  %v3046_v29 = vpack.c.bf16 %v203_v22, %v195_v21  ;;  %v2800_v35 = vpack.c.bf16 %v200_v27, %v192_v26  ;;  %v2818_v21 = vpack.c.bf16 %v281_v16, %v273_v15  ;;  %v272_v22 = vld [vmem:[#allocation5 + $0x6a0] sm:$0xff]  ;;  %v289_v27 = vld [vmem:[#allocation5 + $0x728] sm:$0xff] }
 0x140   :  { %3027 = vmatprep.subr.bf16.mxu1 %v3026_v33  ;;  %v211_v33 = vld [vmem:[#allocation5 + $0x4b8] sm:$0xff]  ;;  %v3048_v36 = vpack.c.bf16 %v202_v30, %v194_v28  ;;  %v282_v26 = vld [vmem:[#allocation5 + $0x6f0] sm:$0xff]  ;;  %v297_v28 = vld [vmem:[#allocation5 + $0x768] sm:$0xff] }
 0x141   :  { %v299_v30 = vld [vmem:[#allocation5 + $0x778] sm:$0xff] }
 0x142   :  { %2781 = vmatpush1.bf16.msra.mxu0 %v2780_v39  ;;  %v216_v39 = vld [vmem:[#allocation5 + $0x4e0] sm:$0xff]  ;;  %v363_v15 = vld [vmem:[#allocation5 + $0x978] sm:$0xff] }
 0x143   :  { %3029 = vmatpush1.bf16.msra.mxu1 %v3028_v40  ;;  %2783 = vmatprep.subr.bf16.mxu0 %v2782_v41  ;;  %v210_v40 = vld [vmem:[#allocation5 + $0x4b0] sm:$0xff]  ;;  %v3050_v41 = vpack.c.bf16 %v219_v34, %v211_v33  ;;  %v2804_v47 = vpack.c.bf16 %v216_v39, %v208_v38  ;;  %v2822_v33 = vpack.c.bf16 %v297_v28, %v289_v27  ;;  %v288_v34 = vld [vmem:[#allocation5 + $0x720] sm:$0xff]  ;;  %v305_v39 = vld [vmem:[#allocation5 + $0x7a8] sm:$0xff] }
 0x144   :  { %3031 = vmatprep.subr.bf16.mxu1 %v3030_v45  ;;  %v227_v45 = vld [vmem:[#allocation5 + $0x538] sm:$0xff]  ;;  %v3052_v48 = vpack.c.bf16 %v218_v42, %v210_v40  ;;  %v298_v38 = vld [vmem:[#allocation5 + $0x770] sm:$0xff]  ;;  %v313_v40 = vld [vmem:[#allocation5 + $0x7e8] sm:$0xff] }
 0x145   :  { %v315_v42 = vld [vmem:[#allocation5 + $0x7f8] sm:$0xff] }
 0x146   :  { %2785 = vmatpush1.bf16.msra.mxu0 %v2784_v51  ;;  %v232_v51 = vld [vmem:[#allocation5 + $0x560] sm:$0xff]  ;;  %v371_v27 = vld [vmem:[#allocation5 + $0x9b8] sm:$0xff] }
 0x147   :  { %3033 = vmatpush1.bf16.msra.mxu1 %v3032_v52  ;;  %2787 = vmatprep.subr.bf16.mxu0 %v2786_v53  ;;  %v226_v52 = vld [vmem:[#allocation5 + $0x530] sm:$0xff]  ;;  %v3054_v53 = vpack.c.bf16 %v235_v46, %v227_v45  ;;  %v2808_v59 = vpack.c.bf16 %v232_v51, %v224_v50  ;;  %v2826_v45 = vpack.c.bf16 %v313_v40, %v305_v39  ;;  %v304_v46 = vld [vmem:[#allocation5 + $0x7a0] sm:$0xff]  ;;  %v321_v51 = vld [vmem:[#allocation5 + $0x828] sm:$0xff] }
 0x148   :  { %3035 = vmatprep.subr.bf16.mxu1 %v3034_v57  ;;  %v243_v57 = vld [vmem:[#allocation5 + $0x5b8] sm:$0xff]  ;;  %v3056_v60 = vpack.c.bf16 %v234_v54, %v226_v52  ;;  %v314_v50 = vld [vmem:[#allocation5 + $0x7f0] sm:$0xff]  ;;  %v329_v52 = vld [vmem:[#allocation5 + $0x868] sm:$0xff] }
 0x149   :  { %v331_v54 = vld [vmem:[#allocation5 + $0x878] sm:$0xff] }
 0x14a   :  { %2789 = vmatpush1.bf16.msra.mxu0 %v2788_v63  ;;  %v248_v63 = vld [vmem:[#allocation5 + $0x5e0] sm:$0xff]  ;;  %v379_v28 = vld [vmem:[#allocation5 + $0x9f8] sm:$0xff] }
 0x14b   :  { %3037 = vmatpush1.bf16.msra.mxu1 %v3036_v0  ;;  %2791 = vmatprep.subr.bf16.mxu0 %v2790_v1  ;;  %v242_v0 = vld [vmem:[#allocation5 + $0x5b0] sm:$0xff]  ;;  %v3058_v1 = vpack.c.bf16 %v251_v58, %v243_v57  ;;  %v2812_v7 = vpack.c.bf16 %v248_v63, %v240_v62  ;;  %v2830_v57 = vpack.c.bf16 %v329_v52, %v321_v51  ;;  %v320_v58 = vld [vmem:[#allocation5 + $0x820] sm:$0xff]  ;;  %v337_v63 = vld [vmem:[#allocation5 + $0x8a8] sm:$0xff] }
 0x14c   :  { %3039 = vmatprep.subr.bf16.mxu1 %v3038_v5  ;;  %v259_v5 = vld [vmem:[#allocation5 + $0x638] sm:$0xff]  ;;  %v3060_v8 = vpack.c.bf16 %v250_v2, %v242_v0  ;;  %v330_v62 = vld [vmem:[#allocation5 + $0x870] sm:$0xff]  ;;  %v345_v0 = vld [vmem:[#allocation5 + $0x8e8] sm:$0xff] }
 0x14d   :  { %v347_v2 = vld [vmem:[#allocation5 + $0x8f8] sm:$0xff] }
 0x14e   :  { %2793 = vmatpush1.bf16.msra.mxu0 %v2792_v11  ;;  %v264_v11 = vld [vmem:[#allocation5 + $0x660] sm:$0xff]  ;;  %v387_v39 = vld [vmem:[#allocation5 + $0xa38] sm:$0xff] }
 0x14f   :  { %3041 = vmatpush1.bf16.msra.mxu1 %v3040_v12  ;;  %2795 = vmatprep.subr.bf16.mxu0 %v2794_v13  ;;  %v258_v12 = vld [vmem:[#allocation5 + $0x630] sm:$0xff]  ;;  %v3062_v13 = vpack.c.bf16 %v267_v6, %v259_v5  ;;  %v2816_v19 = vpack.c.bf16 %v264_v11, %v256_v10  ;;  %v2834_v5 = vpack.c.bf16 %v345_v0, %v337_v63  ;;  %v336_v6 = vld [vmem:[#allocation5 + $0x8a0] sm:$0xff]  ;;  %v353_v11 = vld [vmem:[#allocation5 + $0x928] sm:$0xff] }
 0x150   :  { %3043 = vmatprep.subr.bf16.mxu1 %v3042_v17  ;;  %v275_v17 = vld [vmem:[#allocation5 + $0x6b8] sm:$0xff]  ;;  %v3064_v20 = vpack.c.bf16 %v266_v14, %v258_v12  ;;  %v346_v10 = vld [vmem:[#allocation5 + $0x8f0] sm:$0xff]  ;;  %v361_v12 = vld [vmem:[#allocation5 + $0x968] sm:$0xff] }
 0x151   :  { %v355_v14 = vld [vmem:[#allocation5 + $0x938] sm:$0xff] }
 0x152   :  { %2797 = vmatpush1.bf16.msra.mxu0 %v2796_v23  ;;  %v280_v23 = vld [vmem:[#allocation5 + $0x6e0] sm:$0xff]  ;;  %v395_v40 = vld [vmem:[#allocation5 + $0xa78] sm:$0xff] }
 0x153   :  { %3045 = vmatpush1.bf16.msra.mxu1 %v3044_v24  ;;  %2799 = vmatprep.subr.bf16.mxu0 %v2798_v25  ;;  %v274_v24 = vld [vmem:[#allocation5 + $0x6b0] sm:$0xff]  ;;  %v3066_v25 = vpack.c.bf16 %v283_v18, %v275_v17  ;;  %v2820_v31 = vpack.c.bf16 %v280_v23, %v272_v22  ;;  %v2838_v18 = vpack.c.bf16 %v361_v12, %v353_v11  ;;  %v403_v51 = vld [vmem:[#allocation5 + $0xab8] sm:$0xff] }
 0x154   :  { %3047 = vmatprep.subr.bf16.mxu1 %v3046_v29  ;;  %v291_v29 = vld [vmem:[#allocation5 + $0x738] sm:$0xff]  ;;  %v3068_v32 = vpack.c.bf16 %v282_v26, %v274_v24  ;;  %v3086_v22 = vpack.c.bf16 %v363_v15, %v355_v14  ;;  %v362_v23 = vld [vmem:[#allocation5 + $0x970] sm:$0xff]  ;;  %v369_v24 = vld [vmem:[#allocation5 + $0x9a8] sm:$0xff] }
 0x155   :  { %v3302_v26 = vld [vmem:[#allocation2 + $0x18] sm:$0xff] }
 0x156   :  { %2801 = vmatpush1.bf16.msra.mxu0 %v2800_v35  ;;  %v296_v35 = vld [vmem:[#allocation5 + $0x760] sm:$0xff]  ;;  %v411_v52 = vld [vmem:[#allocation5 + $0xaf8] sm:$0xff] }
 0x157   :  { %3049 = vmatpush1.bf16.msra.mxu1 %v3048_v36  ;;  %2803 = vmatprep.subr.bf16.mxu0 %v2802_v37  ;;  %v290_v36 = vld [vmem:[#allocation5 + $0x730] sm:$0xff]  ;;  %v3070_v37 = vpack.c.bf16 %v299_v30, %v291_v29  ;;  %v2824_v43 = vpack.c.bf16 %v296_v35, %v288_v34  ;;  %v3090_v35 = vpack.c.bf16 %v379_v28, %v371_v27  ;;  %v419_v63 = vld [vmem:[#allocation5 + $0xb38] sm:$0xff]  ;;  %v448_v28 = vld [vmem:[#allocation5 + $0xc20] sm:$0xff] }
 0x158   :  { %3051 = vmatprep.subr.bf16.mxu1 %v3050_v41  ;;  %v307_v41 = vld [vmem:[#allocation5 + $0x7b8] sm:$0xff]  ;;  %v3072_v44 = vpack.c.bf16 %v298_v38, %v290_v36  ;;  %v370_v34 = vld [vmem:[#allocation5 + $0x9b0] sm:$0xff]  ;;  %v393_v38 = vld [vmem:[#allocation5 + $0xa68] sm:$0xff] }
 0x159   :  { %v378_v36 = vld [vmem:[#allocation5 + $0x9f0] sm:$0xff]  ;;  %v427_v0 = vld [vmem:[#allocation5 + $0xb78] sm:$0xff] }
 0x15a   :  { %2805 = vmatpush1.bf16.msra.mxu0 %v2804_v47  ;;  %v312_v47 = vld [vmem:[#allocation5 + $0x7e0] sm:$0xff]  ;;  %v435_v11 = vld [vmem:[#allocation5 + $0xbb8] sm:$0xff] }
 0x15b   :  { %3053 = vmatpush1.bf16.msra.mxu1 %v3052_v48  ;;  %2807 = vmatprep.subr.bf16.mxu0 %v2806_v49  ;;  %v306_v48 = vld [vmem:[#allocation5 + $0x7b0] sm:$0xff]  ;;  %v3074_v49 = vpack.c.bf16 %v315_v42, %v307_v41  ;;  %v2828_v55 = vpack.c.bf16 %v312_v47, %v304_v46  ;;  %v3092_v42 = vpack.c.bf16 %v378_v36, %v370_v34  ;;  %v443_v12 = vld [vmem:[#allocation5 + $0xbf8] sm:$0xff]  ;;  %v473_v34 = vld [vmem:[#allocation5 + $0xce8] sm:$0xff] }
 0x15c   :  { %3055 = vmatprep.subr.bf16.mxu1 %v3054_v53  ;;  %v323_v53 = vld [vmem:[#allocation5 + $0x838] sm:$0xff]  ;;  %v3076_v56 = vpack.c.bf16 %v314_v50, %v306_v48  ;;  %v386_v46 = vld [vmem:[#allocation5 + $0xa30] sm:$0xff]  ;;  %v3094_v47 = vpack.c.bf16 %v395_v40, %v387_v39  ;;  %v409_v50 = vld [vmem:[#allocation5 + $0xae8] sm:$0xff] }
 0x15d   :  { %v394_v48 = vld [vmem:[#allocation5 + $0xa70] sm:$0xff]  ;;  %v475_v36 = vld [vmem:[#allocation5 + $0xcf8] sm:$0xff]  ;;  %v464_v40 = vld [vmem:[#allocation5 + $0xca0] sm:$0xff] }
 0x15e   :  { %2809 = vmatpush1.bf16.msra.mxu0 %v2808_v59  ;;  %v328_v59 = vld [vmem:[#allocation5 + $0x860] sm:$0xff] }
 0x15f   :  { %3057 = vmatpush1.bf16.msra.mxu1 %v3056_v60  ;;  %2811 = vmatprep.subr.bf16.mxu0 %v2810_v61  ;;  %v322_v60 = vld [vmem:[#allocation5 + $0x830] sm:$0xff]  ;;  %v3078_v61 = vpack.c.bf16 %v331_v54, %v323_v53  ;;  %v2832_v3 = vpack.c.bf16 %v328_v59, %v320_v58  ;;  %v3096_v54 = vpack.c.bf16 %v394_v48, %v386_v46  ;;  %v489_v46 = vld [vmem:[#allocation5 + $0xd68] sm:$0xff]  ;;  %v491_v48 = vld [vmem:[#allocation5 + $0xd78] sm:$0xff] }
 0x160   :  { %3059 = vmatprep.subr.bf16.mxu1 %v3058_v1  ;;  %v339_v1 = vld [vmem:[#allocation5 + $0x8b8] sm:$0xff]  ;;  %v3080_v4 = vpack.c.bf16 %v330_v62, %v322_v60  ;;  %v402_v58 = vld [vmem:[#allocation5 + $0xab0] sm:$0xff]  ;;  %v3098_v59 = vpack.c.bf16 %v411_v52, %v403_v51  ;;  %v425_v62 = vld [vmem:[#allocation5 + $0xb68] sm:$0xff] }
 0x161   :  { %v410_v60 = vld [vmem:[#allocation5 + $0xaf0] sm:$0xff]  ;;  %v480_v52 = vld [vmem:[#allocation5 + $0xd20] sm:$0xff] }
 0x162   :  { %2813 = vmatpush1.bf16.msra.mxu0 %v2812_v7  ;;  %v344_v7 = vld [vmem:[#allocation5 + $0x8e0] sm:$0xff] }
 0x163   :  { %3061 = vmatpush1.bf16.msra.mxu1 %v3060_v8  ;;  %2815 = vmatprep.subr.bf16.mxu0 %v2814_v9  ;;  %v338_v8 = vld [vmem:[#allocation5 + $0x8b0] sm:$0xff]  ;;  %v3082_v9 = vpack.c.bf16 %v347_v2, %v339_v1  ;;  %v2836_v16 = vpack.c.bf16 %v344_v7, %v336_v6  ;;  %v3100_v2 = vpack.c.bf16 %v410_v60, %v402_v58  ;;  %v505_v58 = vld [vmem:[#allocation5 + $0xde8] sm:$0xff]  ;;  %v507_v60 = vld [vmem:[#allocation5 + $0xdf8] sm:$0xff] }
 0x164   :  { %3063 = vmatprep.subr.bf16.mxu1 %v3062_v13  ;;  %v3301_v13 = vld [vmem:[#allocation2] sm:$0xff]  ;;  %v3084_v17 = vpack.c.bf16 %v346_v10, %v338_v8  ;;  %v418_v6 = vld [vmem:[#allocation5 + $0xb30] sm:$0xff]  ;;  %v3102_v7 = vpack.c.bf16 %v427_v0, %v419_v63  ;;  %v441_v10 = vld [vmem:[#allocation5 + $0xbe8] sm:$0xff] }
 0x165   :  { %v426_v8 = vld [vmem:[#allocation5 + $0xb70] sm:$0xff]  ;;  %v496_v0 = vld [vmem:[#allocation5 + $0xda0] sm:$0xff] }
 0x166   :  { %2817 = vmatpush1.bf16.msra.mxu0 %v2816_v19  ;;  %v352_v19 = vld [vmem:[#allocation5 + $0x920] sm:$0xff]  ;;  %v3104_v14 = vpack.c.bf16 %v426_v8, %v418_v6  ;;  %v521_v6 = vld [vmem:[#allocation5 + $0xe68] sm:$0xff]  ;;  %v523_v8 = vld [vmem:[#allocation5 + $0xe78] sm:$0xff] }
 0x167   :  { %3065 = vmatpush1.bf16.msra.mxu1 %v3064_v20  ;;  %2819 = vmatprep.subr.bf16.mxu0 %v2818_v21  ;;  %v360_v20 = vld [vmem:[#allocation5 + $0x960] sm:$0xff]  ;;  %v354_v21 = vld [vmem:[#allocation5 + $0x930] sm:$0xff] }
 0x168   :  { %3067 = vmatprep.subr.bf16.mxu1 %v3066_v25  ;;  %v377_v25 = vld [vmem:[#allocation5 + $0x9e8] sm:$0xff]  ;;  %v2840_v29 = vpack.c.bf16 %v360_v20, %v352_v19  ;;  %v3088_v30 = vpack.c.bf16 %v362_v23, %v354_v21  ;;  %v3106_v19 = vpack.c.bf16 %v443_v12, %v435_v11  ;;  %v442_v20 = vld [vmem:[#allocation5 + $0xbf0] sm:$0xff]  ;;  %v451_v23 = vld [vmem:[#allocation5 + $0xc38] sm:$0xff] }
 0x169   :  { %v449_v21 = vld [vmem:[#allocation5 + $0xc28] sm:$0xff]  ;;  %v512_v12 = vld [vmem:[#allocation5 + $0xe20] sm:$0xff] }
 0x16a   :  { %2821 = vmatpush1.bf16.msra.mxu0 %v2820_v31  ;;  %v2842_v31 = vpack.c.bf16 %v377_v25, %v369_v24  ;;  %v459_v24 = vld [vmem:[#allocation5 + $0xc78] sm:$0xff] }
 0x16b   :  { %3069 = vmatpush1.bf16.msra.mxu1 %v3068_v32  ;;  %2823 = vmatprep.subr.bf16.mxu0 %v2822_v33  ;;  %v368_v32 = vld [vmem:[#allocation5 + $0x9a0] sm:$0xff] }
 0x16c   :  { %3071 = vmatprep.subr.bf16.mxu1 %v3070_v37  ;;  %v376_v33 = vld [vmem:[#allocation5 + $0x9e0] sm:$0xff]  ;;  %v385_v37 = vld [vmem:[#allocation5 + $0xa28] sm:$0xff] }
 0x16d   :  { %v2844_v41 = vpack.c.bf16 %v376_v33, %v368_v32  ;;  %v458_v32 = vld [vmem:[#allocation5 + $0xc70] sm:$0xff]  ;;  %v465_v33 = vld [vmem:[#allocation5 + $0xca8] sm:$0xff] }
 0x16e   :  { %2825 = vmatpush1.bf16.msra.mxu0 %v2824_v43  ;;  %v2846_v43 = vpack.c.bf16 %v393_v38, %v385_v37  ;;  %v2866_v39 = vpack.c.bf16 %v473_v34, %v465_v33 }
 0x16f   :  { %3073 = vmatpush1.bf16.msra.mxu1 %v3072_v44  ;;  %2827 = vmatprep.subr.bf16.mxu0 %v2826_v45  ;;  %v384_v44 = vld [vmem:[#allocation5 + $0xa20] sm:$0xff] }
 0x170   :  { %3075 = vmatprep.subr.bf16.mxu1 %v3074_v49  ;;  %v392_v45 = vld [vmem:[#allocation5 + $0xa60] sm:$0xff]  ;;  %v401_v49 = vld [vmem:[#allocation5 + $0xaa8] sm:$0xff] }
 0x171   :  { %v2848_v53 = vpack.c.bf16 %v392_v45, %v384_v44  ;;  %v474_v44 = vld [vmem:[#allocation5 + $0xcf0] sm:$0xff]  ;;  %v481_v45 = vld [vmem:[#allocation5 + $0xd28] sm:$0xff] }
 0x172   :  { %2829 = vmatpush1.bf16.msra.mxu0 %v2828_v55  ;;  %v2850_v55 = vpack.c.bf16 %v409_v50, %v401_v49  ;;  %v2870_v51 = vpack.c.bf16 %v489_v46, %v481_v45 }
 0x173   :  { %3077 = vmatpush1.bf16.msra.mxu1 %v3076_v56  ;;  %2831 = vmatprep.subr.bf16.mxu0 %v2830_v57  ;;  %v400_v56 = vld [vmem:[#allocation5 + $0xaa0] sm:$0xff] }
 0x174   :  { %3079 = vmatprep.subr.bf16.mxu1 %v3078_v61  ;;  %v408_v57 = vld [vmem:[#allocation5 + $0xae0] sm:$0xff]  ;;  %v417_v61 = vld [vmem:[#allocation5 + $0xb28] sm:$0xff] }
 0x175   :  { %1739 = vmatmul.mubr.f32.vlgmr.msra.gmra.mrb[2].mxu0 %v3301_v13  ;;  %v2852_v1 = vpack.c.bf16 %v408_v57, %v400_v56  ;;  %v490_v56 = vld [vmem:[#allocation5 + $0xd70] sm:$0xff]  ;;  %v497_v57 = vld [vmem:[#allocation5 + $0xda8] sm:$0xff] }
 0x176   :  { %2833 = vmatpush1.bf16.msra.mxu0 %v2832_v3  ;;  %2023 = vmatmul.mubr.f32.vlgmr.msra.gmra.mrb[2].mxu1 %v3301_v13  ;;  %v2854_v3 = vpack.c.bf16 %v425_v62, %v417_v61  ;;  %v2874_v63 = vpack.c.bf16 %v505_v58, %v497_v57 }
 0x177   :  { %3081 = vmatpush1.bf16.msra.mxu1 %v3080_v4  ;;  %2835 = vmatprep.subr.bf16.mxu0 %v2834_v5  ;;  %v416_v4 = vld [vmem:[#allocation5 + $0xb20] sm:$0xff] }
 0x178   :  { %3083 = vmatprep.subr.bf16.mxu1 %v3082_v9  ;;  %1809 = vmatprep.mubr.f32.mxu0 %v3302_v26  ;;  %v424_v5 = vld [vmem:[#allocation5 + $0xb60] sm:$0xff]  ;;  %v433_v9 = vld [vmem:[#allocation5 + $0xba8] sm:$0xff] }
 0x179   :  { %2093 = vmatprep.mubr.f32.mxu1 %v3302_v26  ;;  %v2856_v13 = vpack.c.bf16 %v424_v5, %v416_v4  ;;  %v2858_v15 = vpack.c.bf16 %v441_v10, %v433_v9  ;;  %v506_v4 = vld [vmem:[#allocation5 + $0xdf0] sm:$0xff]  ;;  %v513_v5 = vld [vmem:[#allocation5 + $0xe28] sm:$0xff] }
 0x17a   :  { %2837 = vmatpush1.bf16.msra.mxu0 %v2836_v16  ;;  %v432_v16 = vld [vmem:[#allocation5 + $0xba0] sm:$0xff]  ;;  %v2878_v11 = vpack.c.bf16 %v521_v6, %v513_v5 }
 0x17b   :  { %3085 = vmatpush1.bf16.msra.mxu1 %v3084_v17  ;;  %2839 = vmatprep.subr.bf16.mxu0 %v2838_v18  ;;  %v440_v17 = vld [vmem:[#allocation5 + $0xbe0] sm:$0xff]  ;;  %v434_v18 = vld [vmem:[#allocation5 + $0xbb0] sm:$0xff] }
 0x17c   :  { %3087 = vmatprep.subr.bf16.mxu1 %v3086_v22  ;;  %v457_v22 = vld [vmem:[#allocation5 + $0xc68] sm:$0xff]  ;;  %v2860_v25 = vpack.c.bf16 %v440_v17, %v432_v16  ;;  %v3108_v26 = vpack.c.bf16 %v442_v20, %v434_v18  ;;  %v522_v16 = vld [vmem:[#allocation5 + $0xe70] sm:$0xff]  ;;  %v539_v20 = vld [vmem:[#allocation5 + $0xef8] sm:$0xff] }
 0x17d   :  { %v2862_v27 = vpack.c.bf16 %v457_v22, %v449_v21  ;;  %v529_v17 = vld [vmem:[#allocation5 + $0xea8] sm:$0xff] }
 0x17e   :  { %2841 = vmatpush1.bf16.msra.mxu0 %v2840_v29  ;;  %v456_v29 = vld [vmem:[#allocation5 + $0xc60] sm:$0xff]  ;;  %v537_v18 = vld [vmem:[#allocation5 + $0xee8] sm:$0xff] }
 0x17f   :  { %3089 = vmatpush1.bf16.msra.mxu1 %v3088_v30  ;;  %2843 = vmatprep.subr.bf16.mxu0 %v2842_v31  ;;  %v450_v30 = vld [vmem:[#allocation5 + $0xc30] sm:$0xff]  ;;  %v3110_v31 = vpack.c.bf16 %v459_v24, %v451_v23  ;;  %v2864_v37 = vpack.c.bf16 %v456_v29, %v448_v28  ;;  %v2882_v23 = vpack.c.bf16 %v537_v18, %v529_v17  ;;  %v528_v24 = vld [vmem:[#allocation5 + $0xea0] sm:$0xff]  ;;  %v545_v29 = vld [vmem:[#allocation5 + $0xf28] sm:$0xff] }
 0x180   :  { %3091 = vmatprep.subr.bf16.mxu1 %v3090_v35  ;;  %v467_v35 = vld [vmem:[#allocation5 + $0xcb8] sm:$0xff]  ;;  %v3112_v38 = vpack.c.bf16 %v458_v32, %v450_v30  ;;  %v538_v28 = vld [vmem:[#allocation5 + $0xef0] sm:$0xff]  ;;  %v553_v30 = vld [vmem:[#allocation5 + $0xf68] sm:$0xff] }
 0x181   :  { %v555_v32 = vld [vmem:[#allocation5 + $0xf78] sm:$0xff] }
 0x182   :  { %2845 = vmatpush1.bf16.msra.mxu0 %v2844_v41  ;;  %v472_v41 = vld [vmem:[#allocation5 + $0xce0] sm:$0xff]  ;;  %v619_v17 = vld [vmem:[#allocation5 + $0x1178] sm:$0xff] }
 0x183   :  { %3093 = vmatpush1.bf16.msra.mxu1 %v3092_v42  ;;  %2847 = vmatprep.subr.bf16.mxu0 %v2846_v43  ;;  %v466_v42 = vld [vmem:[#allocation5 + $0xcb0] sm:$0xff]  ;;  %v3114_v43 = vpack.c.bf16 %v475_v36, %v467_v35  ;;  %v2868_v49 = vpack.c.bf16 %v472_v41, %v464_v40  ;;  %v2886_v35 = vpack.c.bf16 %v553_v30, %v545_v29  ;;  %v544_v36 = vld [vmem:[#allocation5 + $0xf20] sm:$0xff]  ;;  %v561_v41 = vld [vmem:[#allocation5 + $0xfa8] sm:$0xff] }
 0x184   :  { %3095 = vmatprep.subr.bf16.mxu1 %v3094_v47  ;;  %v483_v47 = vld [vmem:[#allocation5 + $0xd38] sm:$0xff]  ;;  %v3116_v50 = vpack.c.bf16 %v474_v44, %v466_v42  ;;  %v554_v40 = vld [vmem:[#allocation5 + $0xf70] sm:$0xff]  ;;  %v569_v42 = vld [vmem:[#allocation5 + $0xfe8] sm:$0xff] }
 0x185   :  { %v571_v44 = vld [vmem:[#allocation5 + $0xff8] sm:$0xff] }
 0x186   :  { %2849 = vmatpush1.bf16.msra.mxu0 %v2848_v53  ;;  %v488_v53 = vld [vmem:[#allocation5 + $0xd60] sm:$0xff]  ;;  %v627_v29 = vld [vmem:[#allocation5 + $0x11b8] sm:$0xff] }
 0x187   :  { %3097 = vmatpush1.bf16.msra.mxu1 %v3096_v54  ;;  %2851 = vmatprep.subr.bf16.mxu0 %v2850_v55  ;;  %v482_v54 = vld [vmem:[#allocation5 + $0xd30] sm:$0xff]  ;;  %v3118_v55 = vpack.c.bf16 %v491_v48, %v483_v47  ;;  %v2872_v61 = vpack.c.bf16 %v488_v53, %v480_v52  ;;  %v2890_v47 = vpack.c.bf16 %v569_v42, %v561_v41  ;;  %v560_v48 = vld [vmem:[#allocation5 + $0xfa0] sm:$0xff]  ;;  %v577_v53 = vld [vmem:[#allocation5 + $0x1028] sm:$0xff] }
 0x188   :  { %3099 = vmatprep.subr.bf16.mxu1 %v3098_v59  ;;  %v499_v59 = vld [vmem:[#allocation5 + $0xdb8] sm:$0xff]  ;;  %v3120_v62 = vpack.c.bf16 %v490_v56, %v482_v54  ;;  %v570_v52 = vld [vmem:[#allocation5 + $0xff0] sm:$0xff]  ;;  %v585_v54 = vld [vmem:[#allocation5 + $0x1068] sm:$0xff] }
 0x189   :  { %v587_v56 = vld [vmem:[#allocation5 + $0x1078] sm:$0xff] }
 0x18a   :  { %2853 = vmatpush1.bf16.msra.mxu0 %v2852_v1  ;;  %v504_v1 = vld [vmem:[#allocation5 + $0xde0] sm:$0xff]  ;;  %v635_v30 = vld [vmem:[#allocation5 + $0x11f8] sm:$0xff] }
 0x18b   :  { %3101 = vmatpush1.bf16.msra.mxu1 %v3100_v2  ;;  %2855 = vmatprep.subr.bf16.mxu0 %v2854_v3  ;;  %v498_v2 = vld [vmem:[#allocation5 + $0xdb0] sm:$0xff]  ;;  %v3122_v3 = vpack.c.bf16 %v507_v60, %v499_v59  ;;  %v2876_v9 = vpack.c.bf16 %v504_v1, %v496_v0  ;;  %v2894_v59 = vpack.c.bf16 %v585_v54, %v577_v53  ;;  %v576_v60 = vld [vmem:[#allocation5 + $0x1020] sm:$0xff]  ;;  %v593_v1 = vld [vmem:[#allocation5 + $0x10a8] sm:$0xff] }
 0x18c   :  { %3103 = vmatprep.subr.bf16.mxu1 %v3102_v7  ;;  %v515_v7 = vld [vmem:[#allocation5 + $0xe38] sm:$0xff]  ;;  %v3124_v10 = vpack.c.bf16 %v506_v4, %v498_v2  ;;  %v586_v0 = vld [vmem:[#allocation5 + $0x1070] sm:$0xff]  ;;  %v601_v2 = vld [vmem:[#allocation5 + $0x10e8] sm:$0xff] }
 0x18d   :  { %v603_v4 = vld [vmem:[#allocation5 + $0x10f8] sm:$0xff] }
 0x18e   :  { %2857 = vmatpush1.bf16.msra.mxu0 %v2856_v13  ;;  %v520_v13 = vld [vmem:[#allocation5 + $0xe60] sm:$0xff]  ;;  %v643_v41 = vld [vmem:[#allocation5 + $0x1238] sm:$0xff] }
 0x18f   :  { %3105 = vmatpush1.bf16.msra.mxu1 %v3104_v14  ;;  %2859 = vmatprep.subr.bf16.mxu0 %v2858_v15  ;;  %v514_v14 = vld [vmem:[#allocation5 + $0xe30] sm:$0xff]  ;;  %v3126_v15 = vpack.c.bf16 %v523_v8, %v515_v7  ;;  %v2880_v21 = vpack.c.bf16 %v520_v13, %v512_v12  ;;  %v2898_v7 = vpack.c.bf16 %v601_v2, %v593_v1  ;;  %v592_v8 = vld [vmem:[#allocation5 + $0x10a0] sm:$0xff]  ;;  %v609_v13 = vld [vmem:[#allocation5 + $0x1128] sm:$0xff] }
 0x190   :  { %3107 = vmatprep.subr.bf16.mxu1 %v3106_v19  ;;  %v531_v19 = vld [vmem:[#allocation5 + $0xeb8] sm:$0xff]  ;;  %v3128_v22 = vpack.c.bf16 %v522_v16, %v514_v14  ;;  %v602_v12 = vld [vmem:[#allocation5 + $0x10f0] sm:$0xff]  ;;  %v617_v14 = vld [vmem:[#allocation5 + $0x1168] sm:$0xff] }
 0x191   :  { %v611_v16 = vld [vmem:[#allocation5 + $0x1138] sm:$0xff] }
 0x192   :  { %2861 = vmatpush1.bf16.msra.mxu0 %v2860_v25  ;;  %v536_v25 = vld [vmem:[#allocation5 + $0xee0] sm:$0xff]  ;;  %v651_v42 = vld [vmem:[#allocation5 + $0x1278] sm:$0xff] }
 0x193   :  { %3109 = vmatpush1.bf16.msra.mxu1 %v3108_v26  ;;  %2863 = vmatprep.subr.bf16.mxu0 %v2862_v27  ;;  %v530_v26 = vld [vmem:[#allocation5 + $0xeb0] sm:$0xff]  ;;  %v3130_v27 = vpack.c.bf16 %v539_v20, %v531_v19  ;;  %v2884_v33 = vpack.c.bf16 %v536_v25, %v528_v24  ;;  %v2902_v20 = vpack.c.bf16 %v617_v14, %v609_v13  ;;  %v659_v53 = vld [vmem:[#allocation5 + $0x12b8] sm:$0xff] }
 0x194   :  { %3111 = vmatprep.subr.bf16.mxu1 %v3110_v31  ;;  %v547_v31 = vld [vmem:[#allocation5 + $0xf38] sm:$0xff]  ;;  %v3132_v34 = vpack.c.bf16 %v538_v28, %v530_v26  ;;  %v3150_v24 = vpack.c.bf16 %v619_v17, %v611_v16  ;;  %v618_v25 = vld [vmem:[#allocation5 + $0x1170] sm:$0xff]  ;;  %v625_v26 = vld [vmem:[#allocation5 + $0x11a8] sm:$0xff] }
 0x195   :  { %v3304_v28 = vld [vmem:[#allocation2 + $0x28] sm:$0xff]  ;;  %v667_v54 = vld [vmem:[#allocation5 + $0x12f8] sm:$0xff] }
 0x196   :  { %2865 = vmatpush1.bf16.msra.mxu0 %v2864_v37  ;;  %v552_v37 = vld [vmem:[#allocation5 + $0xf60] sm:$0xff]  ;;  %v675_v1 = vld [vmem:[#allocation5 + $0x1338] sm:$0xff] }
 0x197   :  { %3113 = vmatpush1.bf16.msra.mxu1 %v3112_v38  ;;  %2867 = vmatprep.subr.bf16.mxu0 %v2866_v39  ;;  %v546_v38 = vld [vmem:[#allocation5 + $0xf30] sm:$0xff]  ;;  %v3134_v39 = vpack.c.bf16 %v555_v32, %v547_v31  ;;  %v2888_v45 = vpack.c.bf16 %v552_v37, %v544_v36  ;;  %v3154_v37 = vpack.c.bf16 %v635_v30, %v627_v29  ;;  %v683_v2 = vld [vmem:[#allocation5 + $0x1378] sm:$0xff]  ;;  %v704_v30 = vld [vmem:[#allocation5 + $0x1420] sm:$0xff] }
 0x198   :  { %3115 = vmatprep.subr.bf16.mxu1 %v3114_v43  ;;  %v563_v43 = vld [vmem:[#allocation5 + $0xfb8] sm:$0xff]  ;;  %v3136_v46 = vpack.c.bf16 %v554_v40, %v546_v38  ;;  %v626_v36 = vld [vmem:[#allocation5 + $0x11b0] sm:$0xff]  ;;  %v649_v40 = vld [vmem:[#allocation5 + $0x1268] sm:$0xff] }
 0x199   :  { %v634_v38 = vld [vmem:[#allocation5 + $0x11f0] sm:$0xff]  ;;  %v691_v13 = vld [vmem:[#allocation5 + $0x13b8] sm:$0xff] }
 0x19a   :  { %2869 = vmatpush1.bf16.msra.mxu0 %v2868_v49  ;;  %v568_v49 = vld [vmem:[#allocation5 + $0xfe0] sm:$0xff]  ;;  %v699_v14 = vld [vmem:[#allocation5 + $0x13f8] sm:$0xff] }
 0x19b   :  { %3117 = vmatpush1.bf16.msra.mxu1 %v3116_v50  ;;  %2871 = vmatprep.subr.bf16.mxu0 %v2870_v51  ;;  %v562_v50 = vld [vmem:[#allocation5 + $0xfb0] sm:$0xff]  ;;  %v3138_v51 = vpack.c.bf16 %v571_v44, %v563_v43  ;;  %v2892_v57 = vpack.c.bf16 %v568_v49, %v560_v48  ;;  %v3156_v44 = vpack.c.bf16 %v634_v38, %v626_v36  ;;  %v729_v36 = vld [vmem:[#allocation5 + $0x14e8] sm:$0xff]  ;;  %v731_v38 = vld [vmem:[#allocation5 + $0x14f8] sm:$0xff] }
 0x19c   :  { %3119 = vmatprep.subr.bf16.mxu1 %v3118_v55  ;;  %v579_v55 = vld [vmem:[#allocation5 + $0x1038] sm:$0xff]  ;;  %v3140_v58 = vpack.c.bf16 %v570_v52, %v562_v50  ;;  %v642_v48 = vld [vmem:[#allocation5 + $0x1230] sm:$0xff]  ;;  %v3158_v49 = vpack.c.bf16 %v651_v42, %v643_v41  ;;  %v665_v52 = vld [vmem:[#allocation5 + $0x12e8] sm:$0xff] }
 0x19d   :  { %v650_v50 = vld [vmem:[#allocation5 + $0x1270] sm:$0xff]  ;;  %v720_v42 = vld [vmem:[#allocation5 + $0x14a0] sm:$0xff] }
 0x19e   :  { %2873 = vmatpush1.bf16.msra.mxu0 %v2872_v61  ;;  %v584_v61 = vld [vmem:[#allocation5 + $0x1060] sm:$0xff] }
 0x19f   :  { %3121 = vmatpush1.bf16.msra.mxu1 %v3120_v62  ;;  %2875 = vmatprep.subr.bf16.mxu0 %v2874_v63  ;;  %v578_v62 = vld [vmem:[#allocation5 + $0x1030] sm:$0xff]  ;;  %v3142_v63 = vpack.c.bf16 %v587_v56, %v579_v55  ;;  %v2896_v5 = vpack.c.bf16 %v584_v61, %v576_v60  ;;  %v3160_v56 = vpack.c.bf16 %v650_v50, %v642_v48  ;;  %v745_v48 = vld [vmem:[#allocation5 + $0x1568] sm:$0xff]  ;;  %v747_v50 = vld [vmem:[#allocation5 + $0x1578] sm:$0xff] }
 0x1a0   :  { %3123 = vmatprep.subr.bf16.mxu1 %v3122_v3  ;;  %v595_v3 = vld [vmem:[#allocation5 + $0x10b8] sm:$0xff]  ;;  %v3144_v6 = vpack.c.bf16 %v586_v0, %v578_v62  ;;  %v658_v60 = vld [vmem:[#allocation5 + $0x12b0] sm:$0xff]  ;;  %v3162_v61 = vpack.c.bf16 %v667_v54, %v659_v53  ;;  %v681_v0 = vld [vmem:[#allocation5 + $0x1368] sm:$0xff] }
 0x1a1   :  { %v666_v62 = vld [vmem:[#allocation5 + $0x12f0] sm:$0xff]  ;;  %v736_v54 = vld [vmem:[#allocation5 + $0x1520] sm:$0xff] }
 0x1a2   :  { %2877 = vmatpush1.bf16.msra.mxu0 %v2876_v9  ;;  %v600_v9 = vld [vmem:[#allocation5 + $0x10e0] sm:$0xff] }
 0x1a3   :  { %3125 = vmatpush1.bf16.msra.mxu1 %v3124_v10  ;;  %2879 = vmatprep.subr.bf16.mxu0 %v2878_v11  ;;  %v594_v10 = vld [vmem:[#allocation5 + $0x10b0] sm:$0xff]  ;;  %v3146_v11 = vpack.c.bf16 %v603_v4, %v595_v3  ;;  %v2900_v18 = vpack.c.bf16 %v600_v9, %v592_v8  ;;  %v3164_v4 = vpack.c.bf16 %v666_v62, %v658_v60  ;;  %v761_v60 = vld [vmem:[#allocation5 + $0x15e8] sm:$0xff]  ;;  %v763_v62 = vld [vmem:[#allocation5 + $0x15f8] sm:$0xff] }
 0x1a4   :  { %3127 = vmatprep.subr.bf16.mxu1 %v3126_v15  ;;  %v3303_v15 = vld [vmem:[#allocation2 + $0x10] sm:$0xff]  ;;  %v3148_v19 = vpack.c.bf16 %v602_v12, %v594_v10  ;;  %v3166_v9 = vpack.c.bf16 %v683_v2, %v675_v1  ;;  %v697_v12 = vld [vmem:[#allocation5 + $0x13e8] sm:$0xff]  ;;  %v752_v2 = vld [vmem:[#allocation5 + $0x15a0] sm:$0xff] }
 0x1a5   :  { %v674_v8 = vld [vmem:[#allocation5 + $0x1330] sm:$0xff] }
 0x1a6   :  { %2881 = vmatpush1.bf16.msra.mxu0 %v2880_v21  ;;  %v608_v21 = vld [vmem:[#allocation5 + $0x1120] sm:$0xff]  ;;  %v682_v10 = vld [vmem:[#allocation5 + $0x1370] sm:$0xff] }
 0x1a7   :  { %3129 = vmatpush1.bf16.msra.mxu1 %v3128_v22  ;;  %2883 = vmatprep.subr.bf16.mxu0 %v2882_v23  ;;  %v616_v22 = vld [vmem:[#allocation5 + $0x1160] sm:$0xff]  ;;  %v610_v23 = vld [vmem:[#allocation5 + $0x1130] sm:$0xff]  ;;  %v3168_v16 = vpack.c.bf16 %v682_v10, %v674_v8  ;;  %v777_v8 = vld [vmem:[#allocation5 + $0x1668] sm:$0xff] }
 0x1a8   :  { %3131 = vmatprep.subr.bf16.mxu1 %v3130_v27  ;;  %v633_v27 = vld [vmem:[#allocation5 + $0x11e8] sm:$0xff]  ;;  %v2904_v31 = vpack.c.bf16 %v616_v22, %v608_v21  ;;  %v3152_v32 = vpack.c.bf16 %v618_v25, %v610_v23  ;;  %v3170_v21 = vpack.c.bf16 %v699_v14, %v691_v13  ;;  %v698_v22 = vld [vmem:[#allocation5 + $0x13f0] sm:$0xff]  ;;  %v707_v25 = vld [vmem:[#allocation5 + $0x1438] sm:$0xff] }
 0x1a9   :  { %v705_v23 = vld [vmem:[#allocation5 + $0x1428] sm:$0xff]  ;;  %v779_v10 = vld [vmem:[#allocation5 + $0x1678] sm:$0xff]  ;;  %v768_v14 = vld [vmem:[#allocation5 + $0x1620] sm:$0xff] }
 0x1aa   :  { %2885 = vmatpush1.bf16.msra.mxu0 %v2884_v33  ;;  %v2906_v33 = vpack.c.bf16 %v633_v27, %v625_v26  ;;  %v715_v26 = vld [vmem:[#allocation5 + $0x1478] sm:$0xff] }
 0x1ab   :  { %3133 = vmatpush1.bf16.msra.mxu1 %v3132_v34  ;;  %2887 = vmatprep.subr.bf16.mxu0 %v2886_v35  ;;  %v624_v34 = vld [vmem:[#allocation5 + $0x11a0] sm:$0xff] }
 0x1ac   :  { %3135 = vmatprep.subr.bf16.mxu1 %v3134_v39  ;;  %v632_v35 = vld [vmem:[#allocation5 + $0x11e0] sm:$0xff]  ;;  %v641_v39 = vld [vmem:[#allocation5 + $0x1228] sm:$0xff] }
 0x1ad   :  { %v2908_v43 = vpack.c.bf16 %v632_v35, %v624_v34  ;;  %v714_v34 = vld [vmem:[#allocation5 + $0x1470] sm:$0xff]  ;;  %v721_v35 = vld [vmem:[#allocation5 + $0x14a8] sm:$0xff] }
 0x1ae   :  { %2889 = vmatpush1.bf16.msra.mxu0 %v2888_v45  ;;  %v2910_v45 = vpack.c.bf16 %v649_v40, %v641_v39  ;;  %v2930_v41 = vpack.c.bf16 %v729_v36, %v721_v35 }
 0x1af   :  { %3137 = vmatpush1.bf16.msra.mxu1 %v3136_v46  ;;  %2891 = vmatprep.subr.bf16.mxu0 %v2890_v47  ;;  %v640_v46 = vld [vmem:[#allocation5 + $0x1220] sm:$0xff] }
 0x1b0   :  { %3139 = vmatprep.subr.bf16.mxu1 %v3138_v51  ;;  %v648_v47 = vld [vmem:[#allocation5 + $0x1260] sm:$0xff]  ;;  %v657_v51 = vld [vmem:[#allocation5 + $0x12a8] sm:$0xff] }
 0x1b1   :  { %v2912_v55 = vpack.c.bf16 %v648_v47, %v640_v46  ;;  %v730_v46 = vld [vmem:[#allocation5 + $0x14f0] sm:$0xff]  ;;  %v737_v47 = vld [vmem:[#allocation5 + $0x1528] sm:$0xff] }
 0x1b2   :  { %2893 = vmatpush1.bf16.msra.mxu0 %v2892_v57  ;;  %v2914_v57 = vpack.c.bf16 %v665_v52, %v657_v51  ;;  %v2934_v53 = vpack.c.bf16 %v745_v48, %v737_v47 }
 0x1b3   :  { %3141 = vmatpush1.bf16.msra.mxu1 %v3140_v58  ;;  %2895 = vmatprep.subr.bf16.mxu0 %v2894_v59  ;;  %v656_v58 = vld [vmem:[#allocation5 + $0x12a0] sm:$0xff] }
 0x1b4   :  { %3143 = vmatprep.subr.bf16.mxu1 %v3142_v63  ;;  %v664_v59 = vld [vmem:[#allocation5 + $0x12e0] sm:$0xff]  ;;  %v673_v63 = vld [vmem:[#allocation5 + $0x1328] sm:$0xff] }
 0x1b5   :  { %1810 = vmatmul.mubr.f32.vlgmr.msra.gmra.mrb[2].mxu0 %v3303_v15  ;;  %v2916_v3 = vpack.c.bf16 %v664_v59, %v656_v58  ;;  %v746_v58 = vld [vmem:[#allocation5 + $0x1570] sm:$0xff]  ;;  %v753_v59 = vld [vmem:[#allocation5 + $0x15a8] sm:$0xff] }
 0x1b6   :  { %2897 = vmatpush1.bf16.msra.mxu0 %v2896_v5  ;;  %2094 = vmatmul.mubr.f32.vlgmr.msra.gmra.mrb[2].mxu1 %v3303_v15  ;;  %v2918_v5 = vpack.c.bf16 %v681_v0, %v673_v63  ;;  %v2938_v1 = vpack.c.bf16 %v761_v60, %v753_v59 }
 0x1b7   :  { %3145 = vmatpush1.bf16.msra.mxu1 %v3144_v6  ;;  %2899 = vmatprep.subr.bf16.mxu0 %v2898_v7  ;;  %v672_v6 = vld [vmem:[#allocation5 + $0x1320] sm:$0xff] }
 0x1b8   :  { %3147 = vmatprep.subr.bf16.mxu1 %v3146_v11  ;;  %1880 = vmatprep.mubr.f32.mxu0 %v3304_v28  ;;  %v680_v7 = vld [vmem:[#allocation5 + $0x1360] sm:$0xff]  ;;  %v689_v11 = vld [vmem:[#allocation5 + $0x13a8] sm:$0xff] }
 0x1b9   :  { %2164 = vmatprep.mubr.f32.mxu1 %v3304_v28  ;;  %v2920_v15 = vpack.c.bf16 %v680_v7, %v672_v6  ;;  %v2922_v17 = vpack.c.bf16 %v697_v12, %v689_v11  ;;  %v762_v6 = vld [vmem:[#allocation5 + $0x15f0] sm:$0xff]  ;;  %v769_v7 = vld [vmem:[#allocation5 + $0x1628] sm:$0xff] }
 0x1ba   :  { %2901 = vmatpush1.bf16.msra.mxu0 %v2900_v18  ;;  %v688_v18 = vld [vmem:[#allocation5 + $0x13a0] sm:$0xff]  ;;  %v2942_v13 = vpack.c.bf16 %v777_v8, %v769_v7 }
 0x1bb   :  { %3149 = vmatpush1.bf16.msra.mxu1 %v3148_v19  ;;  %2903 = vmatprep.subr.bf16.mxu0 %v2902_v20  ;;  %v696_v19 = vld [vmem:[#allocation5 + $0x13e0] sm:$0xff]  ;;  %v690_v20 = vld [vmem:[#allocation5 + $0x13b0] sm:$0xff] }
 0x1bc   :  { %3151 = vmatprep.subr.bf16.mxu1 %v3150_v24  ;;  %v713_v24 = vld [vmem:[#allocation5 + $0x1468] sm:$0xff]  ;;  %v2924_v27 = vpack.c.bf16 %v696_v19, %v688_v18  ;;  %v3172_v28 = vpack.c.bf16 %v698_v22, %v690_v20  ;;  %v778_v18 = vld [vmem:[#allocation5 + $0x1670] sm:$0xff]  ;;  %v795_v22 = vld [vmem:[#allocation5 + $0x16f8] sm:$0xff] }
 0x1bd   :  { %v2926_v29 = vpack.c.bf16 %v713_v24, %v705_v23  ;;  %v785_v19 = vld [vmem:[#allocation5 + $0x16a8] sm:$0xff] }
 0x1be   :  { %2905 = vmatpush1.bf16.msra.mxu0 %v2904_v31  ;;  %v712_v31 = vld [vmem:[#allocation5 + $0x1460] sm:$0xff]  ;;  %v793_v20 = vld [vmem:[#allocation5 + $0x16e8] sm:$0xff] }
 0x1bf   :  { %3153 = vmatpush1.bf16.msra.mxu1 %v3152_v32  ;;  %2907 = vmatprep.subr.bf16.mxu0 %v2906_v33  ;;  %v706_v32 = vld [vmem:[#allocation5 + $0x1430] sm:$0xff]  ;;  %v3174_v33 = vpack.c.bf16 %v715_v26, %v707_v25  ;;  %v2928_v39 = vpack.c.bf16 %v712_v31, %v704_v30  ;;  %v2946_v25 = vpack.c.bf16 %v793_v20, %v785_v19  ;;  %v784_v26 = vld [vmem:[#allocation5 + $0x16a0] sm:$0xff]  ;;  %v801_v31 = vld [vmem:[#allocation5 + $0x1728] sm:$0xff] }
 0x1c0   :  { %3155 = vmatprep.subr.bf16.mxu1 %v3154_v37  ;;  %v723_v37 = vld [vmem:[#allocation5 + $0x14b8] sm:$0xff]  ;;  %v3176_v40 = vpack.c.bf16 %v714_v34, %v706_v32  ;;  %v794_v30 = vld [vmem:[#allocation5 + $0x16f0] sm:$0xff]  ;;  %v809_v32 = vld [vmem:[#allocation5 + $0x1768] sm:$0xff] }
 0x1c1   :  { %v811_v34 = vld [vmem:[#allocation5 + $0x1778] sm:$0xff] }
 0x1c2   :  { %2909 = vmatpush1.bf16.msra.mxu0 %v2908_v43  ;;  %v728_v43 = vld [vmem:[#allocation5 + $0x14e0] sm:$0xff]  ;;  %v875_v19 = vld [vmem:[#allocation5 + $0x1978] sm:$0xff] }
 0x1c3   :  { %3157 = vmatpush1.bf16.msra.mxu1 %v3156_v44  ;;  %2911 = vmatprep.subr.bf16.mxu0 %v2910_v45  ;;  %v722_v44 = vld [vmem:[#allocation5 + $0x14b0] sm:$0xff]  ;;  %v3178_v45 = vpack.c.bf16 %v731_v38, %v723_v37  ;;  %v2932_v51 = vpack.c.bf16 %v728_v43, %v720_v42  ;;  %v2950_v37 = vpack.c.bf16 %v809_v32, %v801_v31  ;;  %v800_v38 = vld [vmem:[#allocation5 + $0x1720] sm:$0xff]  ;;  %v817_v43 = vld [vmem:[#allocation5 + $0x17a8] sm:$0xff] }
 0x1c4   :  { %3159 = vmatprep.subr.bf16.mxu1 %v3158_v49  ;;  %v739_v49 = vld [vmem:[#allocation5 + $0x1538] sm:$0xff]  ;;  %v3180_v52 = vpack.c.bf16 %v730_v46, %v722_v44  ;;  %v810_v42 = vld [vmem:[#allocation5 + $0x1770] sm:$0xff]  ;;  %v825_v44 = vld [vmem:[#allocation5 + $0x17e8] sm:$0xff] }
 0x1c5   :  { %v827_v46 = vld [vmem:[#allocation5 + $0x17f8] sm:$0xff] }
 0x1c6   :  { %2913 = vmatpush1.bf16.msra.mxu0 %v2912_v55  ;;  %v744_v55 = vld [vmem:[#allocation5 + $0x1560] sm:$0xff]  ;;  %v3306_v31 = vld [vmem:[#allocation2 + $0x38] sm:$0xff] }
 0x1c7   :  { %3161 = vmatpush1.bf16.msra.mxu1 %v3160_v56  ;;  %2915 = vmatprep.subr.bf16.mxu0 %v2914_v57  ;;  %v738_v56 = vld [vmem:[#allocation5 + $0x1530] sm:$0xff]  ;;  %v3182_v57 = vpack.c.bf16 %v747_v50, %v739_v49  ;;  %v2936_v63 = vpack.c.bf16 %v744_v55, %v736_v54  ;;  %v2954_v49 = vpack.c.bf16 %v825_v44, %v817_v43  ;;  %v816_v50 = vld [vmem:[#allocation5 + $0x17a0] sm:$0xff]  ;;  %v833_v55 = vld [vmem:[#allocation5 + $0x1828] sm:$0xff] }
 0x1c8   :  { %3163 = vmatprep.subr.bf16.mxu1 %v3162_v61  ;;  %v755_v61 = vld [vmem:[#allocation5 + $0x15b8] sm:$0xff]  ;;  %v3184_v0 = vpack.c.bf16 %v746_v58, %v738_v56  ;;  %v826_v54 = vld [vmem:[#allocation5 + $0x17f0] sm:$0xff]  ;;  %v841_v56 = vld [vmem:[#allocation5 + $0x1868] sm:$0xff] }
 0x1c9   :  { %v843_v58 = vld [vmem:[#allocation5 + $0x1878] sm:$0xff]  ;;  %v905_v43 = vld [vmem:[#allocation5 + $0x1a68] sm:$0xff] }
 0x1ca   :  { %2917 = vmatpush1.bf16.msra.mxu0 %v2916_v3  ;;  %v760_v3 = vld [vmem:[#allocation5 + $0x15e0] sm:$0xff]  ;;  %v883_v32 = vld [vmem:[#allocation5 + $0x19b8] sm:$0xff] }
 0x1cb   :  { %3165 = vmatpush1.bf16.msra.mxu1 %v3164_v4  ;;  %2919 = vmatprep.subr.bf16.mxu0 %v2918_v5  ;;  %v754_v4 = vld [vmem:[#allocation5 + $0x15b0] sm:$0xff]  ;;  %v3186_v5 = vpack.c.bf16 %v763_v62, %v755_v61  ;;  %v2940_v11 = vpack.c.bf16 %v760_v3, %v752_v2  ;;  %v2958_v61 = vpack.c.bf16 %v841_v56, %v833_v55  ;;  %v832_v62 = vld [vmem:[#allocation5 + $0x1820] sm:$0xff]  ;;  %v849_v3 = vld [vmem:[#allocation5 + $0x18a8] sm:$0xff] }
 0x1cc   :  { %3167 = vmatprep.subr.bf16.mxu1 %v3166_v9  ;;  %v771_v9 = vld [vmem:[#allocation5 + $0x1638] sm:$0xff]  ;;  %v3188_v12 = vpack.c.bf16 %v762_v6, %v754_v4  ;;  %v842_v2 = vld [vmem:[#allocation5 + $0x1870] sm:$0xff]  ;;  %v857_v4 = vld [vmem:[#allocation5 + $0x18e8] sm:$0xff] }
 0x1cd   :  { %v859_v6 = vld [vmem:[#allocation5 + $0x18f8] sm:$0xff]  ;;  %v913_v56 = vld [vmem:[#allocation5 + $0x1aa8] sm:$0xff] }
 0x1ce   :  { %2921 = vmatpush1.bf16.msra.mxu0 %v2920_v15  ;;  %v776_v15 = vld [vmem:[#allocation5 + $0x1660] sm:$0xff] }
 0x1cf   :  { %3169 = vmatpush1.bf16.msra.mxu1 %v3168_v16  ;;  %2923 = vmatprep.subr.bf16.mxu0 %v2922_v17  ;;  %v770_v16 = vld [vmem:[#allocation5 + $0x1630] sm:$0xff]  ;;  %v3190_v17 = vpack.c.bf16 %v779_v10, %v771_v9  ;;  %v2944_v23 = vpack.c.bf16 %v776_v15, %v768_v14  ;;  %v2962_v9 = vpack.c.bf16 %v857_v4, %v849_v3  ;;  %v848_v10 = vld [vmem:[#allocation5 + $0x18a0] sm:$0xff]  ;;  %v865_v15 = vld [vmem:[#allocation5 + $0x1928] sm:$0xff] }
 0x1d0   :  { %3171 = vmatprep.subr.bf16.mxu1 %v3170_v21  ;;  %v787_v21 = vld [vmem:[#allocation5 + $0x16b8] sm:$0xff]  ;;  %v3192_v24 = vpack.c.bf16 %v778_v18, %v770_v16  ;;  %v858_v14 = vld [vmem:[#allocation5 + $0x18f0] sm:$0xff]  ;;  %v873_v16 = vld [vmem:[#allocation5 + $0x1968] sm:$0xff] }
 0x1d1   :  { %v867_v18 = vld [vmem:[#allocation5 + $0x1938] sm:$0xff]  ;;  %v912_v3 = vld [vmem:[#allocation5 + $0x1aa0] sm:$0xff] }
 0x1d2   :  { %2925 = vmatpush1.bf16.msra.mxu0 %v2924_v27  ;;  %v792_v27 = vld [vmem:[#allocation5 + $0x16e0] sm:$0xff] }
 0x1d3   :  { %3173 = vmatpush1.bf16.msra.mxu1 %v3172_v28  ;;  %2927 = vmatprep.subr.bf16.mxu0 %v2926_v29  ;;  %v786_v28 = vld [vmem:[#allocation5 + $0x16b0] sm:$0xff]  ;;  %v3194_v29 = vpack.c.bf16 %v795_v22, %v787_v21  ;;  %v2948_v35 = vpack.c.bf16 %v792_v27, %v784_v26  ;;  %v2966_v22 = vpack.c.bf16 %v873_v16, %v865_v15  ;;  %v920_v4 = vld [vmem:[#allocation5 + $0x1ae0] sm:$0xff] }
 0x1d4   :  { %3175 = vmatprep.subr.bf16.mxu1 %v3174_v33  ;;  %v803_v33 = vld [vmem:[#allocation5 + $0x1738] sm:$0xff]  ;;  %v3196_v36 = vpack.c.bf16 %v794_v30, %v786_v28  ;;  %v3214_v26 = vpack.c.bf16 %v875_v19, %v867_v18  ;;  %v874_v27 = vld [vmem:[#allocation5 + $0x1970] sm:$0xff]  ;;  %v881_v28 = vld [vmem:[#allocation5 + $0x19a8] sm:$0xff]  ;;  %v1062_v30 = vlaneseq  ;;  %v2980_v16 = vpack.c.bf16 %v920_v4, %v912_v3 }
 0x1d5   :  { %v978_v3 = vld [vmem:[#allocation5 + $0x1cb0] sm:$0xff] }
 0x1d6   :  { %2929 = vmatpush1.bf16.msra.mxu0 %v2928_v39  ;;  %v808_v39 = vld [vmem:[#allocation5 + $0x1760] sm:$0xff]  ;;  %v3468_v44 = vshrl.u32 %v1062_v30, 7 }
 0x1d7   :  { %3177 = vmatpush1.bf16.msra.mxu1 %v3176_v40  ;;  %2931 = vmatprep.subr.bf16.mxu0 %v2930_v41  ;;  %v802_v40 = vld [vmem:[#allocation5 + $0x1730] sm:$0xff]  ;;  %v3198_v41 = vpack.c.bf16 %v811_v34, %v803_v33  ;;  %v2952_v47 = vpack.c.bf16 %v808_v39, %v800_v38  ;;  %v891_v33 = vld [vmem:[#allocation5 + $0x19f8] sm:$0xff]  ;;  %v888_v38 = vld [vmem:[#allocation5 + $0x19e0] sm:$0xff] }
 0x1d8   :  { %3179 = vmatprep.subr.bf16.mxu1 %v3178_v45  ;;  %v819_v45 = vld [vmem:[#allocation5 + $0x17b8] sm:$0xff]  ;;  %v3200_v48 = vpack.c.bf16 %v810_v42, %v802_v40  ;;  %v882_v39 = vld [vmem:[#allocation5 + $0x19b0] sm:$0xff]  ;;  %v3218_v40 = vpack.c.bf16 %v891_v33, %v883_v32  ;;  %v897_v42 = vld [vmem:[#allocation5 + $0x1a28] sm:$0xff]  ;;  %v1064_v55 = vsub.s32 0, %v3468_v44 }
 0x1d9   :  { %v947_v33 = vld [vmem:[#allocation5 + $0x1bb8] sm:$0xff] }
 0x1da   :  { %2933 = vmatpush1.bf16.msra.mxu0 %v2932_v51  ;;  %v824_v51 = vld [vmem:[#allocation5 + $0x17e0] sm:$0xff] }
 0x1db   :  { %3181 = vmatpush1.bf16.msra.mxu1 %v3180_v52  ;;  %2935 = vmatprep.subr.bf16.mxu0 %v2934_v53  ;;  %v818_v52 = vld [vmem:[#allocation5 + $0x17b0] sm:$0xff]  ;;  %v3202_v53 = vpack.c.bf16 %v827_v46, %v819_v45  ;;  %v2956_v59 = vpack.c.bf16 %v824_v51, %v816_v50  ;;  %v899_v45 = vld [vmem:[#allocation5 + $0x1a38] sm:$0xff]  ;;  %v896_v50 = vld [vmem:[#allocation5 + $0x1a20] sm:$0xff] }
 0x1dc   :  { %3183 = vmatprep.subr.bf16.mxu1 %v3182_v57  ;;  %v835_v57 = vld [vmem:[#allocation5 + $0x1838] sm:$0xff]  ;;  %v3204_v60 = vpack.c.bf16 %v826_v54, %v818_v52  ;;  %v904_v51 = vld [vmem:[#allocation5 + $0x1a60] sm:$0xff]  ;;  %v898_v52 = vld [vmem:[#allocation5 + $0x1a30] sm:$0xff] }
 0x1dd   :  { %v907_v46 = vld [vmem:[#allocation5 + $0x1a78] sm:$0xff]  ;;  %v906_v54 = vld [vmem:[#allocation5 + $0x1a70] sm:$0xff] }
 0x1de   :  { %2937 = vmatpush1.bf16.msra.mxu0 %v2936_v63  ;;  %v840_v63 = vld [vmem:[#allocation5 + $0x1860] sm:$0xff] }
 0x1df   :  { %3185 = vmatpush1.bf16.msra.mxu1 %v3184_v0  ;;  %2939 = vmatprep.subr.bf16.mxu0 %v2938_v1  ;;  %v834_v0 = vld [vmem:[#allocation5 + $0x1830] sm:$0xff]  ;;  %v3206_v1 = vpack.c.bf16 %v843_v58, %v835_v57  ;;  %v2960_v7 = vpack.c.bf16 %v840_v63, %v832_v62  ;;  %v921_v57 = vld [vmem:[#allocation5 + $0x1ae8] sm:$0xff]  ;;  %v3471_v58 = vld [vmem:[#allocation7] sm:$0xff]  ;;  %v2976_v63 = vpack.c.bf16 %v904_v51, %v896_v50 }
 0x1e0   :  { %3187 = vmatprep.subr.bf16.mxu1 %v3186_v5  ;;  %v851_v5 = vld [vmem:[#allocation5 + $0x18b8] sm:$0xff]  ;;  %v3208_v8 = vpack.c.bf16 %v842_v2, %v834_v0  ;;  %v1076_v0 = vsub.s32 3, %v3468_v44  ;;  %v2978_v2 = vpack.c.bf16 %v921_v57, %v913_v56  ;;  %v970_v56 = vld [vmem:[#allocation5 + $0x1c70] sm:$0xff]  ;;  %v977_v57 = vld [vmem:[#allocation5 + $0x1ca8] sm:$0xff] }
 0x1e1   :  { %v923_v62 = vld [vmem:[#allocation5 + $0x1af8] sm:$0xff] }
 0x1e2   :  { %2941 = vmatpush1.bf16.msra.mxu0 %v2940_v11  ;;  %v856_v11 = vld [vmem:[#allocation5 + $0x18e0] sm:$0xff]  ;;  %v1077_v15 = vrot.slane %v3471_v58, %v1076_v0 }
 0x1e3   :  { %3189 = vmatpush1.bf16.msra.mxu1 %v3188_v12  ;;  %2943 = vmatprep.subr.bf16.mxu0 %v2942_v13  ;;  %v850_v12 = vld [vmem:[#allocation5 + $0x18b0] sm:$0xff]  ;;  %v3210_v13 = vpack.c.bf16 %v859_v6, %v851_v5  ;;  %v2964_v20 = vpack.c.bf16 %v856_v11, %v848_v10  ;;  %v1065_v6 = vrot.slane %v3471_v58, %v1064_v55  ;;  %v937_v10 = vld [vmem:[#allocation5 + $0x1b68] sm:$0xff] }
 0x1e4   :  { %3191 = vmatprep.subr.bf16.mxu1 %v3190_v17  ;;  %v3305_v17 = vld [vmem:[#allocation2 + $0x20] sm:$0xff]  ;;  %v3212_v21 = vpack.c.bf16 %v858_v14, %v850_v12  ;;  %v914_v5 = vld [vmem:[#allocation5 + $0x1ab0] sm:$0xff]  ;;  %v939_v14 = vld [vmem:[#allocation5 + $0x1b78] sm:$0xff] }
 0x1e6   :  { %2945 = vmatpush1.bf16.msra.mxu0 %v2944_v23  ;;  %v864_v23 = vld [vmem:[#allocation5 + $0x1920] sm:$0xff] }
 0x1e7   :  { %3193 = vmatpush1.bf16.msra.mxu1 %v3192_v24  ;;  %2947 = vmatprep.subr.bf16.mxu0 %v2946_v25  ;;  %v872_v24 = vld [vmem:[#allocation5 + $0x1960] sm:$0xff]  ;;  %v866_v25 = vld [vmem:[#allocation5 + $0x1930] sm:$0xff] }
 0x1e8   :  { %3195 = vmatprep.subr.bf16.mxu1 %v3194_v29  ;;  %v889_v29 = vld [vmem:[#allocation5 + $0x19e8] sm:$0xff]  ;;  %v2968_v34 = vpack.c.bf16 %v872_v24, %v864_v23 }
 0x1ea   :  { %2949 = vmatpush1.bf16.msra.mxu0 %v2948_v35  ;;  %v3216_v35 = vpack.c.bf16 %v874_v27, %v866_v25  ;;  %v938_v27 = vld [vmem:[#allocation5 + $0x1b70] sm:$0xff] }
 0x1eb   :  { %3197 = vmatpush1.bf16.msra.mxu1 %v3196_v36  ;;  %2951 = vmatprep.subr.bf16.mxu0 %v2950_v37  ;;  %v2970_v36 = vpack.c.bf16 %v889_v29, %v881_v28  ;;  %v880_v37 = vld [vmem:[#allocation5 + $0x19a0] sm:$0xff]  ;;  %v945_v28 = vld [vmem:[#allocation5 + $0x1ba8] sm:$0xff] }
 0x1ec   :  { %3199 = vmatprep.subr.bf16.mxu1 %v3198_v41  ;;  %v890_v41 = vld [vmem:[#allocation5 + $0x19f0] sm:$0xff]  ;;  %v953_v29 = vld [vmem:[#allocation5 + $0x1be8] sm:$0xff] }
 0x1ee   :  { %2953 = vmatpush1.bf16.msra.mxu0 %v2952_v47  ;;  %v2972_v47 = vpack.c.bf16 %v888_v38, %v880_v37  ;;  %v2986_v38 = vpack.c.bf16 %v953_v29, %v945_v28  ;;  %v1018_v29 = vld [vmem:[#allocation5 + $0x1df0] sm:$0xff] }
 0x1ef   :  { %3201 = vmatpush1.bf16.msra.mxu1 %v3200_v48  ;;  %2955 = vmatprep.subr.bf16.mxu0 %v2954_v49  ;;  %v3220_v48 = vpack.c.bf16 %v890_v41, %v882_v39  ;;  %v2974_v49 = vpack.c.bf16 %v905_v43, %v897_v42  ;;  %v944_v39 = vld [vmem:[#allocation5 + $0x1ba0] sm:$0xff]  ;;  %v946_v41 = vld [vmem:[#allocation5 + $0x1bb0] sm:$0xff] }
 0x1f0   :  { %3203 = vmatprep.subr.bf16.mxu1 %v3202_v53  ;;  %v3222_v53 = vpack.c.bf16 %v907_v46, %v899_v45  ;;  %v954_v43 = vld [vmem:[#allocation5 + $0x1bf0] sm:$0xff]  ;;  %v961_v45 = vld [vmem:[#allocation5 + $0x1c28] sm:$0xff] }
 0x1f1   :  { %v969_v46 = vld [vmem:[#allocation5 + $0x1c68] sm:$0xff]  ;;  %v3236_v50 = vpack.c.bf16 %v954_v43, %v946_v41  ;;  %v1034_v41 = vld [vmem:[#allocation5 + $0x1e70] sm:$0xff] }
 0x1f2   :  { %2957 = vmatpush1.bf16.msra.mxu0 %v2956_v59  ;;  %v1072_v59 = vsub.s32 2, %v3468_v44  ;;  %v2990_v51 = vpack.c.bf16 %v969_v46, %v961_v45  ;;  %v1049_v43 = vld [vmem:[#allocation5 + $0x1ee8] sm:$0xff]  ;;  %v1043_v45 = vld [vmem:[#allocation5 + $0x1eb8] sm:$0xff] }
 0x1f3   :  { %3205 = vmatpush1.bf16.msra.mxu1 %v3204_v60  ;;  %2959 = vmatprep.subr.bf16.mxu0 %v2958_v61  ;;  %v1068_v60 = vsub.s32 1, %v3468_v44  ;;  %v915_v61 = vld [vmem:[#allocation5 + $0x1ab8] sm:$0xff] }
 0x1f4   :  { %3207 = vmatprep.subr.bf16.mxu1 %v3206_v1  ;;  %v3224_v1 = vpack.c.bf16 %v906_v54, %v898_v52  ;;  %v1073_v11 = vrot.slane %v3471_v58, %v1072_v59  ;;  %v960_v52 = vld [vmem:[#allocation5 + $0x1c20] sm:$0xff]  ;;  %v962_v54 = vld [vmem:[#allocation5 + $0x1c30] sm:$0xff]  ;;  %v985_v59 = vld [vmem:[#allocation5 + $0x1ce8] sm:$0xff] }
 0x1f5   :  { %1881 = vmatmul.mubr.f32.vlgmr.msra.gmra.mrb[2].mxu0 %v3305_v17  ;;  %v1069_v12 = vrot.slane %v3471_v58, %v1068_v60  ;;  %v979_v60 = vld [vmem:[#allocation5 + $0x1cb8] sm:$0xff]  ;;  %v2994_v0 = vpack.c.bf16 %v985_v59, %v977_v57  ;;  %v1057_v57 = vld [vmem:[#allocation5 + $0x1f28] sm:$0xff] }
 0x1f6   :  { %2961 = vmatpush1.bf16.msra.mxu0 %v2960_v7  ;;  %2165 = vmatmul.mubr.f32.vlgmr.msra.gmra.mrb[2].mxu1 %v3305_v17  ;;  %v3226_v7 = vpack.c.bf16 %v923_v62, %v915_v61  ;;  %v987_v61 = vld [vmem:[#allocation5 + $0x1cf8] sm:$0xff] }
 0x1f7   :  { %3209 = vmatpush1.bf16.msra.mxu1 %v3208_v8  ;;  %2963 = vmatprep.subr.bf16.mxu0 %v2962_v9  ;;  %v922_v8 = vld [vmem:[#allocation5 + $0x1af0] sm:$0xff]  ;;  %v929_v9 = vld [vmem:[#allocation5 + $0x1b28] sm:$0xff]  ;;  %v3242_v4 = vpack.c.bf16 %v987_v61, %v979_v60  ;;  %v1051_v46 = vld [vmem:[#allocation5 + $0x1ef8] sm:$0xff] }
 0x1f8   :  { %3211 = vmatprep.subr.bf16.mxu1 %v3210_v13  ;;  %2268 = vmatprep.mubr.msk.f32.mxu0 %vm1102_vm0, %v3306_v31  ;;  %v931_v13 = vld [vmem:[#allocation5 + $0x1b38] sm:$0xff]  ;;  %v3228_v18 = vpack.c.bf16 %v922_v8, %v914_v5  ;;  %v2982_v19 = vpack.c.bf16 %v937_v10, %v929_v9  ;;  %v986_v5 = vld [vmem:[#allocation5 + $0x1cf0] sm:$0xff]  ;;  %v1056_v60 = vld [vmem:[#allocation5 + $0x1f20] sm:$0xff] }
 0x1f9   :  { %2269 = vmatprep.mubr.msk.f32.mxu1 %vm1102_vm0, %v3306_v31  ;;  %v995_v8 = vld [vmem:[#allocation5 + $0x1d38] sm:$0xff]  ;;  %v1058_v61 = vld [vmem:[#allocation5 + $0x1f30] sm:$0xff] }
 0x1fa   :  { %2965 = vmatpush1.bf16.msra.mxu0 %v2964_v20  ;;  %v928_v20 = vld [vmem:[#allocation5 + $0x1b20] sm:$0xff]  ;;  %v1003_v9 = vld [vmem:[#allocation5 + $0x1d78] sm:$0xff] }
 0x1fb   :  { %3213 = vmatpush1.bf16.msra.mxu1 %v3212_v21  ;;  %2967 = vmatprep.subr.bf16.mxu0 %v2966_v22  ;;  %v936_v21 = vld [vmem:[#allocation5 + $0x1b60] sm:$0xff]  ;;  %v930_v22 = vld [vmem:[#allocation5 + $0x1b30] sm:$0xff]  ;;  %v1059_v59 = vld [vmem:[#allocation5 + $0x1f38] sm:$0xff] }
 0x1fc   :  { %3215 = vmatprep.subr.bf16.mxu1 %v3214_v26  ;;  %v3230_v26 = vpack.c.bf16 %v939_v14, %v931_v13  ;;  %v3232_v37 = vpack.c.bf16 %v938_v27, %v930_v22  ;;  %v992_v13 = vld [vmem:[#allocation5 + $0x1d20] sm:$0xff]  ;;  %v1010_v27 = vld [vmem:[#allocation5 + $0x1db0] sm:$0xff] }
 0x1fd   :  { %v1000_v14 = vld [vmem:[#allocation5 + $0x1d60] sm:$0xff] }
 0x1fe   :  { %2969 = vmatpush1.bf16.msra.mxu0 %v2968_v34  ;;  %v955_v34 = vld [vmem:[#allocation5 + $0x1bf8] sm:$0xff]  ;;  %v3000_v22 = vpack.c.bf16 %v1000_v14, %v992_v13 }
 0x1ff   :  { %3217 = vmatpush1.bf16.msra.mxu1 %v3216_v35  ;;  %2971 = vmatprep.subr.bf16.mxu0 %v2970_v36  ;;  %v2984_v36 = vpack.c.bf16 %v936_v21, %v928_v20  ;;  %v3234_v42 = vpack.c.bf16 %v955_v34, %v947_v33  ;;  %v1011_v20 = vld [vmem:[#allocation5 + $0x1db8] sm:$0xff] }
 0x200   :  { %3219 = vmatprep.subr.bf16.mxu1 %v3218_v40  ;;  %v952_v40 = vld [vmem:[#allocation5 + $0x1be0] sm:$0xff]  ;;  %v1019_v21 = vld [vmem:[#allocation5 + $0x1df8] sm:$0xff] }
 0x201   :  { %v3250_v28 = vpack.c.bf16 %v1019_v21, %v1011_v20  ;;  %v1035_v33 = vld [vmem:[#allocation5 + $0x1e78] sm:$0xff] }
 0x202   :  { %2973 = vmatpush1.bf16.msra.mxu0 %v2972_v47  ;;  %v963_v47 = vld [vmem:[#allocation5 + $0x1c38] sm:$0xff] }
 0x203   :  { %3221 = vmatpush1.bf16.msra.mxu1 %v3220_v48  ;;  %2975 = vmatprep.subr.bf16.mxu0 %v2974_v49  ;;  %v971_v48 = vld [vmem:[#allocation5 + $0x1c78] sm:$0xff]  ;;  %v2988_v49 = vpack.c.bf16 %v952_v40, %v944_v39  ;;  %v1026_v39 = vld [vmem:[#allocation5 + $0x1e30] sm:$0xff] }
 0x204   :  { %3223 = vmatprep.subr.bf16.mxu1 %v3222_v53  ;;  %v968_v53 = vld [vmem:[#allocation5 + $0x1c60] sm:$0xff]  ;;  %v3238_v55 = vpack.c.bf16 %v971_v48, %v963_v47  ;;  %v3256_v48 = vpack.c.bf16 %v1034_v41, %v1026_v39 }
 0x205   :  { %v2992_v62 = vpack.c.bf16 %v968_v53, %v960_v52  ;;  %v3258_v52 = vpack.c.bf16 %v1051_v46, %v1043_v45  ;;  %v1042_v53 = vld [vmem:[#allocation5 + $0x1eb0] sm:$0xff] }
 0x206   :  { %2977 = vmatpush1.bf16.msra.mxu0 %v2976_v63  ;;  %v3240_v63 = vpack.c.bf16 %v970_v56, %v962_v54  ;;  %v1050_v54 = vld [vmem:[#allocation5 + $0x1ef0] sm:$0xff] }
 0x207   :  { %3225 = vmatpush1.bf16.msra.mxu1 %v3224_v1  ;;  %v1385_v17 = vpop.f32.mrb[0].mxu0  ;;  %2979 = vmatprep.subr.bf16.mxu0 %v2978_v2  ;;  %v976_v1 = vld [vmem:[#allocation5 + $0x1ca0] sm:$0xff]  ;;  %v3260_v56 = vpack.c.bf16 %v1050_v54, %v1042_v53 }
 0x208   :  { %v3262_v23 = vadd.f32 %v1385_v17, %v1065_v6  ;;  %v1669_v24 = vpop.f32.mrb[0].mxu1  ;;  %v1387_v25 = vpop.f32.mrb[1].mxu0  ;;  %3227 = vmatprep.subr.bf16.mxu1 %v3226_v7  ;;  %v984_v2 = vld [vmem:[#allocation5 + $0x1ce0] sm:$0xff]  ;;  %v993_v6 = vld [vmem:[#allocation5 + $0x1d28] sm:$0xff]  ;;  %v1002_v17 = vld [vmem:[#allocation5 + $0x1d70] sm:$0xff] }
 0x209   :  { %v3264_v30 = vadd.f32 %v1669_v24, %v1073_v11  ;;  %v3263_v31 = vadd.f32 %v1387_v25, %v1069_v12  ;;  %v1671_v32 = vpop.f32.mrb[1].mxu1  ;;  %v1001_v7 = vld [vmem:[#allocation5 + $0x1d68] sm:$0xff]  ;;  %v2996_v10 = vpack.c.bf16 %v984_v2, %v976_v1  ;;  %v3244_v11 = vpack.c.bf16 %v986_v5, %v978_v3  ;;  %v1008_v25 = vld [vmem:[#allocation5 + $0x1da0] sm:$0xff] }
 0x20a   :  { %2242 = vst [vmem:[#allocation8] sm:$0xff] %v3262_v23  ;;  %v3265_v35 = vadd.f32 %v1671_v32, %v1077_v15  ;;  %2981 = vmatpush1.bf16.msra.mxu0 %v2980_v16  ;;  %v2998_v12 = vpack.c.bf16 %v1001_v7, %v993_v6  ;;  %v994_v15 = vld [vmem:[#allocation5 + $0x1d30] sm:$0xff]  ;;  %v3246_v16 = vpack.c.bf16 %v1003_v9, %v995_v8  ;;  %v1027_v32 = vld [vmem:[#allocation5 + $0x1e38] sm:$0xff]  ;;  %v1084_v1 = vsub.s32 5, %v3468_v44 }
 0x20b   :  { %2244 = vst [vmem:[#allocation8 + $0x10] sm:$0xff] %v3264_v30  ;;  %2243 = vst [vmem:[#allocation8 + $0x8] sm:$0xff] %v3263_v31  ;;  %3229 = vmatpush1.bf16.msra.mxu1 %v3228_v18  ;;  %2983 = vmatprep.subr.bf16.mxu0 %v2982_v19  ;;  %v1009_v18 = vld [vmem:[#allocation5 + $0x1da8] sm:$0xff]  ;;  %v3248_v23 = vpack.c.bf16 %v1002_v17, %v994_v15  ;;  %v3254_v40 = vpack.c.bf16 %v1035_v33, %v1027_v32  ;;  %v1092_v2 = vsub.s32 7, %v3468_v44 }
 0x20c   :  { %2245 = vst [vmem:[#allocation8 + $0x18] sm:$0xff] %v3265_v35  ;;  %3231 = vmatprep.subr.bf16.mxu1 %v3230_v26  ;;  %v1017_v19 = vld [vmem:[#allocation5 + $0x1de8] sm:$0xff]  ;;  %v1016_v26 = vld [vmem:[#allocation5 + $0x1de0] sm:$0xff]  ;;  %v3252_v35 = vpack.c.bf16 %v1018_v29, %v1010_v27  ;;  %v1085_v5 = vrot.slane %v3471_v58, %v1084_v1 }
 0x20d   :  { %v3002_v24 = vpack.c.bf16 %v1017_v19, %v1009_v18  ;;  %v1025_v30 = vld [vmem:[#allocation5 + $0x1e28] sm:$0xff]  ;;  %v3004_v34 = vpack.c.bf16 %v1016_v26, %v1008_v25  ;;  %v1093_v6 = vrot.slane %v3471_v58, %v1092_v2 }
 0x20e   :  { %2985 = vmatpush1.bf16.msra.mxu0 %v2984_v36  ;;  %v1033_v31 = vld [vmem:[#allocation5 + $0x1e68] sm:$0xff] }
 0x20f   :  { %3233 = vmatpush1.bf16.msra.mxu1 %v3232_v37  ;;  %2987 = vmatprep.subr.bf16.mxu0 %v2986_v38  ;;  %v3006_v36 = vpack.c.bf16 %v1033_v31, %v1025_v30  ;;  %v1024_v37 = vld [vmem:[#allocation5 + $0x1e20] sm:$0xff] }
 0x210   :  { %3235 = vmatprep.subr.bf16.mxu1 %v3234_v42  ;;  %v1032_v38 = vld [vmem:[#allocation5 + $0x1e60] sm:$0xff]  ;;  %v1041_v42 = vld [vmem:[#allocation5 + $0x1ea8] sm:$0xff] }
 0x211   :  { %v3008_v47 = vpack.c.bf16 %v1032_v38, %v1024_v37 }
 0x212   :  { %2989 = vmatpush1.bf16.msra.mxu0 %v2988_v49  ;;  %v3010_v49 = vpack.c.bf16 %v1049_v43, %v1041_v42 }
 0x213   :  { %3237 = vmatpush1.bf16.msra.mxu1 %v3236_v50  ;;  %2991 = vmatprep.subr.bf16.mxu0 %v2990_v51  ;;  %v1040_v50 = vld [vmem:[#allocation5 + $0x1ea0] sm:$0xff] }
 0x214   :  { %3239 = vmatprep.subr.bf16.mxu1 %v3238_v55  ;;  %v1048_v51 = vld [vmem:[#allocation5 + $0x1ee0] sm:$0xff] }
 0x215   :  { %v3012_v55 = vpack.c.bf16 %v1048_v51, %v1040_v50 }
 0x216   :  { %2993 = vmatpush1.bf16.msra.mxu0 %v2992_v62  ;;  %v3307_v62 = vld [vmem:[#allocation2 + $0x30] sm:$0xff] }
 0x217   :  { %3241 = vmatpush1.bf16.msra.mxu1 %v3240_v63  ;;  %2995 = vmatprep.subr.bf16.mxu0 %v2994_v0  ;;  %v1080_v63 = vsub.s32 4, %v3468_v44  ;;  %v1088_v0 = vsub.s32 6, %v3468_v44 }
 0x218   :  { %3243 = vmatprep.subr.bf16.mxu1 %v3242_v4 }
 0x219   :  { %v1081_v3 = vrot.slane %v3471_v58, %v1080_v63  ;;  %v1089_v4 = vrot.slane %v3471_v58, %v1088_v0 }
 0x21a   :  { %2997 = vmatpush1.bf16.msra.mxu0 %v2996_v10 }
 0x21b   :  { %3245 = vmatpush1.bf16.msra.mxu1 %v3244_v11  ;;  %2999 = vmatprep.subr.bf16.mxu0 %v2998_v12 }
 0x21c   :  { %3247 = vmatprep.subr.bf16.mxu1 %v3246_v16 }
 0x21e   :  { %3001 = vmatpush1.bf16.msra.mxu0 %v3000_v22 }
 0x21f   :  { %3249 = vmatpush1.bf16.msra.mxu1 %v3248_v23  ;;  %3003 = vmatprep.subr.bf16.mxu0 %v3002_v24 }
 0x220   :  { %3251 = vmatprep.subr.bf16.mxu1 %v3250_v28 }
 0x222   :  { %3005 = vmatpush1.bf16.msra.mxu0 %v3004_v34 }
 0x223   :  { %3253 = vmatpush1.bf16.msra.mxu1 %v3252_v35  ;;  %3007 = vmatprep.subr.bf16.mxu0 %v3006_v36 }
 0x224   :  { %3255 = vmatprep.subr.bf16.mxu1 %v3254_v40 }
 0x226   :  { %3009 = vmatpush1.bf16.msra.mxu0 %v3008_v47 }
 0x227   :  { %3257 = vmatpush1.bf16.msra.mxu1 %v3256_v48  ;;  %3011 = vmatprep.subr.bf16.mxu0 %v3010_v49 }
 0x228   :  { %3259 = vmatprep.subr.bf16.mxu1 %v3258_v52 }
 0x22a   :  { %3013 = vmatpush1.bf16.msra.mxu0 %v3012_v55 }
 0x22b   :  { %3261 = vmatpush1.bf16.msra.mxu1 %v3260_v56  ;;  %1943 = vmatprep.subr.mxu0 %v1057_v57 }
 0x22c   :  { %2227 = vmatprep.subr.mxu1 %v1059_v59 }
 0x22e   :  { %1944 = vmatpush1.msra.mxu0 %v1056_v60 }
 0x22f   :  { %2228 = vmatpush1.msra.mxu1 %v1058_v61  ;;  %1952 = vmatmul.mubr.f32.vlgmr.msra.gmra.mrb[2].mxu0 %v3307_v62 }
 0x230   :  { %2236 = vmatmul.mubr.f32.vlgmr.msra.gmra.mrb[2].mxu1 %v3307_v62 }
 0x302   :  { %v1953_v7 = vpop.f32.mrb[2].mxu0 }
 0x303   :  { %v3266_v8 = vadd.f32 %v1953_v7, %v1081_v3  ;;  %v2237_v9 = vpop.f32.mrb[2].mxu1  ;;  %v1955_v10 = vpop.f32.mrb[3].mxu0 }
 0x304   :  { %v3268_v11 = vadd.f32 %v2237_v9, %v1089_v4  ;;  %v3267_v12 = vadd.f32 %v1955_v10, %v1085_v5  ;;  %v2239_v13 = vpop.f32.mrb[3].mxu1 }
 0x305   :  { %2246 = vst [vmem:[#allocation8 + $0x20] sm:$0xff] %v3266_v8  ;;  %v3269_v14 = vadd.f32 %v2239_v13, %v1093_v6 }
 0x306   :  { %2248 = vst [vmem:[#allocation8 + $0x30] sm:$0xff] %v3268_v11  ;;  %2247 = vst [vmem:[#allocation8 + $0x28] sm:$0xff] %v3267_v12 }
 0x307   :  { %2249 = vst.msk [vmem:[#allocation8 + $0x38] sm:$0xff] %vm1102_vm0, %v3269_v14 }
 0x308   :  { %3385 = shalt.err (!%p3382_p0)
}
 0x309   :  { %s3386_s25 = scalar_lea.hbm %s3504_s3, 1024 }
 0x30a   :  { %p3387_p1 = scmp.ne.s32.totalorder %s3504_s3, %s3386_s25  ;;  %p3390_p2 = scmp.lt.u32.totalorder %s3386_s25, %s3504_s3 }
 0x30c   :  { %p3392_p3 = pnand %p3390_p2, %p3387_p1 }
 0x30e   :  { %3395 = shalt.err (!%p3392_p3)
}
 0x30f   :  { %2259 = dma.vmem_to_hbm [thread:$0]  %s2257_s21, 1024, %s3504_s3, [#allocation4]  }
 0x310   :  { %3400 = dma.done.wait [#allocation4], 1024  }
 0x311   :  { %3401 = vsyncadd [#allocation4], 4294966272 }
 0x312   :  { %2263 = vsyncpa [#allocation3], 1 }
 0x313   :  { %2264 = vsyncpa [#allocation6], 1 }
 0x314   :  { %2265 = vsyncpa [#allocation4], 1 }

</bundles_post_ra>
